<compile_context>
chip_gen: v7x
topology: tpu7x:2x2x1
jax: 0.10.0
libtpu: 0.0.40
codegen_flags: <defaults>
</compile_context>

<pallas_src>
import jax
import jax.numpy as jnp
from jax.experimental import pallas as pl
from jax.experimental.pallas import tpu as pltpu

# ------------------------------- problem sizes ------------------------------ #
B, CIN, H, W = 2, 4, 16, 16
COUT = 32
NUM_CLASSES = 10
HW = H * W                       # 256

# lane-padded sizes (128-lane vregs / MXU width).  Kept at 128 on purpose: padding
# toward the 256-wide v6e/v7x MXU would only double zero-FLOPs and weight DMA.
CP = 128                         # conv channels 32  -> 128
NCP = 128                        # classes       10  -> 128

# fused-conv layout: flattened zero-padded spatial grid, channels (+ones lane) in lanes
PH, PW = H + 2, W + 2            # 18 x 18 padded grid (SAME conv, pad=1)
LANES = 8                        # CIN(4) + ones-lane(1, bias fold) + zero pad -> 8
ROWS = B * PH * PW               # 648 flattened padded-grid rows
EXT = ROWS + 40                  # 688 (mult. of 8): slack so every tap slice is in bounds
TAP_SHIFTS = tuple(di * PW + dj for di in range(3) for dj in range(3))   # max shift 38
CENTER_TAP = 4                   # (di, dj) = (1, 1)

_ONES_LANE = jnp.zeros((LANES,), jnp.float32).at[CIN].set(1.0)   # lane CIN == 1.0 everywhere


# ----------------------------- in-kernel helpers ---------------------------- #

def _ce_from_padded_logits(logits, labels_ref):
    """Mean cross-entropy over B rows of lane-padded logits.

    logits: (B, NCP) f32 (padded class lanes hold zeros).
    labels_ref: SMEM (B,) int32 ref.  Returns (1, 1) f32.
    """
    classes = jax.lax.broadcasted_iota(jnp.int32, (B, NCP), 1)
    rows = jax.lax.broadcasted_iota(jnp.int32, (B, NCP), 0)
    lab = jnp.full((B, NCP), -1, dtype=jnp.int32)
    for b in range(B):                        # B is tiny & static -> unrolled selects
        lab = jnp.where(rows == b, labels_ref[b], lab)
    valid = classes < NUM_CLASSES             # mask padded class lanes
    masked = jnp.where(valid, logits, jnp.float32(-1e30))
    m = jnp.max(masked, axis=-1, keepdims=True)
    lse = m + jnp.log(jnp.sum(jnp.exp(masked - m), axis=-1, keepdims=True))
    onehot = (classes == lab).astype(jnp.float32)
    picked = jnp.sum(logits * onehot, axis=-1, keepdims=True)
    return jnp.mean(lse - picked).reshape(1, 1)


# ------------------------------- Pallas kernels ----------------------------- #

def _fused_fwd_loss_kernel(labels_ref,                     # SMEM (B,) i32
                           x_ref, wtap_ref, pool_ref,      # VMEM inputs
                           wfc_ref, bfc_ref,
                           logits_ref, loss_ref):          # VMEM outputs
    """conv3x3 (9 shifted-row matmuls, bias on MXU) + ReLU + GAP + fc + mean-CE."""
    def tap(t):
        # static slice of the flattened padded grid; bf16 operands, f32 accumulate
        xs = x_ref[pl.ds(TAP_SHIFTS[t], ROWS), :].astype(jnp.bfloat16)   # (ROWS, LANES)
        return jnp.dot(xs, wtap_ref[t], preferred_element_type=jnp.float32)

    feat = tap(0)
    for t in range(1, 9):                                   # static unroll, 9 taps
        feat = feat + tap(t)                                # (ROWS, CP) f32
    # bias already folded via the ones-lane + center-tap weight row -> only ReLU here;
    # bf16 cast halves the live intermediate and keeps the GAP matmul bf16-operand.
    feat = jnp.maximum(feat, 0.0).astype(jnp.bfloat16)

    # global-average-pool as a masked-mean matmul: (B, ROWS) @ (ROWS, CP) -> (B, CP) f32
    pooled = jnp.dot(pool_ref[...], feat, preferred_element_type=jnp.float32)

    # fc: (B, CP)bf16 @ (CP, NCP)bf16 -> f32; padded lanes of wfc/bfc are zero
    logits = jnp.dot(pooled.astype(jnp.bfloat16), wfc_ref[...],
                     preferred_element_type=jnp.float32) + bfc_ref[...]          # (B, NCP)
    logits_ref[...] = logits
    # fused criterion; lane-dense (1, NCP) store of the scalar loss
    loss_ref[...] = jnp.broadcast_to(_ce_from_padded_logits(logits, labels_ref), (1, NCP))


def _ce_kernel(labels_ref, logits_ref, loss_ref):
    """Standalone mean-CE (kept only for ContinualLearner.criterion API parity)."""
    loss11 = _ce_from_padded_logits(logits_ref[...].astype(jnp.float32), labels_ref)
    loss_ref[...] = jnp.broadcast_to(loss11, (1, NCP))


# -------------------------------- JAX wrappers ------------------------------ #

@jax.jit
def _forward_and_loss(x_nchw, labels, w_taps, pool, wfc_pad, bfc_pad):
    # Minimal host-side prep (layout only, ~20 KiB): NCHW -> flattened zero-padded
    # NHWC grid with a constant ones-lane.  The im2col itself happens in the kernel.
    x = jnp.transpose(x_nchw, (0, 2, 3, 1))                                        # (B,H,W,CIN)
    xp = jnp.pad(x, ((0, 0), (1, 1), (1, 1), (0, LANES - CIN))) + _ONES_LANE       # (B,PH,PW,LANES)
    x_ext = jnp.pad(xp.reshape(ROWS, LANES), ((0, EXT - ROWS), (0, 0)))            # (EXT, LANES) f32

    logits_pad, loss_row = pl.pallas_call(
        _fused_fwd_loss_kernel,
        out_shape=(jax.ShapeDtypeStruct((B, NCP), jnp.float32),
                   jax.ShapeDtypeStruct((1, NCP), jnp.float32)),
        # Single invocation: no grid, whole-array blocks, labels straight into SMEM.
        # (On v7x a row-parallel grid over B*HW blocks would only pay off at much
        #  larger sizes; today the kernel is launch/DMA-bound on one TC.)
        in_specs=[
            pl.BlockSpec(memory_space=pltpu.MemorySpace.SMEM),    # labels (B,)
            pl.BlockSpec(memory_space=pltpu.MemorySpace.VMEM),    # x_ext
            pl.BlockSpec(memory_space=pltpu.MemorySpace.VMEM),    # w_taps
            pl.BlockSpec(memory_space=pltpu.MemorySpace.VMEM),    # pool
            pl.BlockSpec(memory_space=pltpu.MemorySpace.VMEM),    # wfc
            pl.BlockSpec(memory_space=pltpu.MemorySpace.VMEM),    # bfc
        ],
        out_specs=(pl.BlockSpec(memory_space=pltpu.MemorySpace.VMEM),
                   pl.BlockSpec(memory_space=pltpu.MemorySpace.VMEM)),
    )(labels.astype(jnp.int32), x_ext, w_taps, pool, wfc_pad, bfc_pad)
    return logits_pad[:, :NUM_CLASSES], loss_row[0, 0]


@jax.jit
def _criterion(logits, labels):
    logits_pad = jnp.pad(jnp.asarray(logits, jnp.float32),
                         ((0, 0), (0, NCP - NUM_CLASSES)))
    loss_row = pl.pallas_call(
        _ce_kernel,
        out_shape=jax.ShapeDtypeStruct((1, NCP), jnp.float32),
        in_specs=[pl.BlockSpec(memory_space=pltpu.MemorySpace.SMEM),
                  pl.BlockSpec(memory_space=pltpu.MemorySpace.VMEM)],
        out_specs=pl.BlockSpec(memory_space=pltpu.MemorySpace.VMEM),
    )(labels.astype(jnp.int32), logits_pad)
    return loss_row[0, 0]


class ContinualLearnerPallas:
    """Mirrors ContinualLearner: forward() = model.forward(x), criterion() = mean CE.

    forward_and_criterion() is the fused single-kernel hot path.
    """
    # TODO(synk): before_train/train_learner/after_train/evaluate involve optimizers,
    # DataLoaders, wandb logging and confusion-matrix bookkeeping — host-side control
    # flow with no Pallas equivalent; omitted.

    def __init__(self, wc, bc, wfc, bfc):
        # Hoist weight reshapes / lane-padding / bf16 casts out of the hot path.
        # Per-tap weights (9, LANES, CP): W_t[c, co] = wc[co, c, di, dj]; conv bias is
        # folded into the MXU via row CIN of the CENTER tap (input ones-lane).
        wt = jnp.zeros((9, LANES, CP), jnp.float32)
        for di in range(3):
            for dj in range(3):
                wt = wt.at[di * 3 + dj, :CIN, :COUT].set(wc[:, :, di, dj].T)
        wt = wt.at[CENTER_TAP, CIN, :COUT].set(bc)
        self.w_taps = wt.astype(jnp.bfloat16)
        self.wfc_pad = (jnp.zeros((CP, NCP), jnp.float32)
                        .at[:COUT, :NUM_CLASSES].set(wfc).astype(jnp.bfloat16))
        self.bfc_pad = jnp.zeros((1, NCP), jnp.float32).at[0, :NUM_CLASSES].set(bfc)
        # Masked-mean pooling matrix over the flattened padded grid (1/HW exact in bf16).
        r = jnp.arange(ROWS)
        bidx = r // (PH * PW)
        rr = (r % (PH * PW)) // PW
        ss = r % PW
        valid = (rr < H) & (ss < W)                        # rows holding real conv outputs
        pool = jnp.where((bidx[None, :] == jnp.arange(B)[:, None]) & valid[None, :],
                         1.0 / HW, 0.0)
        self.pool = pool.astype(jnp.bfloat16)              # (B, ROWS)
        self.old_labels, self.new_labels, self.task_seen = [], [], 0

    def forward_and_criterion(self, x_nchw, labels):
        """Fused forward + mean-CE (one pallas_call). Returns (logits, loss)."""
        return _forward_and_loss(x_nchw, labels, self.w_taps, self.pool,
                                 self.wfc_pad, self.bfc_pad)

    def forward(self, x_nchw):
        logits, _ = self.forward_and_criterion(x_nchw, jnp.zeros((B,), jnp.int32))
        return logits

    def criterion(self, logits, labels):
        return _criterion(logits, labels)


# ------------------------------------ main ---------------------------------- #

if __name__ == "__main__":
    key = jax.random.PRNGKey(0)
    kx, kwc, kbc, kwf, kbf, kl = jax.random.split(key, 6)

    x = jax.random.normal(kx, (B, CIN, H, W), dtype=jnp.float32)
    wc = jax.random.normal(kwc, (COUT, CIN, 3, 3), dtype=jnp.float32) * 0.1
    bc = jax.random.normal(kbc, (COUT,), dtype=jnp.float32) * 0.1
    wfc = jax.random.normal(kwf, (COUT, NUM_CLASSES), dtype=jnp.float32) * 0.1
    bfc = jax.random.normal(kbf, (NUM_CLASSES,), dtype=jnp.float32) * 0.1
    labels = jax.random.randint(kl, (B,), 0, NUM_CLASSES)

    learner = ContinualLearnerPallas(wc, bc, wfc, bfc)
    logits, loss = learner.forward_and_criterion(x, labels)     # fused hot path
    loss_standalone = learner.criterion(logits, labels)         # API-parity path
    jax.block_until_ready((logits, loss, loss_standalone))

    # Pure-JAX f32 reference (PyTorch-equivalent semantics).
    ref_feat = jax.nn.relu(
        jax.lax.conv_general_dilated(
            x, wc, window_strides=(1, 1), padding="SAME",
            dimension_numbers=("NCHW", "OIHW", "NCHW"))
        + bc[None, :, None, None])
    ref_logits = ref_feat.mean(axis=(2, 3)) @ wfc + bfc
    ref_lse = jax.scipy.special.logsumexp(ref_logits, axis=-1)
    ref_loss = jnp.mean(ref_lse - ref_logits[jnp.arange(B), labels])

    # bf16 MXU operands -> slightly looser tolerance than pure f32.
    assert jnp.allclose(logits, ref_logits, atol=2e-2, rtol=2e-2), "logits mismatch"
    assert jnp.allclose(loss, ref_loss, atol=2e-2, rtol=2e-2), "loss mismatch"
    assert jnp.allclose(loss_standalone, ref_loss, atol=2e-2, rtol=2e-2), "criterion mismatch"

    print("KERNEL_OK")
</pallas_src>

<mosaic_0001>
module attributes {stable_mosaic.version = 11 : i64} {
  func.func @_fused_fwd_loss_kernel(%arg0: memref<2xi32, #tpu.memory_space<smem>>, %arg1: memref<688x8xf32, #tpu.memory_space<vmem>>, %arg2: memref<9x8x128xbf16, #tpu.memory_space<vmem>>, %arg3: memref<2x648xbf16, #tpu.memory_space<vmem>>, %arg4: memref<128x128xbf16, #tpu.memory_space<vmem>>, %arg5: memref<1x128xf32, #tpu.memory_space<vmem>>, %arg6: memref<2x128xf32, #tpu.memory_space<vmem>>, %arg7: memref<1x128xf32, #tpu.memory_space<vmem>>) attributes {dimension_semantics = [], scalar_prefetch = 0 : i64, scratch_operands = 0 : i64, tpu.core_type = #tpu.core_type<tc>} {
    %c0 = arith.constant 0 : index
    %c0_0 = arith.constant 0 : index
    %0 = vector.load %arg1[%c0, %c0_0] : memref<688x8xf32, #tpu.memory_space<vmem>>, vector<648x8xf32>
    %1 = arith.truncf %0 : vector<648x8xf32> to vector<648x8xbf16>
    %c0_1 = arith.constant 0 : index
    %c0_2 = arith.constant 0 : index
    %c0_3 = arith.constant 0 : index
    %2 = vector.load %arg2[%c0_1, %c0_2, %c0_3] : memref<9x8x128xbf16, #tpu.memory_space<vmem>>, vector<1x8x128xbf16>
    %3 = vector.shape_cast %2 : vector<1x8x128xbf16> to vector<8x128xbf16>
    %cst = arith.constant dense<0.000000e+00> : vector<648x128xf32>
    %4 = tpu.matmul %1, %3, %cst {dimension_numbers = #tpu.dot_dimension_numbers<[1], [0], [0], [1], [0, 0, 1, 1], [], []>} : vector<648x8xbf16>, vector<8x128xbf16>, vector<648x128xf32> -> vector<648x128xf32>
    %c1 = arith.constant 1 : index
    %c0_4 = arith.constant 0 : index
    %5 = vector.load %arg1[%c1, %c0_4] : memref<688x8xf32, #tpu.memory_space<vmem>>, vector<648x8xf32>
    %6 = arith.truncf %5 : vector<648x8xf32> to vector<648x8xbf16>
    %c1_5 = arith.constant 1 : index
    %c0_6 = arith.constant 0 : index
    %c0_7 = arith.constant 0 : index
    %7 = vector.load %arg2[%c1_5, %c0_6, %c0_7] : memref<9x8x128xbf16, #tpu.memory_space<vmem>>, vector<1x8x128xbf16>
    %8 = vector.shape_cast %7 : vector<1x8x128xbf16> to vector<8x128xbf16>
    %cst_8 = arith.constant dense<0.000000e+00> : vector<648x128xf32>
    %9 = tpu.matmul %6, %8, %cst_8 {dimension_numbers = #tpu.dot_dimension_numbers<[1], [0], [0], [1], [0, 0, 1, 1], [], []>} : vector<648x8xbf16>, vector<8x128xbf16>, vector<648x128xf32> -> vector<648x128xf32>
    %10 = arith.addf %4, %9 : vector<648x128xf32>
    %c2 = arith.constant 2 : index
    %c0_9 = arith.constant 0 : index
    %11 = vector.load %arg1[%c2, %c0_9] : memref<688x8xf32, #tpu.memory_space<vmem>>, vector<648x8xf32>
    %12 = arith.truncf %11 : vector<648x8xf32> to vector<648x8xbf16>
    %c2_10 = arith.constant 2 : index
    %c0_11 = arith.constant 0 : index
    %c0_12 = arith.constant 0 : index
    %13 = vector.load %arg2[%c2_10, %c0_11, %c0_12] : memref<9x8x128xbf16, #tpu.memory_space<vmem>>, vector<1x8x128xbf16>
    %14 = vector.shape_cast %13 : vector<1x8x128xbf16> to vector<8x128xbf16>
    %cst_13 = arith.constant dense<0.000000e+00> : vector<648x128xf32>
    %15 = tpu.matmul %12, %14, %cst_13 {dimension_numbers = #tpu.dot_dimension_numbers<[1], [0], [0], [1], [0, 0, 1, 1], [], []>} : vector<648x8xbf16>, vector<8x128xbf16>, vector<648x128xf32> -> vector<648x128xf32>
    %16 = arith.addf %10, %15 : vector<648x128xf32>
    %c18 = arith.constant 18 : index
    %c0_14 = arith.constant 0 : index
    %17 = vector.load %arg1[%c18, %c0_14] : memref<688x8xf32, #tpu.memory_space<vmem>>, vector<648x8xf32>
    %18 = arith.truncf %17 : vector<648x8xf32> to vector<648x8xbf16>
    %c3 = arith.constant 3 : index
    %c0_15 = arith.constant 0 : index
    %c0_16 = arith.constant 0 : index
    %19 = vector.load %arg2[%c3, %c0_15, %c0_16] : memref<9x8x128xbf16, #tpu.memory_space<vmem>>, vector<1x8x128xbf16>
    %20 = vector.shape_cast %19 : vector<1x8x128xbf16> to vector<8x128xbf16>
    %cst_17 = arith.constant dense<0.000000e+00> : vector<648x128xf32>
    %21 = tpu.matmul %18, %20, %cst_17 {dimension_numbers = #tpu.dot_dimension_numbers<[1], [0], [0], [1], [0, 0, 1, 1], [], []>} : vector<648x8xbf16>, vector<8x128xbf16>, vector<648x128xf32> -> vector<648x128xf32>
    %22 = arith.addf %16, %21 : vector<648x128xf32>
    %c19 = arith.constant 19 : index
    %c0_18 = arith.constant 0 : index
    %23 = vector.load %arg1[%c19, %c0_18] : memref<688x8xf32, #tpu.memory_space<vmem>>, vector<648x8xf32>
    %24 = arith.truncf %23 : vector<648x8xf32> to vector<648x8xbf16>
    %c4 = arith.constant 4 : index
    %c0_19 = arith.constant 0 : index
    %c0_20 = arith.constant 0 : index
    %25 = vector.load %arg2[%c4, %c0_19, %c0_20] : memref<9x8x128xbf16, #tpu.memory_space<vmem>>, vector<1x8x128xbf16>
    %26 = vector.shape_cast %25 : vector<1x8x128xbf16> to vector<8x128xbf16>
    %cst_21 = arith.constant dense<0.000000e+00> : vector<648x128xf32>
    %27 = tpu.matmul %24, %26, %cst_21 {dimension_numbers = #tpu.dot_dimension_numbers<[1], [0], [0], [1], [0, 0, 1, 1], [], []>} : vector<648x8xbf16>, vector<8x128xbf16>, vector<648x128xf32> -> vector<648x128xf32>
    %28 = arith.addf %22, %27 : vector<648x128xf32>
    %c20 = arith.constant 20 : index
    %c0_22 = arith.constant 0 : index
    %29 = vector.load %arg1[%c20, %c0_22] : memref<688x8xf32, #tpu.memory_space<vmem>>, vector<648x8xf32>
    %30 = arith.truncf %29 : vector<648x8xf32> to vector<648x8xbf16>
    %c5 = arith.constant 5 : index
    %c0_23 = arith.constant 0 : index
    %c0_24 = arith.constant 0 : index
    %31 = vector.load %arg2[%c5, %c0_23, %c0_24] : memref<9x8x128xbf16, #tpu.memory_space<vmem>>, vector<1x8x128xbf16>
    %32 = vector.shape_cast %31 : vector<1x8x128xbf16> to vector<8x128xbf16>
    %cst_25 = arith.constant dense<0.000000e+00> : vector<648x128xf32>
    %33 = tpu.matmul %30, %32, %cst_25 {dimension_numbers = #tpu.dot_dimension_numbers<[1], [0], [0], [1], [0, 0, 1, 1], [], []>} : vector<648x8xbf16>, vector<8x128xbf16>, vector<648x128xf32> -> vector<648x128xf32>
    %34 = arith.addf %28, %33 : vector<648x128xf32>
    %c36 = arith.constant 36 : index
    %c0_26 = arith.constant 0 : index
    %35 = vector.load %arg1[%c36, %c0_26] : memref<688x8xf32, #tpu.memory_space<vmem>>, vector<648x8xf32>
    %36 = arith.truncf %35 : vector<648x8xf32> to vector<648x8xbf16>
    %c6 = arith.constant 6 : index
    %c0_27 = arith.constant 0 : index
    %c0_28 = arith.constant 0 : index
    %37 = vector.load %arg2[%c6, %c0_27, %c0_28] : memref<9x8x128xbf16, #tpu.memory_space<vmem>>, vector<1x8x128xbf16>
    %38 = vector.shape_cast %37 : vector<1x8x128xbf16> to vector<8x128xbf16>
    %cst_29 = arith.constant dense<0.000000e+00> : vector<648x128xf32>
    %39 = tpu.matmul %36, %38, %cst_29 {dimension_numbers = #tpu.dot_dimension_numbers<[1], [0], [0], [1], [0, 0, 1, 1], [], []>} : vector<648x8xbf16>, vector<8x128xbf16>, vector<648x128xf32> -> vector<648x128xf32>
    %40 = arith.addf %34, %39 : vector<648x128xf32>
    %c37 = arith.constant 37 : index
    %c0_30 = arith.constant 0 : index
    %41 = vector.load %arg1[%c37, %c0_30] : memref<688x8xf32, #tpu.memory_space<vmem>>, vector<648x8xf32>
    %42 = arith.truncf %41 : vector<648x8xf32> to vector<648x8xbf16>
    %c7 = arith.constant 7 : index
    %c0_31 = arith.constant 0 : index
    %c0_32 = arith.constant 0 : index
    %43 = vector.load %arg2[%c7, %c0_31, %c0_32] : memref<9x8x128xbf16, #tpu.memory_space<vmem>>, vector<1x8x128xbf16>
    %44 = vector.shape_cast %43 : vector<1x8x128xbf16> to vector<8x128xbf16>
    %cst_33 = arith.constant dense<0.000000e+00> : vector<648x128xf32>
    %45 = tpu.matmul %42, %44, %cst_33 {dimension_numbers = #tpu.dot_dimension_numbers<[1], [0], [0], [1], [0, 0, 1, 1], [], []>} : vector<648x8xbf16>, vector<8x128xbf16>, vector<648x128xf32> -> vector<648x128xf32>
    %46 = arith.addf %40, %45 : vector<648x128xf32>
    %c38 = arith.constant 38 : index
    %c0_34 = arith.constant 0 : index
    %47 = vector.load %arg1[%c38, %c0_34] : memref<688x8xf32, #tpu.memory_space<vmem>>, vector<648x8xf32>
    %48 = arith.truncf %47 : vector<648x8xf32> to vector<648x8xbf16>
    %c8 = arith.constant 8 : index
    %c0_35 = arith.constant 0 : index
    %c0_36 = arith.constant 0 : index
    %49 = vector.load %arg2[%c8, %c0_35, %c0_36] : memref<9x8x128xbf16, #tpu.memory_space<vmem>>, vector<1x8x128xbf16>
    %50 = vector.shape_cast %49 : vector<1x8x128xbf16> to vector<8x128xbf16>
    %cst_37 = arith.constant dense<0.000000e+00> : vector<648x128xf32>
    %51 = tpu.matmul %48, %50, %cst_37 {dimension_numbers = #tpu.dot_dimension_numbers<[1], [0], [0], [1], [0, 0, 1, 1], [], []>} : vector<648x8xbf16>, vector<8x128xbf16>, vector<648x128xf32> -> vector<648x128xf32>
    %52 = arith.addf %46, %51 : vector<648x128xf32>
    %cst_38 = arith.constant 0.000000e+00 : f32
    %53 = vector.broadcast %cst_38 : f32 to vector<648x128xf32>
    %54 = arith.maximumf %52, %53 : vector<648x128xf32>
    %55 = arith.truncf %54 : vector<648x128xf32> to vector<648x128xbf16>
    %c0_39 = arith.constant 0 : index
    %c0_40 = arith.constant 0 : index
    %56 = vector.load %arg3[%c0_39, %c0_40] : memref<2x648xbf16, #tpu.memory_space<vmem>>, vector<2x648xbf16>
    %cst_41 = arith.constant dense<0.000000e+00> : vector<2x128xf32>
    %57 = tpu.matmul %56, %55, %cst_41 {dimension_numbers = #tpu.dot_dimension_numbers<[1], [0], [0], [1], [0, 0, 1, 1], [], []>} : vector<2x648xbf16>, vector<648x128xbf16>, vector<2x128xf32> -> vector<2x128xf32>
    %58 = arith.truncf %57 : vector<2x128xf32> to vector<2x128xbf16>
    %c0_42 = arith.constant 0 : index
    %c0_43 = arith.constant 0 : index
    %59 = vector.load %arg4[%c0_42, %c0_43] : memref<128x128xbf16, #tpu.memory_space<vmem>>, vector<128x128xbf16>
    %cst_44 = arith.constant dense<0.000000e+00> : vector<2x128xf32>
    %60 = tpu.matmul %58, %59, %cst_44 {dimension_numbers = #tpu.dot_dimension_numbers<[1], [0], [0], [1], [0, 0, 1, 1], [], []>} : vector<2x128xbf16>, vector<128x128xbf16>, vector<2x128xf32> -> vector<2x128xf32>
    %c0_45 = arith.constant 0 : index
    %c0_46 = arith.constant 0 : index
    %61 = vector.load %arg5[%c0_45, %c0_46] : memref<1x128xf32, #tpu.memory_space<vmem>>, vector<1x128xf32>
    %62 = vector.broadcast %61 : vector<1x128xf32> to vector<2x128xf32>
    %63 = arith.addf %60, %62 : vector<2x128xf32>
    %c0_47 = arith.constant 0 : index
    %c0_48 = arith.constant 0 : index
    %64 = vector.load %arg6[%c0_47, %c0_48] : memref<2x128xf32, #tpu.memory_space<vmem>>, vector<2x128xf32>
    tpu.vector_store %arg6[%c0_47, %c0_48], %63 {strides = array<i32>} : memref<2x128xf32, #tpu.memory_space<vmem>>, vector<2x128xf32>,
    %65 = tpu.iota {dimensions = array<i32: 1>} : vector<2x128xi32>
    %66 = tpu.iota {dimensions = array<i32: 0>} : vector<2x128xi32>
    %c-1_i32 = arith.constant -1 : i32
    %67 = vector.broadcast %c-1_i32 : i32 to vector<2x128xi32>
    %c0_i32 = arith.constant 0 : i32
    %68 = vector.broadcast %c0_i32 : i32 to vector<2x128xi32>
    %69 = arith.cmpi eq, %66, %68 : vector<2x128xi32>
    %c0_49 = arith.constant 0 : index
    %70 = memref.load %arg0[%c0_49] : memref<2xi32, #tpu.memory_space<smem>>
    %71 = vector.broadcast %70 : i32 to vector<2x128xi32>
    %72 = arith.select %69, %71, %67 : vector<2x128xi1>, vector<2x128xi32>
    %c1_i32 = arith.constant 1 : i32
    %73 = vector.broadcast %c1_i32 : i32 to vector<2x128xi32>
    %74 = arith.cmpi eq, %66, %73 : vector<2x128xi32>
    %c1_50 = arith.constant 1 : index
    %75 = memref.load %arg0[%c1_50] : memref<2xi32, #tpu.memory_space<smem>>
    %76 = vector.broadcast %75 : i32 to vector<2x128xi32>
    %77 = arith.select %74, %76, %72 : vector<2x128xi1>, vector<2x128xi32>
    %c10_i32 = arith.constant 10 : i32
    %78 = vector.broadcast %c10_i32 : i32 to vector<2x128xi32>
    %79 = arith.cmpi slt, %65, %78 : vector<2x128xi32>
    %cst_51 = arith.constant -1.000000e+30 : f32
    %80 = vector.broadcast %cst_51 : f32 to vector<2x128xf32>
    %81 = arith.select %79, %63, %80 : vector<2x128xi1>, vector<2x128xf32>
    %cst_52 = arith.constant dense<0xFF800000> : vector<2xf32>
    %82 = vector.multi_reduction <maximumf>, %81, %cst_52 [1] : vector<2x128xf32> to vector<2xf32>
    %83 = vector.shape_cast %82 : vector<2xf32> to vector<2x1xf32>
    %84 = vector.broadcast %83 : vector<2x1xf32> to vector<2x128xf32>
    %85 = arith.subf %81, %84 : vector<2x128xf32>
    %86 = math.exp %85 : vector<2x128xf32>
    %cst_53 = arith.constant dense<0.000000e+00> : vector<2xf32>
    %87 = vector.multi_reduction <add>, %86, %cst_53 [1] : vector<2x128xf32> to vector<2xf32>
    %88 = vector.shape_cast %87 : vector<2xf32> to vector<2x1xf32>
    %89 = math.log %88 : vector<2x1xf32>
    %90 = arith.addf %83, %89 : vector<2x1xf32>
    %91 = arith.cmpi eq, %65, %77 : vector<2x128xi32>
    %92 = arith.extui %91 : vector<2x128xi1> to vector<2x128xi32>
    %93 = arith.sitofp %92 : vector<2x128xi32> to vector<2x128xf32>
    %94 = arith.mulf %63, %93 : vector<2x128xf32>
    %cst_54 = arith.constant dense<0.000000e+00> : vector<2xf32>
    %95 = vector.multi_reduction <add>, %94, %cst_54 [1] : vector<2x128xf32> to vector<2xf32>
    %96 = vector.shape_cast %95 : vector<2xf32> to vector<2x1xf32>
    %97 = arith.subf %90, %96 : vector<2x1xf32>
    %98 = vector.shape_cast %97 : vector<2x1xf32> to vector<1x2x1xf32>
    %cst_55 = arith.constant dense<0.000000e+00> : vector<1xf32>
    %99 = vector.multi_reduction <add>, %98, %cst_55 [1, 2] : vector<1x2x1xf32> to vector<1xf32>
    %100 = vector.shape_cast %99 : vector<1xf32> to vector<1x1x1xf32>
    %101 = vector.extract %100[0, 0, 0] : f32 from vector<1x1x1xf32>
    %cst_56 = arith.constant 2.000000e+00 : f32
    %102 = arith.divf %101, %cst_56 : f32
    %103 = vector.broadcast %102 : f32 to vector<1x1xf32>
    %104 = vector.shape_cast %103 : vector<1x1xf32> to vector<1x1xf32>
    %105 = vector.broadcast %104 : vector<1x1xf32> to vector<1x128xf32>
    %c0_57 = arith.constant 0 : index
    %c0_58 = arith.constant 0 : index
    %106 = vector.load %arg7[%c0_57, %c0_58] : memref<1x128xf32, #tpu.memory_space<vmem>>, vector<1x128xf32>
    tpu.vector_store %arg7[%c0_57, %c0_58], %105 {strides = array<i32>} : memref<1x128xf32, #tpu.memory_space<vmem>>, vector<1x128xf32>,
    return
  }
}

</mosaic_0001>

<bundles_post_ra>
// kernel: _forward_and_loss.1
= control target key start
LH: loop header
LB: loop body
LE: loop exit
PB: predicated region body
PF: predicated region fallthrough
CT: control target
= control target key end

     0   :  { %13 = vsyncpa [#allocation4], 0  ;;  %s13892_s0 = inlined_call_operand.vmem [shape: s32[2], index: 0, kind: input, shape index: {}]   ;;  %s13893_s1 = inlined_call_operand.vmem [shape: f32[688,8], index: 1, kind: input, shape index: {}]   ;;  %s13894_s2 = inlined_call_operand.vmem [shape: bf16[9,8,128], index: 2, kind: input, shape index: {}]   ;;  %s13895_s3 = inlined_call_operand.vmem [shape: bf16[2,648], index: 3, kind: input, shape index: {}]   ;;  %s13896_s4 = inlined_call_operand.vmem [shape: bf16[128,128], index: 4, kind: input, shape index: {}]   ;;  %s13897_s5 = inlined_call_operand.vmem [shape: f32[1,128], index: 5, kind: input, shape index: {}]   ;;  %s13898_s6 = inlined_call_operand.hbm [shape: f32[2,128], index: 6, kind: output, shape index: {0}]   ;;  %s13899_s7 = inlined_call_operand.hbm [shape: f32[1,128], index: 7, kind: output, shape index: {1}]  }
   0x1   :  { %14 = vsyncpa [#allocation3], 0 }
   0x2   :  { %15 = vsyncpa [#allocation7], 0  ;;  %s22_s26 = sshll.u32 %s13892_s0, 4  ;;  %s23_s26 = int_to_ptr.vmem [resolvable:$true] %s22_s26 }
   0x3   :  { %s10181_s27 = scalar_lea.vmem %s23_s26, 16  ;;  %p10186_p1 = scmp.lt.s32.totalorder %s23_s26, %s23_s26 }
   0x4   :  { %p10182_p0 = scmp.ne.s32.totalorder %s23_s26, %s10181_s27  ;;  %p10187_p2 = scmp.lt.s32.totalorder %s10181_s27, %s10181_s27 }
   0x6   :  { %p10188_p3 = por %p10187_p2, %p10186_p1 }
   0x8   :  { %p10189_p4 = pnand %p10188_p3, %p10182_p0 }
   0xa   :  { %10192 = shalt.err (!%p10189_p4)
}
   0xb   :  { %s10243_s28 = smov [#allocation2]  }
   0xc   :  { %25 = dma.vmem_to_smem %s23_s26, 16, %s10243_s28, [#allocation4]  }
   0xd   :  { %10237 = dma.done.wait [#allocation4], 16  }
   0xe   :  { %10238 = vsyncadd [#allocation4], 4294967280 }
   0xf   :  { %39 = sfence }
  0x10   :  { %v6594_v0 = vld [vmem:[%s13894_s2 + $0x4] sm:$0xf]  ;;  %vm412_vm0 = vcmask 1043456   ;;  %v6761_v1 = vld [vmem:[%s13894_s2 + $0x10] sm:$0xf]  ;;  %v10244_v2 = vmov 0.0  }
  0x11   :  { %7414 = vmatprep.subr.bf16.mxu1 %v10244_v2  ;;  %8078 = vmatprep.subr.bf16.mxu0 %v10244_v2  ;;  %v414_v3 = vsel %vm412_vm0, %v6594_v0, 0  ;;  %v10303_v4 = vsel %vm412_vm0, %v6761_v1, 0  ;;  %v164_v5 = vld [vmem:[%s13893_s1 + $0x1] sm:$0xff]  ;;  %v165_v6 = vld [vmem:[%s13893_s1 + $0x9] sm:$0xff]  ;;  %vm288_vm1 = vcmask 64512   ;;  %v2644_v8 = vld [vmem:[%s13893_s1 + $0x13] sm:$0xff] }
  0x12   :  { %7415 = vmatpush3.bf16.msra.mxu1 %v414_v3  ;;  %8079 = vmatpush3.bf16.msra.mxu0 %v10303_v4  ;;  %v245_v7 = vpack.c.bf16 %v165_v6, %v164_v5  ;;  %v2645_v9 = vld [vmem:[%s13893_s1 + $0x1b] sm:$0xff]  ;;  %v6803_v10 = vld [vmem:[%s13894_s2 + $0x14] sm:$0xf]  ;;  %vm10245_vm2 = vmmov 0   ;;  %v2646_v15 = vld [vmem:[%s13893_s1 + $0x23] sm:$0xff]  ;;  %s6519_s10 = sld [smem:[#allocation2]] }
  0x13   :  { %7416 = vmatprep.mubr.msk.bf16.mxu1 %vm10245_vm2, %v10244_v2  ;;  %8080 = vmatprep.mubr.msk.bf16.mxu0 %vm10245_vm2, %v10244_v2  ;;  %v2725_v11 = vpack.c.bf16 %v2645_v9, %v2644_v8  ;;  %v3583_v12 = vsel %vm412_vm0, %v6803_v10, 0  ;;  %v166_v13 = vld [vmem:[%s13893_s1 + $0x11] sm:$0xff]  ;;  %v167_v14 = vld [vmem:[%s13893_s1 + $0x19] sm:$0xff]  ;;  %v168_v19 = vld [vmem:[%s13893_s1 + $0x21] sm:$0xff]  ;;  %s6981_s11 = sld [smem:[#allocation2 + $0x1]]  ;;  %vm6528_vm7 = vcmask 1041408  }
  0x14   :  { %8244 = vmatprep.subr.bf16.mxu0 %v10244_v2  ;;  %7580 = vmatprep.subr.bf16.mxu1 %v10244_v2  ;;  %v2647_v16 = vld [vmem:[%s13893_s1 + $0x2b] sm:$0xff]  ;;  %v246_v17 = vpack.c.bf16 %v167_v14, %v166_v13  ;;  %v2648_v21 = vld [vmem:[%s13893_s1 + $0x33] sm:$0xff]  ;;  %v2649_v22 = vld [vmem:[%s13893_s1 + $0x3b] sm:$0xff]  ;;  %vm6549_vm8 = vcmask 1024  }
  0x15   :  { %7417 = vmatmul.mubr.msk.bf16.vlgmr.msra.gmra.mrb[0].mxu1 %vm288_vm1, %v245_v7  ;;  %8081 = vmatmul.mubr.msk.bf16.vlgmr.msra.gmra.mrb[0].mxu0 %vm288_vm1, %v2725_v11  ;;  %v2726_v18 = vpack.c.bf16 %v2647_v16, %v2646_v15  ;;  %v169_v20 = vld [vmem:[%s13893_s1 + $0x29] sm:$0xff]  ;;  %v2727_v24 = vpack.c.bf16 %v2649_v22, %v2648_v21  ;;  %v170_v25 = vld [vmem:[%s13893_s1 + $0x31] sm:$0xff]  ;;  %v171_v26 = vld [vmem:[%s13893_s1 + $0x39] sm:$0xff] }
  0x16   :  { %8245 = vmatpush3.bf16.msra.mxu0 %v3583_v12  ;;  %7420 = vmatprep.mubr.msk.bf16.mxu1 %vm10245_vm2, %v10244_v2  ;;  %v247_v23 = vpack.c.bf16 %v169_v20, %v168_v19  ;;  %v2650_v27 = vld [vmem:[%s13893_s1 + $0x43] sm:$0xff]  ;;  %v2651_v28 = vld [vmem:[%s13893_s1 + $0x4b] sm:$0xff]  ;;  %v248_v31 = vpack.c.bf16 %v171_v26, %v170_v25  ;;  %v2652_v35 = vld [vmem:[%s13893_s1 + $0x53] sm:$0xff] }
  0x17   :  { %8084 = vmatprep.mubr.msk.bf16.mxu0 %vm10245_vm2, %v10244_v2  ;;  %8410 = vmatprep.subr.bf16.mxu0 %v10244_v2  ;;  %v163_v29 = vld [vmem:[%s13894_s2] sm:$0xf]  ;;  %v2728_v32 = vpack.c.bf16 %v2651_v28, %v2650_v27  ;;  %v173_v34 = vld [vmem:[%s13893_s1 + $0x49] sm:$0xff]  ;;  %v174_v39 = vld [vmem:[%s13893_s1 + $0x51] sm:$0xff] }
  0x18   :  { %v900_v30 = vsel %vm412_vm0, %v163_v29, 0  ;;  %v172_v33 = vld [vmem:[%s13893_s1 + $0x41] sm:$0xff]  ;;  %v175_v40 = vld [vmem:[%s13893_s1 + $0x59] sm:$0xff]  ;;  %v2655_v42 = vld [vmem:[%s13893_s1 + $0x6b] sm:$0xff] }
  0x19   :  { %7581 = vmatpush3.bf16.msra.mxu1 %v900_v30  ;;  %v2653_v36 = vld [vmem:[%s13893_s1 + $0x5b] sm:$0xff]  ;;  %v249_v37 = vpack.c.bf16 %v173_v34, %v172_v33  ;;  %v2654_v41 = vld [vmem:[%s13893_s1 + $0x63] sm:$0xff]  ;;  %v250_v43 = vpack.c.bf16 %v175_v40, %v174_v39  ;;  %v2656_v47 = vld [vmem:[%s13893_s1 + $0x73] sm:$0xff] }
  0x1a   :  { %7746 = vmatprep.subr.bf16.mxu1 %v10244_v2  ;;  %v2729_v38 = vpack.c.bf16 %v2653_v36, %v2652_v35  ;;  %v2730_v44 = vpack.c.bf16 %v2655_v42, %v2654_v41  ;;  %v176_v45 = vld [vmem:[%s13893_s1 + $0x61] sm:$0xff]  ;;  %v177_v46 = vld [vmem:[%s13893_s1 + $0x69] sm:$0xff]  ;;  %v178_v51 = vld [vmem:[%s13893_s1 + $0x71] sm:$0xff] }
  0x1b   :  { %v2657_v48 = vld [vmem:[%s13893_s1 + $0x7b] sm:$0xff]  ;;  %v251_v49 = vpack.c.bf16 %v177_v46, %v176_v45  ;;  %v2658_v53 = vld [vmem:[%s13893_s1 + $0x83] sm:$0xff]  ;;  %v2659_v54 = vld [vmem:[%s13893_s1 + $0x8b] sm:$0xff] }
  0x1c   :  { %v2731_v50 = vpack.c.bf16 %v2657_v48, %v2656_v47  ;;  %v179_v52 = vld [vmem:[%s13893_s1 + $0x79] sm:$0xff]  ;;  %v2732_v56 = vpack.c.bf16 %v2659_v54, %v2658_v53  ;;  %v180_v57 = vld [vmem:[%s13893_s1 + $0x81] sm:$0xff]  ;;  %v181_v58 = vld [vmem:[%s13893_s1 + $0x89] sm:$0xff] }
  0x1d   :  { %7421 = vmatmul.mubr.msk.bf16.gmra.mrb[4].mxu1 %vm288_vm1, %v246_v17  ;;  %8085 = vmatmul.mubr.msk.bf16.gmra.mrb[4].mxu0 %vm288_vm1, %v2726_v18  ;;  %v252_v55 = vpack.c.bf16 %v179_v52, %v178_v51  ;;  %v2660_v59 = vld [vmem:[%s13893_s1 + $0x93] sm:$0xff]  ;;  %v2661_v60 = vld [vmem:[%s13893_s1 + $0x9b] sm:$0xff]  ;;  %v253_v61 = vpack.c.bf16 %v181_v58, %v180_v57  ;;  %v2662_v1 = vld [vmem:[%s13893_s1 + $0xa3] sm:$0xff] }
  0x1e   :  { %7424 = vmatprep.mubr.msk.bf16.mxu1 %vm10245_vm2, %v10244_v2  ;;  %8088 = vmatprep.mubr.msk.bf16.mxu0 %vm10245_vm2, %v10244_v2  ;;  %v2733_v62 = vpack.c.bf16 %v2661_v60, %v2660_v59  ;;  %v182_v63 = vld [vmem:[%s13893_s1 + $0x91] sm:$0xff]  ;;  %v183_v0 = vld [vmem:[%s13893_s1 + $0x99] sm:$0xff]  ;;  %v184_v7 = vld [vmem:[%s13893_s1 + $0xa1] sm:$0xff] }
  0x1f   :  { %v2663_v3 = vld [vmem:[%s13893_s1 + $0xab] sm:$0xff]  ;;  %v254_v5 = vpack.c.bf16 %v183_v0, %v182_v63  ;;  %v2664_v9 = vld [vmem:[%s13893_s1 + $0xb3] sm:$0xff]  ;;  %v2665_v10 = vld [vmem:[%s13893_s1 + $0xbb] sm:$0xff] }
  0x20   :  { %v2734_v6 = vpack.c.bf16 %v2663_v3, %v2662_v1  ;;  %v185_v8 = vld [vmem:[%s13893_s1 + $0xa9] sm:$0xff]  ;;  %v2735_v12 = vpack.c.bf16 %v2665_v10, %v2664_v9  ;;  %v186_v13 = vld [vmem:[%s13893_s1 + $0xb1] sm:$0xff]  ;;  %v187_v14 = vld [vmem:[%s13893_s1 + $0xb9] sm:$0xff] }
  0x21   :  { %v255_v11 = vpack.c.bf16 %v185_v8, %v184_v7  ;;  %v2666_v15 = vld [vmem:[%s13893_s1 + $0xc3] sm:$0xff]  ;;  %v2667_v16 = vld [vmem:[%s13893_s1 + $0xcb] sm:$0xff]  ;;  %v256_v17 = vpack.c.bf16 %v187_v14, %v186_v13  ;;  %v2668_v21 = vld [vmem:[%s13893_s1 + $0xd3] sm:$0xff] }
  0x22   :  { %v2736_v18 = vpack.c.bf16 %v2667_v16, %v2666_v15  ;;  %v188_v19 = vld [vmem:[%s13893_s1 + $0xc1] sm:$0xff]  ;;  %v189_v20 = vld [vmem:[%s13893_s1 + $0xc9] sm:$0xff]  ;;  %v190_v25 = vld [vmem:[%s13893_s1 + $0xd1] sm:$0xff] }
  0x23   :  { %v2669_v22 = vld [vmem:[%s13893_s1 + $0xdb] sm:$0xff]  ;;  %v2670_v27 = vld [vmem:[%s13893_s1 + $0xe3] sm:$0xff]  ;;  %v2671_v28 = vld [vmem:[%s13893_s1 + $0xeb] sm:$0xff] }
  0x24   :  { %v191_v26 = vld [vmem:[%s13893_s1 + $0xd9] sm:$0xff]  ;;  %v2738_v30 = vpack.c.bf16 %v2671_v28, %v2670_v27  ;;  %v2674_v39 = vld [vmem:[%s13893_s1 + $0x103] sm:$0xff]  ;;  %v2675_v40 = vld [vmem:[%s13893_s1 + $0x10b] sm:$0xff] }
  0x25   :  { %7425 = vmatmul.mubr.msk.bf16.gmra.mrb[8].mxu1 %vm288_vm1, %v247_v23  ;;  %8089 = vmatmul.mubr.msk.bf16.gmra.mrb[8].mxu0 %vm288_vm1, %v2727_v24  ;;  %v257_v23 = vpack.c.bf16 %v189_v20, %v188_v19  ;;  %v2737_v24 = vpack.c.bf16 %v2669_v22, %v2668_v21  ;;  %v258_v29 = vpack.c.bf16 %v191_v26, %v190_v25  ;;  %v2672_v33 = vld [vmem:[%s13893_s1 + $0xf3] sm:$0xff]  ;;  %v2673_v34 = vld [vmem:[%s13893_s1 + $0xfb] sm:$0xff]  ;;  %v2678_v51 = vld [vmem:[%s13893_s1 + $0x123] sm:$0xff] }
  0x26   :  { %7428 = vmatprep.mubr.msk.bf16.mxu1 %vm10245_vm2, %v10244_v2  ;;  %8092 = vmatprep.mubr.msk.bf16.mxu0 %vm10245_vm2, %v10244_v2  ;;  %v2739_v36 = vpack.c.bf16 %v2673_v34, %v2672_v33  ;;  %v2740_v42 = vpack.c.bf16 %v2675_v40, %v2674_v39  ;;  %v2676_v45 = vld [vmem:[%s13893_s1 + $0x113] sm:$0xff]  ;;  %v2677_v46 = vld [vmem:[%s13893_s1 + $0x11b] sm:$0xff]  ;;  %v2679_v52 = vld [vmem:[%s13893_s1 + $0x12b] sm:$0xff] }
  0x27   :  { %v2741_v48 = vpack.c.bf16 %v2677_v46, %v2676_v45  ;;  %v2742_v54 = vpack.c.bf16 %v2679_v52, %v2678_v51  ;;  %v2680_v57 = vld [vmem:[%s13893_s1 + $0x133] sm:$0xff]  ;;  %v2681_v58 = vld [vmem:[%s13893_s1 + $0x13b] sm:$0xff]  ;;  %v2682_v63 = vld [vmem:[%s13893_s1 + $0x143] sm:$0xff] }
  0x28   :  { %v2743_v60 = vpack.c.bf16 %v2681_v58, %v2680_v57  ;;  %v2683_v0 = vld [vmem:[%s13893_s1 + $0x14b] sm:$0xff]  ;;  %v2684_v7 = vld [vmem:[%s13893_s1 + $0x153] sm:$0xff]  ;;  %v2685_v8 = vld [vmem:[%s13893_s1 + $0x15b] sm:$0xff] }
  0x29   :  { %v2744_v3 = vpack.c.bf16 %v2683_v0, %v2682_v63  ;;  %v2745_v10 = vpack.c.bf16 %v2685_v8, %v2684_v7  ;;  %v2686_v13 = vld [vmem:[%s13893_s1 + $0x163] sm:$0xff]  ;;  %v2687_v14 = vld [vmem:[%s13893_s1 + $0x16b] sm:$0xff]  ;;  %v2688_v19 = vld [vmem:[%s13893_s1 + $0x173] sm:$0xff] }
  0x2a   :  { %v2746_v16 = vpack.c.bf16 %v2687_v14, %v2686_v13  ;;  %v2689_v20 = vld [vmem:[%s13893_s1 + $0x17b] sm:$0xff]  ;;  %v2690_v25 = vld [vmem:[%s13893_s1 + $0x183] sm:$0xff]  ;;  %v2691_v26 = vld [vmem:[%s13893_s1 + $0x18b] sm:$0xff] }
  0x2b   :  { %v2747_v22 = vpack.c.bf16 %v2689_v20, %v2688_v19  ;;  %v2748_v28 = vpack.c.bf16 %v2691_v26, %v2690_v25  ;;  %v6845_v57 = vld [vmem:[%s13894_s2 + $0x18] sm:$0xf]  ;;  %v3337_v63 = vld [vmem:[%s13893_s1 + $0x24] sm:$0xff]  ;;  %v3338_v0 = vld [vmem:[%s13893_s1 + $0x2c] sm:$0xff] }
  0x2c   :  { %v3339_v7 = vld [vmem:[%s13893_s1 + $0x34] sm:$0xff]  ;;  %v3340_v8 = vld [vmem:[%s13893_s1 + $0x3c] sm:$0xff]  ;;  %v3341_v13 = vld [vmem:[%s13893_s1 + $0x44] sm:$0xff] }
  0x2d   :  { %7429 = vmatmul.mubr.msk.bf16.gmra.mrb[12].mxu1 %vm288_vm1, %v248_v31  ;;  %8093 = vmatmul.mubr.msk.bf16.gmra.mrb[12].mxu0 %vm288_vm1, %v2728_v32  ;;  %v192_v31 = vld [vmem:[%s13893_s1 + $0xe1] sm:$0xff]  ;;  %v193_v32 = vld [vmem:[%s13893_s1 + $0xe9] sm:$0xff]  ;;  %v3343_v19 = vld [vmem:[%s13893_s1 + $0x54] sm:$0xff] }
  0x2e   :  { %7432 = vmatprep.mubr.msk.bf16.mxu1 %vm10245_vm2, %v10244_v2  ;;  %8096 = vmatprep.mubr.msk.bf16.mxu0 %vm10245_vm2, %v10244_v2  ;;  %v259_v35 = vpack.c.bf16 %v193_v32, %v192_v31  ;;  %v2692_v31 = vld [vmem:[%s13893_s1 + $0x193] sm:$0xff]  ;;  %v2693_v32 = vld [vmem:[%s13893_s1 + $0x19b] sm:$0xff]  ;;  %v3345_v25 = vld [vmem:[%s13893_s1 + $0x64] sm:$0xff] }
  0x2f   :  { %v2749_v34 = vpack.c.bf16 %v2693_v32, %v2692_v31  ;;  %v3342_v14 = vld [vmem:[%s13893_s1 + $0x4c] sm:$0xff]  ;;  %v3344_v20 = vld [vmem:[%s13893_s1 + $0x5c] sm:$0xff]  ;;  %v3347_v31 = vld [vmem:[%s13893_s1 + $0x74] sm:$0xff] }
  0x30   :  { %v3346_v26 = vld [vmem:[%s13893_s1 + $0x6c] sm:$0xff]  ;;  %v3348_v32 = vld [vmem:[%s13893_s1 + $0x7c] sm:$0xff] }
  0x35   :  { %7433 = vmatmul.mubr.msk.bf16.gmra.mrb[16].mxu1 %vm288_vm1, %v249_v37  ;;  %8097 = vmatmul.mubr.msk.bf16.gmra.mrb[16].mxu0 %vm288_vm1, %v2729_v38  ;;  %v194_v37 = vld [vmem:[%s13893_s1 + $0xf1] sm:$0xff]  ;;  %v195_v38 = vld [vmem:[%s13893_s1 + $0xf9] sm:$0xff] }
  0x36   :  { %7436 = vmatprep.mubr.msk.bf16.mxu1 %vm10245_vm2, %v10244_v2  ;;  %8100 = vmatprep.mubr.msk.bf16.mxu0 %vm10245_vm2, %v10244_v2  ;;  %v260_v41 = vpack.c.bf16 %v195_v38, %v194_v37  ;;  %v2694_v37 = vld [vmem:[%s13893_s1 + $0x1a3] sm:$0xff]  ;;  %v2695_v38 = vld [vmem:[%s13893_s1 + $0x1ab] sm:$0xff] }
  0x37   :  { %v2750_v40 = vpack.c.bf16 %v2695_v38, %v2694_v37  ;;  %v3349_v37 = vld [vmem:[%s13893_s1 + $0x84] sm:$0xff]  ;;  %v3350_v38 = vld [vmem:[%s13893_s1 + $0x8c] sm:$0xff] }
  0x3d   :  { %7437 = vmatmul.mubr.msk.bf16.gmra.mrb[20].mxu1 %vm288_vm1, %v250_v43  ;;  %8101 = vmatmul.mubr.msk.bf16.gmra.mrb[20].mxu0 %vm288_vm1, %v2730_v44  ;;  %v196_v43 = vld [vmem:[%s13893_s1 + $0x101] sm:$0xff]  ;;  %v197_v44 = vld [vmem:[%s13893_s1 + $0x109] sm:$0xff] }
  0x3e   :  { %7440 = vmatprep.mubr.msk.bf16.mxu1 %vm10245_vm2, %v10244_v2  ;;  %8104 = vmatprep.mubr.msk.bf16.mxu0 %vm10245_vm2, %v10244_v2  ;;  %v261_v47 = vpack.c.bf16 %v197_v44, %v196_v43  ;;  %v2696_v43 = vld [vmem:[%s13893_s1 + $0x1b3] sm:$0xff]  ;;  %v2697_v44 = vld [vmem:[%s13893_s1 + $0x1bb] sm:$0xff] }
  0x3f   :  { %v2751_v46 = vpack.c.bf16 %v2697_v44, %v2696_v43  ;;  %v3351_v43 = vld [vmem:[%s13893_s1 + $0x94] sm:$0xff]  ;;  %v3352_v44 = vld [vmem:[%s13893_s1 + $0x9c] sm:$0xff] }
  0x45   :  { %7441 = vmatmul.mubr.msk.bf16.gmra.mrb[24].mxu1 %vm288_vm1, %v251_v49  ;;  %8105 = vmatmul.mubr.msk.bf16.gmra.mrb[24].mxu0 %vm288_vm1, %v2731_v50  ;;  %v198_v49 = vld [vmem:[%s13893_s1 + $0x111] sm:$0xff]  ;;  %v199_v50 = vld [vmem:[%s13893_s1 + $0x119] sm:$0xff] }
  0x46   :  { %7444 = vmatprep.mubr.msk.bf16.mxu1 %vm10245_vm2, %v10244_v2  ;;  %8108 = vmatprep.mubr.msk.bf16.mxu0 %vm10245_vm2, %v10244_v2  ;;  %v262_v53 = vpack.c.bf16 %v199_v50, %v198_v49  ;;  %v2698_v49 = vld [vmem:[%s13893_s1 + $0x1c3] sm:$0xff]  ;;  %v2699_v50 = vld [vmem:[%s13893_s1 + $0x1cb] sm:$0xff] }
  0x47   :  { %v2752_v52 = vpack.c.bf16 %v2699_v50, %v2698_v49  ;;  %v3353_v49 = vld [vmem:[%s13893_s1 + $0xa4] sm:$0xff]  ;;  %v3354_v50 = vld [vmem:[%s13893_s1 + $0xac] sm:$0xff] }
  0x4d   :  { %7445 = vmatmul.mubr.msk.bf16.gmra.mrb[28].mxu1 %vm288_vm1, %v252_v55  ;;  %8109 = vmatmul.mubr.msk.bf16.gmra.mrb[28].mxu0 %vm288_vm1, %v2732_v56  ;;  %v200_v55 = vld [vmem:[%s13893_s1 + $0x121] sm:$0xff]  ;;  %v201_v56 = vld [vmem:[%s13893_s1 + $0x129] sm:$0xff] }
  0x4e   :  { %7448 = vmatprep.mubr.msk.bf16.mxu1 %vm10245_vm2, %v10244_v2  ;;  %8112 = vmatprep.mubr.msk.bf16.mxu0 %vm10245_vm2, %v10244_v2  ;;  %v263_v59 = vpack.c.bf16 %v201_v56, %v200_v55  ;;  %v3335_v55 = vld [vmem:[%s13893_s1 + $0x14] sm:$0xff]  ;;  %v3336_v56 = vld [vmem:[%s13893_s1 + $0x1c] sm:$0xff] }
  0x55   :  { %7449 = vmatmul.mubr.msk.bf16.gmra.mrb[32].mxu1 %vm288_vm1, %v253_v61  ;;  %8113 = vmatmul.mubr.msk.bf16.gmra.mrb[32].mxu0 %vm288_vm1, %v2733_v62  ;;  %v202_v61 = vld [vmem:[%s13893_s1 + $0x131] sm:$0xff]  ;;  %v203_v62 = vld [vmem:[%s13893_s1 + $0x139] sm:$0xff] }
  0x56   :  { %7452 = vmatprep.mubr.msk.bf16.mxu1 %vm10245_vm2, %v10244_v2  ;;  %8116 = vmatprep.mubr.msk.bf16.mxu0 %vm10245_vm2, %v10244_v2  ;;  %v264_v1 = vpack.c.bf16 %v203_v62, %v202_v61  ;;  %v222_v61 = vld [vmem:[%s13893_s1 + $0x1d1] sm:$0xff]  ;;  %v223_v62 = vld [vmem:[%s13893_s1 + $0x1d9] sm:$0xff] }
  0x5d   :  { %7453 = vmatmul.mubr.msk.bf16.gmra.mrb[36].mxu1 %vm288_vm1, %v254_v5  ;;  %8117 = vmatmul.mubr.msk.bf16.gmra.mrb[36].mxu0 %vm288_vm1, %v2734_v6  ;;  %v204_v5 = vld [vmem:[%s13893_s1 + $0x141] sm:$0xff]  ;;  %v205_v6 = vld [vmem:[%s13893_s1 + $0x149] sm:$0xff] }
  0x5e   :  { %7456 = vmatprep.mubr.msk.bf16.mxu1 %vm10245_vm2, %v10244_v2  ;;  %8120 = vmatprep.mubr.msk.bf16.mxu0 %vm10245_vm2, %v10244_v2  ;;  %v265_v9 = vpack.c.bf16 %v205_v6, %v204_v5  ;;  %v224_v5 = vld [vmem:[%s13893_s1 + $0x1e1] sm:$0xff]  ;;  %v225_v6 = vld [vmem:[%s13893_s1 + $0x1e9] sm:$0xff] }
  0x65   :  { %7457 = vmatmul.mubr.msk.bf16.gmra.mrb[40].mxu1 %vm288_vm1, %v255_v11  ;;  %8121 = vmatmul.mubr.msk.bf16.gmra.mrb[40].mxu0 %vm288_vm1, %v2735_v12  ;;  %v206_v11 = vld [vmem:[%s13893_s1 + $0x151] sm:$0xff]  ;;  %v207_v12 = vld [vmem:[%s13893_s1 + $0x159] sm:$0xff] }
  0x66   :  { %7460 = vmatprep.mubr.msk.bf16.mxu1 %vm10245_vm2, %v10244_v2  ;;  %8124 = vmatprep.mubr.msk.bf16.mxu0 %vm10245_vm2, %v10244_v2  ;;  %v266_v15 = vpack.c.bf16 %v207_v12, %v206_v11  ;;  %v226_v11 = vld [vmem:[%s13893_s1 + $0x1f1] sm:$0xff]  ;;  %v227_v12 = vld [vmem:[%s13893_s1 + $0x1f9] sm:$0xff] }
  0x6d   :  { %7461 = vmatmul.mubr.msk.bf16.gmra.mrb[44].mxu1 %vm288_vm1, %v256_v17  ;;  %8125 = vmatmul.mubr.msk.bf16.gmra.mrb[44].mxu0 %vm288_vm1, %v2736_v18  ;;  %v208_v17 = vld [vmem:[%s13893_s1 + $0x161] sm:$0xff]  ;;  %v209_v18 = vld [vmem:[%s13893_s1 + $0x169] sm:$0xff] }
  0x6e   :  { %7464 = vmatprep.mubr.msk.bf16.mxu1 %vm10245_vm2, %v10244_v2  ;;  %8128 = vmatprep.mubr.msk.bf16.mxu0 %vm10245_vm2, %v10244_v2  ;;  %v267_v21 = vpack.c.bf16 %v209_v18, %v208_v17  ;;  %v228_v17 = vld [vmem:[%s13893_s1 + $0x201] sm:$0xff]  ;;  %v229_v18 = vld [vmem:[%s13893_s1 + $0x209] sm:$0xff] }
  0x75   :  { %7465 = vmatmul.mubr.msk.bf16.gmra.mrb[48].mxu1 %vm288_vm1, %v257_v23  ;;  %8129 = vmatmul.mubr.msk.bf16.gmra.mrb[48].mxu0 %vm288_vm1, %v2737_v24  ;;  %v210_v23 = vld [vmem:[%s13893_s1 + $0x171] sm:$0xff]  ;;  %v211_v24 = vld [vmem:[%s13893_s1 + $0x179] sm:$0xff] }
  0x76   :  { %7468 = vmatprep.mubr.msk.bf16.mxu1 %vm10245_vm2, %v10244_v2  ;;  %8132 = vmatprep.mubr.msk.bf16.mxu0 %vm10245_vm2, %v10244_v2  ;;  %v268_v27 = vpack.c.bf16 %v211_v24, %v210_v23  ;;  %v230_v23 = vld [vmem:[%s13893_s1 + $0x211] sm:$0xff]  ;;  %v231_v24 = vld [vmem:[%s13893_s1 + $0x219] sm:$0xff] }
  0x7d   :  { %7469 = vmatmul.mubr.msk.bf16.gmra.mrb[52].mxu1 %vm288_vm1, %v258_v29  ;;  %8133 = vmatmul.mubr.msk.bf16.gmra.mrb[52].mxu0 %vm288_vm1, %v2738_v30  ;;  %v212_v29 = vld [vmem:[%s13893_s1 + $0x181] sm:$0xff]  ;;  %v213_v30 = vld [vmem:[%s13893_s1 + $0x189] sm:$0xff] }
  0x7e   :  { %7472 = vmatprep.mubr.msk.bf16.mxu1 %vm10245_vm2, %v10244_v2  ;;  %8136 = vmatprep.mubr.msk.bf16.mxu0 %vm10245_vm2, %v10244_v2  ;;  %v269_v33 = vpack.c.bf16 %v213_v30, %v212_v29  ;;  %v232_v29 = vld [vmem:[%s13893_s1 + $0x221] sm:$0xff]  ;;  %v233_v30 = vld [vmem:[%s13893_s1 + $0x229] sm:$0xff] }
  0x85   :  { %7473 = vmatmul.mubr.msk.bf16.gmra.mrb[56].mxu1 %vm288_vm1, %v259_v35  ;;  %8137 = vmatmul.mubr.msk.bf16.gmra.mrb[56].mxu0 %vm288_vm1, %v2739_v36  ;;  %v214_v35 = vld [vmem:[%s13893_s1 + $0x191] sm:$0xff]  ;;  %v215_v36 = vld [vmem:[%s13893_s1 + $0x199] sm:$0xff] }
  0x86   :  { %7476 = vmatprep.mubr.msk.bf16.mxu1 %vm10245_vm2, %v10244_v2  ;;  %8140 = vmatprep.mubr.msk.bf16.mxu0 %vm10245_vm2, %v10244_v2  ;;  %v270_v39 = vpack.c.bf16 %v215_v36, %v214_v35  ;;  %v234_v35 = vld [vmem:[%s13893_s1 + $0x231] sm:$0xff]  ;;  %v235_v36 = vld [vmem:[%s13893_s1 + $0x239] sm:$0xff] }
  0x8d   :  { %7477 = vmatmul.mubr.msk.bf16.gmra.mrb[60].mxu1 %vm288_vm1, %v260_v41  ;;  %8141 = vmatmul.mubr.msk.bf16.gmra.mrb[60].mxu0 %vm288_vm1, %v2740_v42  ;;  %v216_v41 = vld [vmem:[%s13893_s1 + $0x1a1] sm:$0xff]  ;;  %v217_v42 = vld [vmem:[%s13893_s1 + $0x1a9] sm:$0xff] }
  0x8e   :  { %7480 = vmatprep.mubr.msk.bf16.mxu1 %vm10245_vm2, %v10244_v2  ;;  %8144 = vmatprep.mubr.msk.bf16.mxu0 %vm10245_vm2, %v10244_v2  ;;  %v271_v45 = vpack.c.bf16 %v217_v42, %v216_v41  ;;  %v236_v41 = vld [vmem:[%s13893_s1 + $0x241] sm:$0xff]  ;;  %v237_v42 = vld [vmem:[%s13893_s1 + $0x249] sm:$0xff] }
  0x95   :  { %7481 = vmatmul.mubr.msk.bf16.gmra.mrb[64].mxu1 %vm288_vm1, %v261_v47  ;;  %8145 = vmatmul.mubr.msk.bf16.gmra.mrb[64].mxu0 %vm288_vm1, %v2741_v48  ;;  %v218_v47 = vld [vmem:[%s13893_s1 + $0x1b1] sm:$0xff]  ;;  %v219_v48 = vld [vmem:[%s13893_s1 + $0x1b9] sm:$0xff] }
  0x96   :  { %7484 = vmatprep.mubr.msk.bf16.mxu1 %vm10245_vm2, %v10244_v2  ;;  %8148 = vmatprep.mubr.msk.bf16.mxu0 %vm10245_vm2, %v10244_v2  ;;  %v272_v51 = vpack.c.bf16 %v219_v48, %v218_v47  ;;  %v238_v47 = vld [vmem:[%s13893_s1 + $0x251] sm:$0xff]  ;;  %v239_v48 = vld [vmem:[%s13893_s1 + $0x259] sm:$0xff] }
  0x9d   :  { %7485 = vmatmul.mubr.msk.bf16.gmra.mrb[68].mxu1 %vm288_vm1, %v262_v53  ;;  %8149 = vmatmul.mubr.msk.bf16.gmra.mrb[68].mxu0 %vm288_vm1, %v2742_v54  ;;  %v220_v53 = vld [vmem:[%s13893_s1 + $0x1c1] sm:$0xff]  ;;  %v221_v54 = vld [vmem:[%s13893_s1 + $0x1c9] sm:$0xff] }
  0x9e   :  { %7488 = vmatprep.mubr.msk.bf16.mxu1 %vm10245_vm2, %v10244_v2  ;;  %8152 = vmatprep.mubr.msk.bf16.mxu0 %vm10245_vm2, %v10244_v2  ;;  %v273_v58 = vpack.c.bf16 %v221_v54, %v220_v53  ;;  %v240_v53 = vld [vmem:[%s13893_s1 + $0x261] sm:$0xff]  ;;  %v241_v54 = vld [vmem:[%s13893_s1 + $0x269] sm:$0xff] }
  0xa5   :  { %7489 = vmatmul.mubr.msk.bf16.gmra.mrb[72].mxu1 %vm288_vm1, %v263_v59  ;;  %8153 = vmatmul.mubr.msk.bf16.gmra.mrb[72].mxu0 %vm288_vm1, %v2743_v60  ;;  %v3416_v59 = vpack.c.bf16 %v3336_v56, %v3335_v55  ;;  %v4274_v60 = vsel %vm412_vm0, %v6845_v57, 0  ;;  %v3355_v55 = vld [vmem:[%s13893_s1 + $0xb4] sm:$0xff]  ;;  %v3356_v56 = vld [vmem:[%s13893_s1 + $0xbc] sm:$0xff]  ;;  %v283_v57 = vpack.c.bf16 %v241_v54, %v240_v53 }
  0xa6   :  { %7492 = vmatprep.mubr.msk.bf16.mxu1 %vm10245_vm2, %v10244_v2  ;;  %8156 = vmatprep.mubr.msk.bf16.mxu0 %vm10245_vm2, %v10244_v2 }
  0xad   :  { %7493 = vmatmul.mubr.msk.bf16.gmra.mrb[76].mxu1 %vm288_vm1, %v264_v1  ;;  %8157 = vmatmul.mubr.msk.bf16.gmra.mrb[76].mxu0 %vm288_vm1, %v2744_v3  ;;  %v274_v1 = vpack.c.bf16 %v223_v62, %v222_v61  ;;  %v10861_v3 = vpack.c.bf16 %v3338_v0, %v3337_v63  ;;  %v3357_v61 = vld [vmem:[%s13893_s1 + $0xc4] sm:$0xff]  ;;  %v3358_v62 = vld [vmem:[%s13893_s1 + $0xcc] sm:$0xff] }
  0xae   :  { %7496 = vmatprep.mubr.msk.bf16.mxu1 %vm10245_vm2, %v10244_v2  ;;  %8160 = vmatprep.mubr.msk.bf16.mxu0 %vm10245_vm2, %v10244_v2  ;;  %v11071_v0 = vpack.c.bf16 %v3358_v62, %v3357_v61  ;;  %v55_v62 = vld [vmem:[%s13893_s1 + $0x70] sm:$0xff] }
  0xb5   :  { %7497 = vmatmul.mubr.msk.bf16.gmra.mrb[80].mxu1 %vm288_vm1, %v265_v9  ;;  %8161 = vmatmul.mubr.msk.bf16.gmra.mrb[80].mxu0 %vm288_vm1, %v2745_v10  ;;  %v275_v9 = vpack.c.bf16 %v225_v6, %v224_v5  ;;  %v10882_v10 = vpack.c.bf16 %v3340_v8, %v3339_v7  ;;  %v3359_v5 = vld [vmem:[%s13893_s1 + $0xd4] sm:$0xff]  ;;  %v3360_v6 = vld [vmem:[%s13893_s1 + $0xdc] sm:$0xff] }
  0xb6   :  { %7500 = vmatprep.mubr.msk.bf16.mxu1 %vm10245_vm2, %v10244_v2  ;;  %8164 = vmatprep.mubr.msk.bf16.mxu0 %vm10245_vm2, %v10244_v2  ;;  %v11089_v8 = vpack.c.bf16 %v3360_v6, %v3359_v5  ;;  %v3376_v5 = vld [vmem:[%s13893_s1 + $0x15c] sm:$0xff] }
  0xbd   :  { %7501 = vmatmul.mubr.msk.bf16.gmra.mrb[84].mxu1 %vm288_vm1, %v266_v15  ;;  %8165 = vmatmul.mubr.msk.bf16.gmra.mrb[84].mxu0 %vm288_vm1, %v2746_v16  ;;  %v276_v15 = vpack.c.bf16 %v227_v12, %v226_v11  ;;  %v10903_v16 = vpack.c.bf16 %v3342_v14, %v3341_v13  ;;  %v42_v11 = vld [vmem:[%s13893_s1 + $0x8] sm:$0xff] }
  0xbe   :  { %7504 = vmatprep.mubr.msk.bf16.mxu1 %vm10245_vm2, %v10244_v2  ;;  %8168 = vmatprep.mubr.msk.bf16.mxu0 %vm10245_vm2, %v10244_v2  ;;  %v3361_v12 = vld [vmem:[%s13893_s1 + $0xe4] sm:$0xff]  ;;  %v3362_v13 = vld [vmem:[%s13893_s1 + $0xec] sm:$0xff] }
  0xc5   :  { %7505 = vmatmul.mubr.msk.bf16.gmra.mrb[88].mxu1 %vm288_vm1, %v267_v21  ;;  %8169 = vmatmul.mubr.msk.bf16.gmra.mrb[88].mxu0 %vm288_vm1, %v2747_v22  ;;  %v277_v21 = vpack.c.bf16 %v229_v18, %v228_v17  ;;  %v10924_v22 = vpack.c.bf16 %v3344_v20, %v3343_v19  ;;  %v6677_v17 = vld [vmem:[%s13894_s2 + $0x8] sm:$0xf]  ;;  %v43_v19 = vld [vmem:[%s13893_s1 + $0x10] sm:$0xff]  ;;  %v44_v20 = vld [vmem:[%s13893_s1 + $0x18] sm:$0xff] }
  0xc6   :  { %7508 = vmatprep.mubr.msk.bf16.mxu1 %vm10245_vm2, %v10244_v2  ;;  %8172 = vmatprep.mubr.msk.bf16.mxu0 %vm10245_vm2, %v10244_v2  ;;  %v1510_v18 = vsel %vm412_vm0, %v6677_v17, 0 }
  0xcd   :  { %7509 = vmatmul.mubr.msk.bf16.gmra.mrb[92].mxu1 %vm288_vm1, %v268_v27  ;;  %8173 = vmatmul.mubr.msk.bf16.gmra.mrb[92].mxu0 %vm288_vm1, %v2748_v28  ;;  %v278_v27 = vpack.c.bf16 %v231_v24, %v230_v23  ;;  %v10945_v28 = vpack.c.bf16 %v3346_v26, %v3345_v25  ;;  %v3364_v23 = vld [vmem:[%s13893_s1 + $0xfc] sm:$0xff]  ;;  %v123_v24 = vpack.c.bf16 %v44_v20, %v43_v19  ;;  %v3379_v20 = vld [vmem:[%s13893_s1 + $0x174] sm:$0xff] }
  0xce   :  { %7512 = vmatprep.mubr.msk.bf16.mxu1 %vm10245_vm2, %v10244_v2  ;;  %8176 = vmatprep.mubr.msk.bf16.mxu0 %vm10245_vm2, %v10244_v2  ;;  %v45_v26 = vld [vmem:[%s13893_s1 + $0x20] sm:$0xff]  ;;  %v60_v19 = vld [vmem:[%s13893_s1 + $0x98] sm:$0xff] }
  0xd5   :  { %7513 = vmatmul.mubr.msk.bf16.gmra.mrb[96].mxu1 %vm288_vm1, %v269_v33  ;;  %8177 = vmatmul.mubr.msk.bf16.gmra.mrb[96].mxu0 %vm288_vm1, %v2749_v34  ;;  %v279_v33 = vpack.c.bf16 %v233_v30, %v232_v29  ;;  %v10966_v34 = vpack.c.bf16 %v3348_v32, %v3347_v31  ;;  %v3365_v29 = vld [vmem:[%s13893_s1 + $0x104] sm:$0xff]  ;;  %v3366_v30 = vld [vmem:[%s13893_s1 + $0x10c] sm:$0xff] }
  0xd6   :  { %7516 = vmatprep.mubr.msk.bf16.mxu1 %vm10245_vm2, %v10244_v2  ;;  %8180 = vmatprep.mubr.msk.bf16.mxu0 %vm10245_vm2, %v10244_v2  ;;  %v11157_v32 = vpack.c.bf16 %v3366_v30, %v3365_v29  ;;  %v3381_v29 = vld [vmem:[%s13893_s1 + $0x184] sm:$0xff]  ;;  %v3382_v30 = vld [vmem:[%s13893_s1 + $0x18c] sm:$0xff] }
  0xdd   :  { %7517 = vmatmul.mubr.msk.bf16.gmra.mrb[100].mxu1 %vm288_vm1, %v270_v39  ;;  %8181 = vmatmul.mubr.msk.bf16.gmra.mrb[100].mxu0 %vm288_vm1, %v2750_v40  ;;  %v280_v39 = vpack.c.bf16 %v235_v36, %v234_v35  ;;  %v10987_v40 = vpack.c.bf16 %v3350_v38, %v3349_v37  ;;  %v48_v35 = vld [vmem:[%s13893_s1 + $0x38] sm:$0xff] }
  0xde   :  { %7520 = vmatprep.mubr.msk.bf16.mxu1 %vm10245_vm2, %v10244_v2  ;;  %8184 = vmatprep.mubr.msk.bf16.mxu0 %vm10245_vm2, %v10244_v2  ;;  %v3367_v36 = vld [vmem:[%s13893_s1 + $0x114] sm:$0xff]  ;;  %v3368_v37 = vld [vmem:[%s13893_s1 + $0x11c] sm:$0xff] }
  0xe5   :  { %7521 = vmatmul.mubr.msk.bf16.gmra.mrb[104].mxu1 %vm288_vm1, %v271_v45  ;;  %8185 = vmatmul.mubr.msk.bf16.gmra.mrb[104].mxu0 %vm288_vm1, %v2751_v46  ;;  %v281_v45 = vpack.c.bf16 %v237_v42, %v236_v41  ;;  %v11008_v46 = vpack.c.bf16 %v3352_v44, %v3351_v43  ;;  %v49_v41 = vld [vmem:[%s13893_s1 + $0x40] sm:$0xff]  ;;  %v50_v42 = vld [vmem:[%s13893_s1 + $0x48] sm:$0xff] }
  0xe6   :  { %7524 = vmatprep.mubr.msk.bf16.mxu1 %vm10245_vm2, %v10244_v2  ;;  %8188 = vmatprep.mubr.msk.bf16.mxu0 %vm10245_vm2, %v10244_v2  ;;  %v3369_v43 = vld [vmem:[%s13893_s1 + $0x124] sm:$0xff]  ;;  %v3370_v44 = vld [vmem:[%s13893_s1 + $0x12c] sm:$0xff] }
  0xed   :  { %7525 = vmatmul.mubr.msk.bf16.gmra.mrb[108].mxu1 %vm288_vm1, %v272_v51  ;;  %8189 = vmatmul.mubr.msk.bf16.gmra.mrb[108].mxu0 %vm288_vm1, %v2752_v52  ;;  %v282_v51 = vpack.c.bf16 %v239_v48, %v238_v47  ;;  %v11029_v52 = vpack.c.bf16 %v3354_v50, %v3353_v49  ;;  %v11199_v47 = vpack.c.bf16 %v3370_v44, %v3369_v43  ;;  %v51_v48 = vld [vmem:[%s13893_s1 + $0x50] sm:$0xff]  ;;  %v52_v49 = vld [vmem:[%s13893_s1 + $0x58] sm:$0xff]  ;;  %v65_v43 = vld [vmem:[%s13893_s1 + $0xc0] sm:$0xff] }
  0xee   :  { %7528 = vmatprep.mubr.msk.bf16.mxu1 %vm10245_vm2, %v10244_v2  ;;  %8246 = vmatprep.mubr.msk.bf16.mxu0 %vm10245_vm2, %v10244_v2  ;;  %v3371_v50 = vld [vmem:[%s13893_s1 + $0x134] sm:$0xff]  ;;  %v127_v53 = vpack.c.bf16 %v52_v49, %v51_v48  ;;  %v66_v44 = vld [vmem:[%s13893_s1 + $0xc8] sm:$0xff] }
  0xef   :  { %v3386_v48 = vld [vmem:[%s13893_s1 + $0x1ac] sm:$0xff]  ;;  %v134_v49 = vpack.c.bf16 %v66_v44, %v65_v43  ;;  %v3397_v43 = vld [vmem:[%s13893_s1 + $0x204] sm:$0xff] }
  0xf0   :  { %v3398_v44 = vld [vmem:[%s13893_s1 + $0x20c] sm:$0xff] }
  0xf5   :  { %7529 = vmatmul.mubr.msk.bf16.gmra.mrb[112].mxu1 %vm288_vm1, %v273_v58  ;;  %8247 = vmatmul.mubr.msk.bf16.vlgmr.msra.gmra.mrb[0].mxu0 %vm288_vm1, %v3416_v59  ;;  %v11050_v58 = vpack.c.bf16 %v3356_v56, %v3355_v55  ;;  %v242_v59 = vld [vmem:[%s13893_s1 + $0x271] sm:$0xff]  ;;  %v53_v55 = vld [vmem:[%s13893_s1 + $0x60] sm:$0xff]  ;;  %v54_v56 = vld [vmem:[%s13893_s1 + $0x68] sm:$0xff] }
  0xf6   :  { %8411 = vmatpush3.bf16.msra.mxu0 %v4274_v60  ;;  %7532 = vmatprep.mubr.msk.bf16.mxu1 %vm10245_vm2, %v10244_v2  ;;  %v243_v60 = vld [vmem:[%s13893_s1 + $0x279] sm:$0xff] }
  0xf7   :  { %8250 = vmatprep.mubr.msk.bf16.mxu0 %vm10245_vm2, %v10244_v2  ;;  %8576 = vmatprep.subr.bf16.mxu0 %v10244_v2  ;;  %v284_v63 = vpack.c.bf16 %v243_v60, %v242_v59  ;;  %v3374_v59 = vld [vmem:[%s13893_s1 + $0x14c] sm:$0xff]  ;;  %v128_v60 = vpack.c.bf16 %v54_v56, %v53_v55  ;;  %v3387_v55 = vld [vmem:[%s13893_s1 + $0x1b4] sm:$0xff]  ;;  %v3388_v56 = vld [vmem:[%s13893_s1 + $0x1bc] sm:$0xff] }
  0xfd   :  { %7533 = vmatmul.mubr.msk.bf16.gmra.mrb[116].mxu1 %vm288_vm1, %v274_v1  ;;  %8251 = vmatmul.mubr.msk.bf16.gmra.mrb[4].mxu0 %vm288_vm1, %v10861_v3  ;;  %v244_v1 = vld [vmem:[%s13893_s1 + $0x281] sm:$0xff] }
  0xfe   :  { %7536 = vmatprep.mubr.msk.bf16.mxu1 %vm10245_vm2, %v10244_v2  ;;  %8254 = vmatprep.mubr.msk.bf16.mxu0 %vm10245_vm2, %v10244_v2  ;;  %v285_v7 = vpack.c.bf16 %v244_v1, %v244_v1  ;;  %v3375_v1 = vld [vmem:[%s13893_s1 + $0x154] sm:$0xff] }
 0x105   :  { %7537 = vmatmul.mubr.msk.bf16.gmra.mrb[120].mxu1 %vm288_vm1, %v275_v9  ;;  %8255 = vmatmul.mubr.msk.bf16.gmra.mrb[8].mxu0 %vm288_vm1, %v10882_v10  ;;  %v41_v9 = vld [vmem:[%s13893_s1] sm:$0xff] }
 0x106   :  { %7540 = vmatprep.mubr.msk.bf16.mxu1 %vm10245_vm2, %v10244_v2  ;;  %8258 = vmatprep.mubr.msk.bf16.mxu0 %vm10245_vm2, %v10244_v2  ;;  %v122_v14 = vpack.c.bf16 %v42_v11, %v41_v9  ;;  %v57_v9 = vld [vmem:[%s13893_s1 + $0x80] sm:$0xff]  ;;  %v58_v11 = vld [vmem:[%s13893_s1 + $0x88] sm:$0xff] }
 0x10d   :  { %7541 = vmatmul.mubr.msk.bf16.gmra.mrb[124].mxu1 %vm288_vm1, %v276_v15  ;;  %8259 = vmatmul.mubr.msk.bf16.gmra.mrb[12].mxu0 %vm288_vm1, %v10903_v16  ;;  %v11110_v15 = vpack.c.bf16 %v3362_v13, %v3361_v12  ;;  %v3377_v12 = vld [vmem:[%s13893_s1 + $0x164] sm:$0xff]  ;;  %v3378_v13 = vld [vmem:[%s13893_s1 + $0x16c] sm:$0xff] }
 0x10e   :  { %7544 = vmatprep.mubr.msk.bf16.mxu1 %vm10245_vm2, %v10244_v2  ;;  %8262 = vmatprep.mubr.msk.bf16.mxu0 %vm10245_vm2, %v10244_v2  ;;  %v11283_v17 = vpack.c.bf16 %v3378_v13, %v3377_v12  ;;  %v3391_v12 = vld [vmem:[%s13893_s1 + $0x1d4] sm:$0xff]  ;;  %v3392_v13 = vld [vmem:[%s13893_s1 + $0x1dc] sm:$0xff] }
 0x115   :  { %7545 = vmatmul.mubr.msk.bf16.gmra.mrb[128].mxu1 %vm288_vm1, %v277_v21  ;;  %8263 = vmatmul.mubr.msk.bf16.gmra.mrb[16].mxu0 %vm288_vm1, %v10924_v22  ;;  %v3363_v21 = vld [vmem:[%s13893_s1 + $0xf4] sm:$0xff] }
 0x116   :  { %7548 = vmatprep.mubr.msk.bf16.mxu1 %vm10245_vm2, %v10244_v2  ;;  %8266 = vmatprep.mubr.msk.bf16.mxu0 %vm10245_vm2, %v10244_v2  ;;  %v11136_v25 = vpack.c.bf16 %v3364_v23, %v3363_v21  ;;  %v3380_v21 = vld [vmem:[%s13893_s1 + $0x17c] sm:$0xff] }
 0x11d   :  { %7549 = vmatmul.mubr.msk.bf16.gmra.mrb[132].mxu1 %vm288_vm1, %v278_v27  ;;  %8267 = vmatmul.mubr.msk.bf16.gmra.mrb[20].mxu0 %vm288_vm1, %v10945_v28  ;;  %v46_v27 = vld [vmem:[%s13893_s1 + $0x28] sm:$0xff] }
 0x11e   :  { %7552 = vmatprep.mubr.msk.bf16.mxu1 %vm10245_vm2, %v10244_v2  ;;  %8270 = vmatprep.mubr.msk.bf16.mxu0 %vm10245_vm2, %v10244_v2  ;;  %v124_v31 = vpack.c.bf16 %v46_v27, %v45_v26  ;;  %v61_v26 = vld [vmem:[%s13893_s1 + $0xa0] sm:$0xff]  ;;  %v62_v27 = vld [vmem:[%s13893_s1 + $0xa8] sm:$0xff] }
 0x125   :  { %7553 = vmatmul.mubr.msk.bf16.gmra.mrb[136].mxu1 %vm288_vm1, %v279_v33  ;;  %8271 = vmatmul.mubr.msk.bf16.gmra.mrb[24].mxu0 %vm288_vm1, %v10966_v34  ;;  %v47_v33 = vld [vmem:[%s13893_s1 + $0x30] sm:$0xff] }
 0x126   :  { %7556 = vmatprep.mubr.msk.bf16.mxu1 %vm10245_vm2, %v10244_v2  ;;  %8274 = vmatprep.mubr.msk.bf16.mxu0 %vm10245_vm2, %v10244_v2  ;;  %v125_v38 = vpack.c.bf16 %v48_v35, %v47_v33  ;;  %v11325_v33 = vpack.c.bf16 %v3382_v30, %v3381_v29  ;;  %v63_v35 = vld [vmem:[%s13893_s1 + $0xb0] sm:$0xff]  ;;  %v76_v30 = vld [vmem:[%s13893_s1 + $0x118] sm:$0xff] }
 0x127   :  { %v75_v29 = vld [vmem:[%s13893_s1 + $0x110] sm:$0xff] }
 0x12d   :  { %7557 = vmatmul.mubr.msk.bf16.gmra.mrb[140].mxu1 %vm288_vm1, %v280_v39  ;;  %8275 = vmatmul.mubr.msk.bf16.gmra.mrb[28].mxu0 %vm288_vm1, %v10987_v40  ;;  %v11178_v39 = vpack.c.bf16 %v3368_v37, %v3367_v36  ;;  %v64_v36 = vld [vmem:[%s13893_s1 + $0xb8] sm:$0xff] }
 0x12e   :  { %7560 = vmatprep.mubr.msk.bf16.mxu1 %vm10245_vm2, %v10244_v2  ;;  %8278 = vmatprep.mubr.msk.bf16.mxu0 %vm10245_vm2, %v10244_v2  ;;  %v3383_v37 = vld [vmem:[%s13893_s1 + $0x194] sm:$0xff] }
 0x135   :  { %7561 = vmatmul.mubr.msk.bf16.gmra.mrb[144].mxu1 %vm288_vm1, %v281_v45  ;;  %8279 = vmatmul.mubr.msk.bf16.gmra.mrb[32].mxu0 %vm288_vm1, %v11008_v46  ;;  %v126_v45 = vpack.c.bf16 %v50_v42, %v49_v41  ;;  %v133_v41 = vpack.c.bf16 %v64_v36, %v63_v35  ;;  %v3396_v35 = vld [vmem:[%s13893_s1 + $0x1fc] sm:$0xff]  ;;  %v139_v36 = vpack.c.bf16 %v76_v30, %v75_v29  ;;  %v3406_v29 = vld [vmem:[%s13893_s1 + $0x24c] sm:$0xff] }
 0x136   :  { %7564 = vmatprep.mubr.msk.bf16.mxu1 %vm10245_vm2, %v10244_v2  ;;  %8282 = vmatprep.mubr.msk.bf16.mxu0 %vm10245_vm2, %v10244_v2 }
 0x13d   :  { %7565 = vmatmul.mubr.msk.bf16.gmra.mrb[148].mxu1 %vm288_vm1, %v282_v51  ;;  %8283 = vmatmul.mubr.msk.bf16.gmra.mrb[36].mxu0 %vm288_vm1, %v11029_v52  ;;  %v3372_v51 = vld [vmem:[%s13893_s1 + $0x13c] sm:$0xff] }
 0x13e   :  { %7568 = vmatprep.mubr.msk.bf16.mxu1 %vm10245_vm2, %v10244_v2  ;;  %8286 = vmatprep.mubr.msk.bf16.mxu0 %vm10245_vm2, %v10244_v2  ;;  %v11220_v54 = vpack.c.bf16 %v3372_v51, %v3371_v50  ;;  %v67_v51 = vld [vmem:[%s13893_s1 + $0xd0] sm:$0xff] }
 0x145   :  { %7569 = vmatmul.mubr.msk.bf16.gmra.mrb[152].mxu1 %vm288_vm1, %v283_v57  ;;  %8287 = vmatmul.mubr.msk.bf16.gmra.mrb[40].mxu0 %vm288_vm1, %v11050_v58  ;;  %v3373_v57 = vld [vmem:[%s13893_s1 + $0x144] sm:$0xff] }
 0x146   :  { %7572 = vmatprep.mubr.msk.bf16.mxu1 %vm10245_vm2, %v10244_v2  ;;  %8290 = vmatprep.mubr.msk.bf16.mxu0 %vm10245_vm2, %v10244_v2  ;;  %v11241_v61 = vpack.c.bf16 %v3374_v59, %v3373_v57  ;;  %v11388_v59 = vpack.c.bf16 %v3388_v56, %v3387_v55  ;;  %v3400_v55 = vld [vmem:[%s13893_s1 + $0x21c] sm:$0xff] }
 0x14d   :  { %7573 = vmatmul.mubr.msk.bf16.gmra.mrb[156].mxu1 %vm288_vm1, %v284_v63  ;;  %8291 = vmatmul.mubr.msk.bf16.gmra.mrb[44].mxu0 %vm288_vm1, %v11071_v0  ;;  %v56_v63 = vld [vmem:[%s13893_s1 + $0x78] sm:$0xff] }
 0x14e   :  { %7576 = vmatprep.mubr.msk.bf16.mxu1 %vm10245_vm2, %v10244_v2  ;;  %8294 = vmatprep.mubr.msk.bf16.mxu0 %vm10245_vm2, %v10244_v2  ;;  %v129_v6 = vpack.c.bf16 %v56_v63, %v55_v62  ;;  %v70_v62 = vld [vmem:[%s13893_s1 + $0xe8] sm:$0xff] }
 0x14f   :  { %v3389_v63 = vld [vmem:[%s13893_s1 + $0x1c4] sm:$0xff] }
 0x155   :  { %7577 = vmatmul.mubr.msk.bf16.gmra.mrb[160].mxu1 %vm288_vm1, %v285_v7  ;;  %8295 = vmatmul.mubr.msk.bf16.gmra.mrb[48].mxu0 %vm288_vm1, %v11089_v8  ;;  %v11262_v7 = vpack.c.bf16 %v3376_v5, %v3375_v1  ;;  %v3390_v1 = vld [vmem:[%s13893_s1 + $0x1cc] sm:$0xff] }
 0x156   :  { %7582 = vmatprep.mubr.msk.bf16.mxu1 %vm10245_vm2, %v10244_v2  ;;  %8298 = vmatprep.mubr.msk.bf16.mxu0 %vm10245_vm2, %v10244_v2 }
 0x15d   :  { %7583 = vmatmul.mubr.msk.bf16.vlgmr.msra.gmra.mrb[0].mxu1 %vm288_vm1, %v122_v14  ;;  %8299 = vmatmul.mubr.msk.bf16.gmra.mrb[52].mxu0 %vm288_vm1, %v11110_v15  ;;  %v130_v14 = vpack.c.bf16 %v58_v11, %v57_v9  ;;  %v71_v9 = vld [vmem:[%s13893_s1 + $0xf0] sm:$0xff]  ;;  %v72_v11 = vld [vmem:[%s13893_s1 + $0xf8] sm:$0xff] }
 0x15e   :  { %7586 = vmatprep.mubr.msk.bf16.mxu1 %vm10245_vm2, %v10244_v2  ;;  %8302 = vmatprep.mubr.msk.bf16.mxu0 %vm10245_vm2, %v10244_v2 }
 0x15f   :  { %7747 = vmatpush3.bf16.msra.mxu1 %v1510_v18  ;;  %v59_v18 = vld [vmem:[%s13893_s1 + $0x90] sm:$0xff] }
 0x160   :  { %7912 = vmatprep.subr.bf16.mxu1 %v10244_v2  ;;  %v131_v23 = vpack.c.bf16 %v60_v19, %v59_v18  ;;  %v11430_v18 = vpack.c.bf16 %v3392_v13, %v3391_v12  ;;  %v73_v19 = vld [vmem:[%s13893_s1 + $0x100] sm:$0xff]  ;;  %v84_v12 = vld [vmem:[%s13893_s1 + $0x158] sm:$0xff] }
 0x161   :  { %v3403_v13 = vld [vmem:[%s13893_s1 + $0x234] sm:$0xff] }
 0x165   :  { %7587 = vmatmul.mubr.msk.bf16.gmra.mrb[4].mxu1 %vm288_vm1, %v123_v24  ;;  %8303 = vmatmul.mubr.msk.bf16.gmra.mrb[56].mxu0 %vm288_vm1, %v11136_v25  ;;  %v11304_v24 = vpack.c.bf16 %v3380_v21, %v3379_v20  ;;  %v74_v20 = vld [vmem:[%s13893_s1 + $0x108] sm:$0xff] }
 0x166   :  { %7590 = vmatprep.mubr.msk.bf16.mxu1 %vm10245_vm2, %v10244_v2  ;;  %8306 = vmatprep.mubr.msk.bf16.mxu0 %vm10245_vm2, %v10244_v2  ;;  %v3393_v21 = vld [vmem:[%s13893_s1 + $0x1e4] sm:$0xff] }
 0x16d   :  { %7591 = vmatmul.mubr.msk.bf16.gmra.mrb[8].mxu1 %vm288_vm1, %v124_v31  ;;  %8307 = vmatmul.mubr.msk.bf16.gmra.mrb[60].mxu0 %vm288_vm1, %v11157_v32  ;;  %v132_v31 = vpack.c.bf16 %v62_v27, %v61_v26  ;;  %v138_v26 = vpack.c.bf16 %v74_v20, %v73_v19 }
 0x16e   :  { %7594 = vmatprep.mubr.msk.bf16.mxu1 %vm10245_vm2, %v10244_v2  ;;  %8310 = vmatprep.mubr.msk.bf16.mxu0 %vm10245_vm2, %v10244_v2 }
 0x175   :  { %7595 = vmatmul.mubr.msk.bf16.gmra.mrb[12].mxu1 %vm288_vm1, %v125_v38  ;;  %8311 = vmatmul.mubr.msk.bf16.gmra.mrb[64].mxu0 %vm288_vm1, %v11178_v39  ;;  %v3384_v38 = vld [vmem:[%s13893_s1 + $0x19c] sm:$0xff] }
 0x176   :  { %7598 = vmatprep.mubr.msk.bf16.mxu1 %vm10245_vm2, %v10244_v2  ;;  %8314 = vmatprep.mubr.msk.bf16.mxu0 %vm10245_vm2, %v10244_v2  ;;  %v11346_v42 = vpack.c.bf16 %v3384_v38, %v3383_v37  ;;  %v77_v38 = vld [vmem:[%s13893_s1 + $0x120] sm:$0xff] }
 0x17d   :  { %7599 = vmatmul.mubr.msk.bf16.gmra.mrb[16].mxu1 %vm288_vm1, %v126_v45  ;;  %8315 = vmatmul.mubr.msk.bf16.gmra.mrb[68].mxu0 %vm288_vm1, %v11199_v47  ;;  %v3385_v45 = vld [vmem:[%s13893_s1 + $0x1a4] sm:$0xff] }
 0x17e   :  { %7602 = vmatprep.mubr.msk.bf16.mxu1 %vm10245_vm2, %v10244_v2  ;;  %8318 = vmatprep.mubr.msk.bf16.mxu0 %vm10245_vm2, %v10244_v2  ;;  %v11367_v50 = vpack.c.bf16 %v3386_v48, %v3385_v45  ;;  %v11493_v48 = vpack.c.bf16 %v3398_v44, %v3397_v43 }
 0x185   :  { %7603 = vmatmul.mubr.msk.bf16.gmra.mrb[20].mxu1 %vm288_vm1, %v127_v53  ;;  %8319 = vmatmul.mubr.msk.bf16.gmra.mrb[72].mxu0 %vm288_vm1, %v11220_v54  ;;  %v68_v53 = vld [vmem:[%s13893_s1 + $0xd8] sm:$0xff] }
 0x186   :  { %7606 = vmatprep.mubr.msk.bf16.mxu1 %vm10245_vm2, %v10244_v2  ;;  %8322 = vmatprep.mubr.msk.bf16.mxu0 %vm10245_vm2, %v10244_v2  ;;  %v135_v57 = vpack.c.bf16 %v68_v53, %v67_v51  ;;  %v80_v51 = vld [vmem:[%s13893_s1 + $0x138] sm:$0xff] }
 0x187   :  { %v3399_v53 = vld [vmem:[%s13893_s1 + $0x214] sm:$0xff] }
 0x18d   :  { %7607 = vmatmul.mubr.msk.bf16.gmra.mrb[24].mxu1 %vm288_vm1, %v128_v60  ;;  %8323 = vmatmul.mubr.msk.bf16.gmra.mrb[76].mxu0 %vm288_vm1, %v11241_v61  ;;  %v69_v60 = vld [vmem:[%s13893_s1 + $0xe0] sm:$0xff] }
 0x18e   :  { %7610 = vmatprep.mubr.msk.bf16.mxu1 %vm10245_vm2, %v10244_v2  ;;  %8326 = vmatprep.mubr.msk.bf16.mxu0 %vm10245_vm2, %v10244_v2  ;;  %v136_v5 = vpack.c.bf16 %v70_v62, %v69_v60  ;;  %v81_v60 = vld [vmem:[%s13893_s1 + $0x140] sm:$0xff]  ;;  %v82_v62 = vld [vmem:[%s13893_s1 + $0x148] sm:$0xff] }
 0x195   :  { %7611 = vmatmul.mubr.msk.bf16.gmra.mrb[28].mxu1 %vm288_vm1, %v129_v6  ;;  %8327 = vmatmul.mubr.msk.bf16.gmra.mrb[80].mxu0 %vm288_vm1, %v11262_v7  ;;  %v11409_v6 = vpack.c.bf16 %v3390_v1, %v3389_v63  ;;  %v3401_v63 = vld [vmem:[%s13893_s1 + $0x224] sm:$0xff]  ;;  %v3402_v1 = vld [vmem:[%s13893_s1 + $0x22c] sm:$0xff] }
 0x196   :  { %7614 = vmatprep.mubr.msk.bf16.mxu1 %vm10245_vm2, %v10244_v2  ;;  %8330 = vmatprep.mubr.msk.bf16.mxu0 %vm10245_vm2, %v10244_v2 }
 0x19d   :  { %7615 = vmatmul.mubr.msk.bf16.gmra.mrb[32].mxu1 %vm288_vm1, %v130_v14  ;;  %8331 = vmatmul.mubr.msk.bf16.gmra.mrb[84].mxu0 %vm288_vm1, %v11283_v17  ;;  %v137_v14 = vpack.c.bf16 %v72_v11, %v71_v9  ;;  %v11535_v9 = vpack.c.bf16 %v3402_v1, %v3401_v63  ;;  %v83_v11 = vld [vmem:[%s13893_s1 + $0x150] sm:$0xff]  ;;  %v3412_v1 = vld [vmem:[%s13893_s1 + $0x27c] sm:$0xff] }
 0x19e   :  { %7618 = vmatprep.mubr.msk.bf16.mxu1 %vm10245_vm2, %v10244_v2  ;;  %8334 = vmatprep.mubr.msk.bf16.mxu0 %vm10245_vm2, %v10244_v2  ;;  %v143_v19 = vpack.c.bf16 %v84_v12, %v83_v11  ;;  %v3411_v63 = vld [vmem:[%s13893_s1 + $0x274] sm:$0xff]  ;;  %v93_v12 = vld [vmem:[%s13893_s1 + $0x1a0] sm:$0xff] }
 0x19f   :  { %v11640_v11 = vpack.c.bf16 %v3412_v1, %v3411_v63  ;;  %v104_v63 = vld [vmem:[%s13893_s1 + $0x1f8] sm:$0xff] }
 0x1a5   :  { %7619 = vmatmul.mubr.msk.bf16.gmra.mrb[36].mxu1 %vm288_vm1, %v131_v23  ;;  %8335 = vmatmul.mubr.msk.bf16.gmra.mrb[88].mxu0 %vm288_vm1, %v11304_v24  ;;  %v3394_v23 = vld [vmem:[%s13893_s1 + $0x1ec] sm:$0xff] }
 0x1a6   :  { %7622 = vmatprep.mubr.msk.bf16.mxu1 %vm10245_vm2, %v10244_v2  ;;  %8338 = vmatprep.mubr.msk.bf16.mxu0 %vm10245_vm2, %v10244_v2  ;;  %v11451_v27 = vpack.c.bf16 %v3394_v23, %v3393_v21  ;;  %v85_v21 = vld [vmem:[%s13893_s1 + $0x160] sm:$0xff]  ;;  %v86_v23 = vld [vmem:[%s13893_s1 + $0x168] sm:$0xff] }
 0x1a7   :  { %v144_v30 = vpack.c.bf16 %v86_v23, %v85_v21 }
 0x1ad   :  { %7623 = vmatmul.mubr.msk.bf16.gmra.mrb[40].mxu1 %vm288_vm1, %v132_v31  ;;  %8339 = vmatmul.mubr.msk.bf16.gmra.mrb[92].mxu0 %vm288_vm1, %v11325_v33  ;;  %v3395_v31 = vld [vmem:[%s13893_s1 + $0x1f4] sm:$0xff] }
 0x1ae   :  { %7626 = vmatprep.mubr.msk.bf16.mxu1 %vm10245_vm2, %v10244_v2  ;;  %8342 = vmatprep.mubr.msk.bf16.mxu0 %vm10245_vm2, %v10244_v2  ;;  %v11472_v37 = vpack.c.bf16 %v3396_v35, %v3395_v31  ;;  %v87_v35 = vld [vmem:[%s13893_s1 + $0x170] sm:$0xff] }
 0x1b5   :  { %7627 = vmatmul.mubr.msk.bf16.gmra.mrb[44].mxu1 %vm288_vm1, %v133_v41  ;;  %8343 = vmatmul.mubr.msk.bf16.gmra.mrb[96].mxu0 %vm288_vm1, %v11346_v42  ;;  %v78_v41 = vld [vmem:[%s13893_s1 + $0x128] sm:$0xff] }
 0x1b6   :  { %7630 = vmatprep.mubr.msk.bf16.mxu1 %vm10245_vm2, %v10244_v2  ;;  %8346 = vmatprep.mubr.msk.bf16.mxu0 %vm10245_vm2, %v10244_v2  ;;  %v140_v45 = vpack.c.bf16 %v78_v41, %v77_v38  ;;  %v3407_v38 = vld [vmem:[%s13893_s1 + $0x254] sm:$0xff]  ;;  %v3408_v41 = vld [vmem:[%s13893_s1 + $0x25c] sm:$0xff] }
 0x1b7   :  { %v11598_v44 = vpack.c.bf16 %v3408_v41, %v3407_v38  ;;  %v97_v38 = vld [vmem:[%s13893_s1 + $0x1c0] sm:$0xff]  ;;  %v98_v41 = vld [vmem:[%s13893_s1 + $0x1c8] sm:$0xff] }
 0x1bd   :  { %7631 = vmatmul.mubr.msk.bf16.gmra.mrb[48].mxu1 %vm288_vm1, %v134_v49  ;;  %8347 = vmatmul.mubr.msk.bf16.gmra.mrb[100].mxu0 %vm288_vm1, %v11367_v50  ;;  %v79_v49 = vld [vmem:[%s13893_s1 + $0x130] sm:$0xff] }
 0x1be   :  { %7634 = vmatprep.mubr.msk.bf16.mxu1 %vm10245_vm2, %v10244_v2  ;;  %8350 = vmatprep.mubr.msk.bf16.mxu0 %vm10245_vm2, %v10244_v2  ;;  %v141_v56 = vpack.c.bf16 %v80_v51, %v79_v49  ;;  %v90_v49 = vld [vmem:[%s13893_s1 + $0x188] sm:$0xff] }
 0x1bf   :  { %v3409_v51 = vld [vmem:[%s13893_s1 + $0x264] sm:$0xff] }
 0x1c5   :  { %7635 = vmatmul.mubr.msk.bf16.gmra.mrb[52].mxu1 %vm288_vm1, %v135_v57  ;;  %8351 = vmatmul.mubr.msk.bf16.gmra.mrb[104].mxu0 %vm288_vm1, %v11388_v59  ;;  %v11514_v57 = vpack.c.bf16 %v3400_v55, %v3399_v53  ;;  %v3410_v53 = vld [vmem:[%s13893_s1 + $0x26c] sm:$0xff] }
 0x1c6   :  { %7638 = vmatprep.mubr.msk.bf16.mxu1 %vm10245_vm2, %v10244_v2  ;;  %8354 = vmatprep.mubr.msk.bf16.mxu0 %vm10245_vm2, %v10244_v2 }
 0x1cd   :  { %7639 = vmatmul.mubr.msk.bf16.gmra.mrb[56].mxu1 %vm288_vm1, %v136_v5  ;;  %8355 = vmatmul.mubr.msk.bf16.gmra.mrb[108].mxu0 %vm288_vm1, %v11409_v6  ;;  %v142_v5 = vpack.c.bf16 %v82_v62, %v81_v60  ;;  %v91_v60 = vld [vmem:[%s13893_s1 + $0x190] sm:$0xff]  ;;  %v92_v62 = vld [vmem:[%s13893_s1 + $0x198] sm:$0xff] }
 0x1ce   :  { %7642 = vmatprep.mubr.msk.bf16.mxu1 %vm10245_vm2, %v10244_v2  ;;  %8358 = vmatprep.mubr.msk.bf16.mxu0 %vm10245_vm2, %v10244_v2 }
 0x1d5   :  { %7643 = vmatmul.mubr.msk.bf16.gmra.mrb[60].mxu1 %vm288_vm1, %v137_v14  ;;  %8359 = vmatmul.mubr.msk.bf16.gmra.mrb[112].mxu0 %vm288_vm1, %v11430_v18  ;;  %v3404_v14 = vld [vmem:[%s13893_s1 + $0x23c] sm:$0xff] }
 0x1d6   :  { %7646 = vmatprep.mubr.msk.bf16.mxu1 %vm10245_vm2, %v10244_v2  ;;  %8362 = vmatprep.mubr.msk.bf16.mxu0 %vm10245_vm2, %v10244_v2  ;;  %v11556_v20 = vpack.c.bf16 %v3404_v14, %v3403_v13  ;;  %v94_v13 = vld [vmem:[%s13893_s1 + $0x1a8] sm:$0xff] }
 0x1d7   :  { %v3413_v14 = vld [vmem:[%s13893_s1 + $0x284] sm:$0xff]  ;;  %v148_v21 = vpack.c.bf16 %v94_v13, %v93_v12  ;;  %v108_v13 = vld [vmem:[%s13893_s1 + $0x218] sm:$0xff] }
 0x1dd   :  { %7647 = vmatmul.mubr.msk.bf16.gmra.mrb[64].mxu1 %vm288_vm1, %v138_v26  ;;  %8363 = vmatmul.mubr.msk.bf16.gmra.mrb[116].mxu0 %vm288_vm1, %v11451_v27  ;;  %v3405_v26 = vld [vmem:[%s13893_s1 + $0x244] sm:$0xff] }
 0x1de   :  { %7650 = vmatprep.mubr.msk.bf16.mxu1 %vm10245_vm2, %v10244_v2  ;;  %8366 = vmatprep.mubr.msk.bf16.mxu0 %vm10245_vm2, %v10244_v2  ;;  %v11577_v31 = vpack.c.bf16 %v3406_v29, %v3405_v26  ;;  %v95_v26 = vld [vmem:[%s13893_s1 + $0x1b0] sm:$0xff]  ;;  %v96_v29 = vld [vmem:[%s13893_s1 + $0x1b8] sm:$0xff] }
 0x1e5   :  { %7651 = vmatmul.mubr.msk.bf16.gmra.mrb[68].mxu1 %vm288_vm1, %v139_v36  ;;  %8367 = vmatmul.mubr.msk.bf16.gmra.mrb[120].mxu0 %vm288_vm1, %v11472_v37  ;;  %v88_v36 = vld [vmem:[%s13893_s1 + $0x178] sm:$0xff] }
 0x1e6   :  { %7654 = vmatprep.mubr.msk.bf16.mxu1 %vm10245_vm2, %v10244_v2  ;;  %8370 = vmatprep.mubr.msk.bf16.mxu0 %vm10245_vm2, %v10244_v2  ;;  %v145_v43 = vpack.c.bf16 %v88_v36, %v87_v35  ;;  %v149_v35 = vpack.c.bf16 %v96_v29, %v95_v26  ;;  %v112_v26 = vld [vmem:[%s13893_s1 + $0x238] sm:$0xff] }
 0x1ed   :  { %7655 = vmatmul.mubr.msk.bf16.gmra.mrb[72].mxu1 %vm288_vm1, %v140_v45  ;;  %8371 = vmatmul.mubr.msk.bf16.gmra.mrb[124].mxu0 %vm288_vm1, %v11493_v48  ;;  %v89_v45 = vld [vmem:[%s13893_s1 + $0x180] sm:$0xff] }
 0x1ee   :  { %7658 = vmatprep.mubr.msk.bf16.mxu1 %vm10245_vm2, %v10244_v2  ;;  %8374 = vmatprep.mubr.msk.bf16.mxu0 %vm10245_vm2, %v10244_v2  ;;  %v146_v55 = vpack.c.bf16 %v90_v49, %v89_v45  ;;  %v150_v45 = vpack.c.bf16 %v98_v41, %v97_v38  ;;  %v116_v38 = vld [vmem:[%s13893_s1 + $0x258] sm:$0xff] }
 0x1f5   :  { %7659 = vmatmul.mubr.msk.bf16.gmra.mrb[76].mxu1 %vm288_vm1, %v141_v56  ;;  %8375 = vmatmul.mubr.msk.bf16.gmra.mrb[128].mxu0 %vm288_vm1, %v11514_v57  ;;  %v11619_v56 = vpack.c.bf16 %v3410_v53, %v3409_v51  ;;  %v99_v51 = vld [vmem:[%s13893_s1 + $0x1d0] sm:$0xff]  ;;  %v100_v53 = vld [vmem:[%s13893_s1 + $0x1d8] sm:$0xff] }
 0x1f6   :  { %7662 = vmatprep.mubr.msk.bf16.mxu1 %vm10245_vm2, %v10244_v2  ;;  %8378 = vmatprep.mubr.msk.bf16.mxu0 %vm10245_vm2, %v10244_v2 }
 0x1fd   :  { %7663 = vmatmul.mubr.msk.bf16.gmra.mrb[80].mxu1 %vm288_vm1, %v142_v5  ;;  %8379 = vmatmul.mubr.msk.bf16.gmra.mrb[132].mxu0 %vm288_vm1, %v11535_v9  ;;  %v147_v5 = vpack.c.bf16 %v92_v62, %v91_v60  ;;  %v102_v60 = vld [vmem:[%s13893_s1 + $0x1e8] sm:$0xff] }
 0x1fe   :  { %7666 = vmatprep.mubr.msk.bf16.mxu1 %vm10245_vm2, %v10244_v2  ;;  %8382 = vmatprep.mubr.msk.bf16.mxu0 %vm10245_vm2, %v10244_v2 }
 0x205   :  { %7667 = vmatmul.mubr.msk.bf16.gmra.mrb[84].mxu1 %vm288_vm1, %v143_v19  ;;  %8383 = vmatmul.mubr.msk.bf16.gmra.mrb[136].mxu0 %vm288_vm1, %v11556_v20  ;;  %v3414_v19 = vld [vmem:[%s13893_s1 + $0x28c] sm:$0xff] }
 0x206   :  { %7670 = vmatprep.mubr.msk.bf16.mxu1 %vm10245_vm2, %v10244_v2  ;;  %8386 = vmatprep.mubr.msk.bf16.mxu0 %vm10245_vm2, %v10244_v2  ;;  %v11661_v23 = vpack.c.bf16 %v3414_v19, %v3413_v14  ;;  %v110_v19 = vld [vmem:[%s13893_s1 + $0x228] sm:$0xff] }
 0x20d   :  { %7671 = vmatmul.mubr.msk.bf16.gmra.mrb[88].mxu1 %vm288_vm1, %v144_v30  ;;  %8387 = vmatmul.mubr.msk.bf16.gmra.mrb[140].mxu0 %vm288_vm1, %v11577_v31  ;;  %v11679_v30 = vld [vmem:[%s13893_s1 + $0x294] sm:$0xff] }
 0x20e   :  { %7674 = vmatprep.mubr.msk.bf16.mxu1 %vm10245_vm2, %v10244_v2  ;;  %8390 = vmatprep.mubr.msk.bf16.mxu0 %vm10245_vm2, %v10244_v2  ;;  %v3456_v36 = vpack.c.bf16 %v11679_v30, %v11679_v30 }
 0x215   :  { %7675 = vmatmul.mubr.msk.bf16.gmra.mrb[92].mxu1 %vm288_vm1, %v145_v43  ;;  %8391 = vmatmul.mubr.msk.bf16.gmra.mrb[144].mxu0 %vm288_vm1, %v11598_v44  ;;  %v6887_v43 = vld [vmem:[%s13894_s2 + $0x1c] sm:$0xf] }
 0x216   :  { %7678 = vmatprep.mubr.msk.bf16.mxu1 %vm10245_vm2, %v10244_v2  ;;  %8394 = vmatprep.mubr.msk.bf16.mxu0 %vm10245_vm2, %v10244_v2  ;;  %v4965_v49 = vsel %vm412_vm0, %v6887_v43, 0  ;;  %v118_v43 = vld [vmem:[%s13893_s1 + $0x268] sm:$0xff] }
 0x21d   :  { %7679 = vmatmul.mubr.msk.bf16.gmra.mrb[96].mxu1 %vm288_vm1, %v146_v55  ;;  %8395 = vmatmul.mubr.msk.bf16.gmra.mrb[148].mxu0 %vm288_vm1, %v11619_v56  ;;  %v151_v55 = vpack.c.bf16 %v100_v53, %v99_v51 }
 0x21e   :  { %7682 = vmatprep.mubr.msk.bf16.mxu1 %vm10245_vm2, %v10244_v2  ;;  %8398 = vmatprep.mubr.msk.bf16.mxu0 %vm10245_vm2, %v10244_v2 }
 0x225   :  { %7683 = vmatmul.mubr.msk.bf16.gmra.mrb[100].mxu1 %vm288_vm1, %v147_v5  ;;  %8399 = vmatmul.mubr.msk.bf16.gmra.mrb[152].mxu0 %vm288_vm1, %v11640_v11  ;;  %v106_v5 = vld [vmem:[%s13893_s1 + $0x208] sm:$0xff] }
 0x226   :  { %7686 = vmatprep.mubr.msk.bf16.mxu1 %vm10245_vm2, %v10244_v2  ;;  %8402 = vmatprep.mubr.msk.bf16.mxu0 %vm10245_vm2, %v10244_v2 }
 0x22d   :  { %7687 = vmatmul.mubr.msk.bf16.gmra.mrb[104].mxu1 %vm288_vm1, %v148_v21  ;;  %8403 = vmatmul.mubr.msk.bf16.gmra.mrb[156].mxu0 %vm288_vm1, %v11661_v23 }
 0x22e   :  { %7690 = vmatprep.mubr.msk.bf16.mxu1 %vm10245_vm2, %v10244_v2  ;;  %8406 = vmatprep.mubr.msk.bf16.mxu0 %vm10245_vm2, %v10244_v2 }
 0x235   :  { %7691 = vmatmul.mubr.msk.bf16.gmra.mrb[108].mxu1 %vm288_vm1, %v149_v35  ;;  %8407 = vmatmul.mubr.msk.bf16.gmra.mrb[160].mxu0 %vm288_vm1, %v3456_v36  ;;  %v114_v35 = vld [vmem:[%s13893_s1 + $0x248] sm:$0xff] }
 0x236   :  { %7694 = vmatprep.mubr.msk.bf16.mxu1 %vm10245_vm2, %v10244_v2  ;;  %8412 = vmatprep.mubr.msk.bf16.mxu0 %vm10245_vm2, %v10244_v2 }
 0x23d   :  { %7695 = vmatmul.mubr.msk.bf16.gmra.mrb[112].mxu1 %vm288_vm1, %v150_v45  ;;  %8413 = vmatmul.mubr.msk.bf16.vlgmr.msra.gmra.mrb[0].mxu0 %vm288_vm1, %v10861_v3  ;;  %v101_v3 = vld [vmem:[%s13893_s1 + $0x1e0] sm:$0xff] }
 0x23e   :  { %8577 = vmatpush3.bf16.msra.mxu0 %v4965_v49  ;;  %7698 = vmatprep.mubr.msk.bf16.mxu1 %vm10245_vm2, %v10244_v2  ;;  %v152_v62 = vpack.c.bf16 %v102_v60, %v101_v3  ;;  %v120_v49 = vld [vmem:[%s13893_s1 + $0x278] sm:$0xff]  ;;  %v6719_v60 = vld [vmem:[%s13894_s2 + $0xc] sm:$0xf] }
 0x23f   :  { %8416 = vmatprep.mubr.msk.bf16.mxu0 %vm10245_vm2, %v10244_v2  ;;  %8742 = vmatprep.subr.bf16.mxu0 %v10244_v2 }
 0x245   :  { %7699 = vmatmul.mubr.msk.bf16.gmra.mrb[116].mxu1 %vm288_vm1, %v151_v55  ;;  %8417 = vmatmul.mubr.msk.bf16.gmra.mrb[4].mxu0 %vm288_vm1, %v10882_v10  ;;  %v103_v10 = vld [vmem:[%s13893_s1 + $0x1f0] sm:$0xff] }
 0x246   :  { %7702 = vmatprep.mubr.msk.bf16.mxu1 %vm10245_vm2, %v10244_v2  ;;  %8420 = vmatprep.mubr.msk.bf16.mxu0 %vm10245_vm2, %v10244_v2  ;;  %v153_v1 = vpack.c.bf16 %v104_v63, %v103_v10  ;;  %v1263_v55 = vld [vmem:[%s13893_s1 + $0xa] sm:$0xff]  ;;  %v1265_v10 = vld [vmem:[%s13893_s1 + $0x1a] sm:$0xff] }
 0x24d   :  { %7703 = vmatmul.mubr.msk.bf16.gmra.mrb[120].mxu1 %vm288_vm1, %v152_v62  ;;  %8421 = vmatmul.mubr.msk.bf16.gmra.mrb[8].mxu0 %vm288_vm1, %v10903_v16  ;;  %v105_v16 = vld [vmem:[%s13893_s1 + $0x200] sm:$0xff]  ;;  %v1264_v62 = vld [vmem:[%s13893_s1 + $0x12] sm:$0xff] }
 0x24e   :  { %7706 = vmatprep.mubr.msk.bf16.mxu1 %vm10245_vm2, %v10244_v2  ;;  %8424 = vmatprep.mubr.msk.bf16.mxu0 %vm10245_vm2, %v10244_v2  ;;  %v154_v12 = vpack.c.bf16 %v106_v5, %v105_v16  ;;  %v11884_v63 = vpack.c.bf16 %v1265_v10, %v1264_v62  ;;  %v1269_v5 = vld [vmem:[%s13893_s1 + $0x3a] sm:$0xff]  ;;  %v1299_v62 = vld [vmem:[%s13893_s1 + $0x12a] sm:$0xff] }
 0x255   :  { %7707 = vmatmul.mubr.msk.bf16.gmra.mrb[124].mxu1 %vm288_vm1, %v153_v1  ;;  %8425 = vmatmul.mubr.msk.bf16.gmra.mrb[12].mxu0 %vm288_vm1, %v10924_v22  ;;  %v107_v22 = vld [vmem:[%s13893_s1 + $0x210] sm:$0xff] }
 0x256   :  { %7710 = vmatprep.mubr.msk.bf16.mxu1 %vm10245_vm2, %v10244_v2  ;;  %8428 = vmatprep.mubr.msk.bf16.mxu0 %vm10245_vm2, %v10244_v2  ;;  %v155_v14 = vpack.c.bf16 %v108_v13, %v107_v22  ;;  %v1267_v1 = vld [vmem:[%s13893_s1 + $0x2a] sm:$0xff] }
 0x257   :  { %v1271_v22 = vld [vmem:[%s13893_s1 + $0x4a] sm:$0xff] }
 0x25d   :  { %7711 = vmatmul.mubr.msk.bf16.gmra.mrb[128].mxu1 %vm288_vm1, %v154_v12  ;;  %8429 = vmatmul.mubr.msk.bf16.gmra.mrb[16].mxu0 %vm288_vm1, %v10945_v28  ;;  %v109_v28 = vld [vmem:[%s13893_s1 + $0x220] sm:$0xff] }
 0x25e   :  { %7714 = vmatprep.mubr.msk.bf16.mxu1 %vm10245_vm2, %v10244_v2  ;;  %8432 = vmatprep.mubr.msk.bf16.mxu0 %vm10245_vm2, %v10244_v2  ;;  %v156_v21 = vpack.c.bf16 %v110_v19, %v109_v28  ;;  %v1275_v19 = vld [vmem:[%s13893_s1 + $0x6a] sm:$0xff] }
 0x265   :  { %7715 = vmatmul.mubr.msk.bf16.gmra.mrb[132].mxu1 %vm288_vm1, %v155_v14  ;;  %8433 = vmatmul.mubr.msk.bf16.gmra.mrb[20].mxu0 %vm288_vm1, %v10966_v34  ;;  %v111_v34 = vld [vmem:[%s13893_s1 + $0x230] sm:$0xff]  ;;  %v1273_v14 = vld [vmem:[%s13893_s1 + $0x5a] sm:$0xff] }
 0x266   :  { %7718 = vmatprep.mubr.msk.bf16.mxu1 %vm10245_vm2, %v10244_v2  ;;  %8436 = vmatprep.mubr.msk.bf16.mxu0 %vm10245_vm2, %v10244_v2  ;;  %v157_v29 = vpack.c.bf16 %v112_v26, %v111_v34  ;;  %v1277_v34 = vld [vmem:[%s13893_s1 + $0x7a] sm:$0xff] }
 0x26d   :  { %7719 = vmatmul.mubr.msk.bf16.gmra.mrb[136].mxu1 %vm288_vm1, %v156_v21  ;;  %8437 = vmatmul.mubr.msk.bf16.gmra.mrb[24].mxu0 %vm288_vm1, %v10987_v40  ;;  %v113_v40 = vld [vmem:[%s13893_s1 + $0x240] sm:$0xff] }
 0x26e   :  { %7722 = vmatprep.mubr.msk.bf16.mxu1 %vm10245_vm2, %v10244_v2  ;;  %8440 = vmatprep.mubr.msk.bf16.mxu0 %vm10245_vm2, %v10244_v2  ;;  %v158_v36 = vpack.c.bf16 %v114_v35, %v113_v40  ;;  %v1281_v35 = vld [vmem:[%s13893_s1 + $0x9a] sm:$0xff] }
 0x275   :  { %7723 = vmatmul.mubr.msk.bf16.gmra.mrb[140].mxu1 %vm288_vm1, %v157_v29  ;;  %8441 = vmatmul.mubr.msk.bf16.gmra.mrb[28].mxu0 %vm288_vm1, %v11008_v46  ;;  %v115_v46 = vld [vmem:[%s13893_s1 + $0x250] sm:$0xff] }
 0x276   :  { %7726 = vmatprep.mubr.msk.bf16.mxu1 %vm10245_vm2, %v10244_v2  ;;  %8444 = vmatprep.mubr.msk.bf16.mxu0 %vm10245_vm2, %v10244_v2  ;;  %v159_v41 = vpack.c.bf16 %v116_v38, %v115_v46  ;;  %v1279_v29 = vld [vmem:[%s13893_s1 + $0x8a] sm:$0xff] }
 0x277   :  { %v1283_v46 = vld [vmem:[%s13893_s1 + $0xaa] sm:$0xff] }
 0x27d   :  { %7727 = vmatmul.mubr.msk.bf16.gmra.mrb[144].mxu1 %vm288_vm1, %v158_v36  ;;  %8445 = vmatmul.mubr.msk.bf16.gmra.mrb[32].mxu0 %vm288_vm1, %v11029_v52  ;;  %v117_v52 = vld [vmem:[%s13893_s1 + $0x260] sm:$0xff] }
 0x27e   :  { %7730 = vmatprep.mubr.msk.bf16.mxu1 %vm10245_vm2, %v10244_v2  ;;  %8448 = vmatprep.mubr.msk.bf16.mxu0 %vm10245_vm2, %v10244_v2  ;;  %v160_v45 = vpack.c.bf16 %v118_v43, %v117_v52  ;;  %v1287_v43 = vld [vmem:[%s13893_s1 + $0xca] sm:$0xff] }
 0x285   :  { %7731 = vmatmul.mubr.msk.bf16.gmra.mrb[148].mxu1 %vm288_vm1, %v159_v41  ;;  %8449 = vmatmul.mubr.msk.bf16.gmra.mrb[36].mxu0 %vm288_vm1, %v11050_v58  ;;  %v119_v58 = vld [vmem:[%s13893_s1 + $0x270] sm:$0xff]  ;;  %v1285_v41 = vld [vmem:[%s13893_s1 + $0xba] sm:$0xff] }
 0x286   :  { %7734 = vmatprep.mubr.msk.bf16.mxu1 %vm10245_vm2, %v10244_v2  ;;  %8452 = vmatprep.mubr.msk.bf16.mxu0 %vm10245_vm2, %v10244_v2  ;;  %v161_v51 = vpack.c.bf16 %v120_v49, %v119_v58  ;;  %v1289_v58 = vld [vmem:[%s13893_s1 + $0xda] sm:$0xff] }
 0x28d   :  { %7735 = vmatmul.mubr.msk.bf16.gmra.mrb[152].mxu1 %vm288_vm1, %v160_v45  ;;  %8453 = vmatmul.mubr.msk.bf16.gmra.mrb[40].mxu0 %vm288_vm1, %v11071_v0  ;;  %v121_v0 = vld [vmem:[%s13893_s1 + $0x280] sm:$0xff] }
 0x28e   :  { %7738 = vmatprep.mubr.msk.bf16.mxu1 %vm10245_vm2, %v10244_v2  ;;  %8456 = vmatprep.mubr.msk.bf16.mxu0 %vm10245_vm2, %v10244_v2  ;;  %v162_v53 = vpack.c.bf16 %v121_v0, %v121_v0 }
 0x295   :  { %7739 = vmatmul.mubr.msk.bf16.gmra.mrb[156].mxu1 %vm288_vm1, %v161_v51  ;;  %8457 = vmatmul.mubr.msk.bf16.gmra.mrb[44].mxu0 %vm288_vm1, %v11089_v8  ;;  %v1262_v8 = vld [vmem:[%s13893_s1 + $0x2] sm:$0xff]  ;;  %v1291_v51 = vld [vmem:[%s13893_s1 + $0xea] sm:$0xff] }
 0x296   :  { %7742 = vmatprep.mubr.msk.bf16.mxu1 %vm10245_vm2, %v10244_v2  ;;  %8460 = vmatprep.mubr.msk.bf16.mxu0 %vm10245_vm2, %v10244_v2  ;;  %v1343_v3 = vpack.c.bf16 %v1263_v55, %v1262_v8  ;;  %v1295_v55 = vld [vmem:[%s13893_s1 + $0x10a] sm:$0xff] }
 0x29d   :  { %7743 = vmatmul.mubr.msk.bf16.gmra.mrb[160].mxu1 %vm288_vm1, %v162_v53  ;;  %8461 = vmatmul.mubr.msk.bf16.gmra.mrb[48].mxu0 %vm288_vm1, %v11110_v15  ;;  %v2201_v15 = vsel %vm412_vm0, %v6719_v60, 0  ;;  %v1293_v53 = vld [vmem:[%s13893_s1 + $0xfa] sm:$0xff] }
 0x29e   :  { %7748 = vmatprep.mubr.msk.bf16.mxu1 %vm10245_vm2, %v10244_v2  ;;  %8464 = vmatprep.mubr.msk.bf16.mxu0 %vm10245_vm2, %v10244_v2  ;;  %v1297_v60 = vld [vmem:[%s13893_s1 + $0x11a] sm:$0xff] }
 0x2a5   :  { %7749 = vmatmul.mubr.msk.bf16.vlgmr.msra.gmra.mrb[0].mxu1 %vm288_vm1, %v1343_v3  ;;  %8465 = vmatmul.mubr.msk.bf16.gmra.mrb[52].mxu0 %vm288_vm1, %v11136_v25  ;;  %v1266_v25 = vld [vmem:[%s13893_s1 + $0x22] sm:$0xff] }
 0x2a6   :  { %7752 = vmatprep.mubr.msk.bf16.mxu1 %vm10245_vm2, %v10244_v2  ;;  %8468 = vmatprep.mubr.msk.bf16.mxu0 %vm10245_vm2, %v10244_v2  ;;  %v11900_v16 = vpack.c.bf16 %v1267_v1, %v1266_v25  ;;  %v1301_v25 = vld [vmem:[%s13893_s1 + $0x13a] sm:$0xff] }
 0x2a7   :  { %7913 = vmatpush3.bf16.msra.mxu1 %v2201_v15 }
 0x2a8   :  { %8928 = vmatprep.subr.bf16.mxu1 %v10244_v2 }
 0x2ad   :  { %7753 = vmatmul.mubr.msk.bf16.gmra.mrb[4].mxu1 %vm288_vm1, %v11884_v63  ;;  %8469 = vmatmul.mubr.msk.bf16.gmra.mrb[56].mxu0 %vm288_vm1, %v11157_v32  ;;  %v1268_v32 = vld [vmem:[%s13893_s1 + $0x32] sm:$0xff] }
 0x2ae   :  { %7756 = vmatprep.mubr.msk.bf16.mxu1 %vm10245_vm2, %v10244_v2  ;;  %8472 = vmatprep.mubr.msk.bf16.mxu0 %vm10245_vm2, %v10244_v2  ;;  %v11916_v12 = vpack.c.bf16 %v1269_v5, %v1268_v32  ;;  %v1303_v32 = vld [vmem:[%s13893_s1 + $0x14a] sm:$0xff] }
 0x2b5   :  { %7757 = vmatmul.mubr.msk.bf16.gmra.mrb[8].mxu1 %vm288_vm1, %v11900_v16  ;;  %8473 = vmatmul.mubr.msk.bf16.gmra.mrb[60].mxu0 %vm288_vm1, %v11178_v39  ;;  %v1270_v39 = vld [vmem:[%s13893_s1 + $0x42] sm:$0xff] }
 0x2b6   :  { %7760 = vmatprep.mubr.msk.bf16.mxu1 %vm10245_vm2, %v10244_v2  ;;  %8476 = vmatprep.mubr.msk.bf16.mxu0 %vm10245_vm2, %v10244_v2  ;;  %v11932_v13 = vpack.c.bf16 %v1271_v22, %v1270_v39  ;;  %v1305_v39 = vld [vmem:[%s13893_s1 + $0x15a] sm:$0xff] }
 0x2bd   :  { %7761 = vmatmul.mubr.msk.bf16.gmra.mrb[12].mxu1 %vm288_vm1, %v11916_v12  ;;  %8477 = vmatmul.mubr.msk.bf16.gmra.mrb[64].mxu0 %vm288_vm1, %v11199_v47  ;;  %v1272_v47 = vld [vmem:[%s13893_s1 + $0x52] sm:$0xff] }
 0x2be   :  { %7764 = vmatprep.mubr.msk.bf16.mxu1 %vm10245_vm2, %v10244_v2  ;;  %8480 = vmatprep.mubr.msk.bf16.mxu0 %vm10245_vm2, %v10244_v2  ;;  %v11948_v28 = vpack.c.bf16 %v1273_v14, %v1272_v47  ;;  %v1307_v47 = vld [vmem:[%s13893_s1 + $0x16a] sm:$0xff] }
 0x2c5   :  { %7765 = vmatmul.mubr.msk.bf16.gmra.mrb[16].mxu1 %vm288_vm1, %v11932_v13  ;;  %8481 = vmatmul.mubr.msk.bf16.gmra.mrb[68].mxu0 %vm288_vm1, %v11220_v54  ;;  %v1274_v54 = vld [vmem:[%s13893_s1 + $0x62] sm:$0xff] }
 0x2c6   :  { %7768 = vmatprep.mubr.msk.bf16.mxu1 %vm10245_vm2, %v10244_v2  ;;  %8484 = vmatprep.mubr.msk.bf16.mxu0 %vm10245_vm2, %v10244_v2  ;;  %v11964_v21 = vpack.c.bf16 %v1275_v19, %v1274_v54  ;;  %v1309_v54 = vld [vmem:[%s13893_s1 + $0x17a] sm:$0xff] }
 0x2cd   :  { %7769 = vmatmul.mubr.msk.bf16.gmra.mrb[20].mxu1 %vm288_vm1, %v11948_v28  ;;  %8485 = vmatmul.mubr.msk.bf16.gmra.mrb[72].mxu0 %vm288_vm1, %v11241_v61  ;;  %v1276_v61 = vld [vmem:[%s13893_s1 + $0x72] sm:$0xff] }
 0x2ce   :  { %7772 = vmatprep.mubr.msk.bf16.mxu1 %vm10245_vm2, %v10244_v2  ;;  %8488 = vmatprep.mubr.msk.bf16.mxu0 %vm10245_vm2, %v10244_v2  ;;  %v11980_v26 = vpack.c.bf16 %v1277_v34, %v1276_v61  ;;  %v1311_v61 = vld [vmem:[%s13893_s1 + $0x18a] sm:$0xff] }
 0x2d5   :  { %7773 = vmatmul.mubr.msk.bf16.gmra.mrb[24].mxu1 %vm288_vm1, %v11964_v21  ;;  %8489 = vmatmul.mubr.msk.bf16.gmra.mrb[76].mxu0 %vm288_vm1, %v11262_v7  ;;  %v1278_v7 = vld [vmem:[%s13893_s1 + $0x82] sm:$0xff] }
 0x2d6   :  { %7776 = vmatprep.mubr.msk.bf16.mxu1 %vm10245_vm2, %v10244_v2  ;;  %8492 = vmatprep.mubr.msk.bf16.mxu0 %vm10245_vm2, %v10244_v2  ;;  %v11996_v40 = vpack.c.bf16 %v1279_v29, %v1278_v7  ;;  %v1313_v7 = vld [vmem:[%s13893_s1 + $0x19a] sm:$0xff] }
 0x2dd   :  { %7777 = vmatmul.mubr.msk.bf16.gmra.mrb[28].mxu1 %vm288_vm1, %v11980_v26  ;;  %8493 = vmatmul.mubr.msk.bf16.gmra.mrb[80].mxu0 %vm288_vm1, %v11283_v17  ;;  %v1280_v17 = vld [vmem:[%s13893_s1 + $0x92] sm:$0xff] }
 0x2de   :  { %7780 = vmatprep.mubr.msk.bf16.mxu1 %vm10245_vm2, %v10244_v2  ;;  %8496 = vmatprep.mubr.msk.bf16.mxu0 %vm10245_vm2, %v10244_v2  ;;  %v12012_v36 = vpack.c.bf16 %v1281_v35, %v1280_v17  ;;  %v1315_v17 = vld [vmem:[%s13893_s1 + $0x1aa] sm:$0xff]  ;;  %v4105_v35 = vld [vmem:[%s13893_s1 + $0x29c] sm:$0xff] }
 0x2e5   :  { %7781 = vmatmul.mubr.msk.bf16.gmra.mrb[32].mxu1 %vm288_vm1, %v11996_v40  ;;  %8497 = vmatmul.mubr.msk.bf16.gmra.mrb[84].mxu0 %vm288_vm1, %v11304_v24  ;;  %v1282_v24 = vld [vmem:[%s13893_s1 + $0xa2] sm:$0xff] }
 0x2e6   :  { %7784 = vmatprep.mubr.msk.bf16.mxu1 %vm10245_vm2, %v10244_v2  ;;  %8500 = vmatprep.mubr.msk.bf16.mxu0 %vm10245_vm2, %v10244_v2  ;;  %v12028_v38 = vpack.c.bf16 %v1283_v46, %v1282_v24  ;;  %v1316_v46 = vld [vmem:[%s13893_s1 + $0x1b2] sm:$0xff] }
 0x2ed   :  { %7785 = vmatmul.mubr.msk.bf16.gmra.mrb[36].mxu1 %vm288_vm1, %v12012_v36  ;;  %8501 = vmatmul.mubr.msk.bf16.gmra.mrb[88].mxu0 %vm288_vm1, %v11325_v33  ;;  %v1284_v33 = vld [vmem:[%s13893_s1 + $0xb2] sm:$0xff] }
 0x2ee   :  { %7788 = vmatprep.mubr.msk.bf16.mxu1 %vm10245_vm2, %v10244_v2  ;;  %8504 = vmatprep.mubr.msk.bf16.mxu0 %vm10245_vm2, %v10244_v2  ;;  %v12044_v52 = vpack.c.bf16 %v1285_v41, %v1284_v33  ;;  %v1317_v33 = vld [vmem:[%s13893_s1 + $0x1ba] sm:$0xff] }
 0x2ef   :  { %v12306_v41 = vpack.c.bf16 %v1317_v33, %v1316_v46  ;;  %v1328_v33 = vld [vmem:[%s13893_s1 + $0x212] sm:$0xff] }
 0x2f5   :  { %7789 = vmatmul.mubr.msk.bf16.gmra.mrb[40].mxu1 %vm288_vm1, %v12028_v38  ;;  %8505 = vmatmul.mubr.msk.bf16.gmra.mrb[92].mxu0 %vm288_vm1, %v11346_v42  ;;  %v1286_v42 = vld [vmem:[%s13893_s1 + $0xc2] sm:$0xff] }
 0x2f6   :  { %7792 = vmatprep.mubr.msk.bf16.mxu1 %vm10245_vm2, %v10244_v2  ;;  %8508 = vmatprep.mubr.msk.bf16.mxu0 %vm10245_vm2, %v10244_v2  ;;  %v12060_v45 = vpack.c.bf16 %v1287_v43, %v1286_v42  ;;  %v1318_v43 = vld [vmem:[%s13893_s1 + $0x1c2] sm:$0xff] }
 0x2fd   :  { %7793 = vmatmul.mubr.msk.bf16.gmra.mrb[44].mxu1 %vm288_vm1, %v12044_v52  ;;  %8509 = vmatmul.mubr.msk.bf16.gmra.mrb[96].mxu0 %vm288_vm1, %v11367_v50  ;;  %v1288_v50 = vld [vmem:[%s13893_s1 + $0xd2] sm:$0xff] }
 0x2fe   :  { %7796 = vmatprep.mubr.msk.bf16.mxu1 %vm10245_vm2, %v10244_v2  ;;  %8512 = vmatprep.mubr.msk.bf16.mxu0 %vm10245_vm2, %v10244_v2  ;;  %v12076_v49 = vpack.c.bf16 %v1289_v58, %v1288_v50  ;;  %v1319_v50 = vld [vmem:[%s13893_s1 + $0x1ca] sm:$0xff] }
 0x2ff   :  { %v4717_v58 = vld [vmem:[%s13893_s1 + $0x25] sm:$0xff] }
 0x305   :  { %7797 = vmatmul.mubr.msk.bf16.gmra.mrb[48].mxu1 %vm288_vm1, %v12060_v45  ;;  %8513 = vmatmul.mubr.msk.bf16.gmra.mrb[100].mxu0 %vm288_vm1, %v11388_v59  ;;  %v1290_v59 = vld [vmem:[%s13893_s1 + $0xe2] sm:$0xff] }
 0x306   :  { %7800 = vmatprep.mubr.msk.bf16.mxu1 %vm10245_vm2, %v10244_v2  ;;  %8516 = vmatprep.mubr.msk.bf16.mxu0 %vm10245_vm2, %v10244_v2  ;;  %v12092_v0 = vpack.c.bf16 %v1291_v51, %v1290_v59  ;;  %v4718_v59 = vld [vmem:[%s13893_s1 + $0x2d] sm:$0xff]  ;;  %v6929_v51 = vld [vmem:[%s13894_s2 + $0x20] sm:$0xf] }
 0x30d   :  { %7801 = vmatmul.mubr.msk.bf16.gmra.mrb[52].mxu1 %vm288_vm1, %v12076_v49  ;;  %8517 = vmatmul.mubr.msk.bf16.gmra.mrb[104].mxu0 %vm288_vm1, %v11409_v6  ;;  %v1292_v6 = vld [vmem:[%s13893_s1 + $0xf2] sm:$0xff] }
 0x30e   :  { %7804 = vmatprep.mubr.msk.bf16.mxu1 %vm10245_vm2, %v10244_v2  ;;  %8520 = vmatprep.mubr.msk.bf16.mxu0 %vm10245_vm2, %v10244_v2  ;;  %v12108_v8 = vpack.c.bf16 %v1293_v53, %v1292_v6  ;;  %v12330_v6 = vpack.c.bf16 %v1319_v50, %v1318_v43  ;;  %v4798_v53 = vpack.c.bf16 %v4718_v59, %v4717_v58  ;;  %v4728_v43 = vld [vmem:[%s13893_s1 + $0x7d] sm:$0xff] }
 0x30f   :  { %v1330_v59 = vld [vmem:[%s13893_s1 + $0x222] sm:$0xff] }
 0x315   :  { %7805 = vmatmul.mubr.msk.bf16.gmra.mrb[56].mxu1 %vm288_vm1, %v12092_v0  ;;  %8521 = vmatmul.mubr.msk.bf16.gmra.mrb[108].mxu0 %vm288_vm1, %v11430_v18  ;;  %v1294_v18 = vld [vmem:[%s13893_s1 + $0x102] sm:$0xff] }
 0x316   :  { %7808 = vmatprep.mubr.msk.bf16.mxu1 %vm10245_vm2, %v10244_v2  ;;  %8524 = vmatprep.mubr.msk.bf16.mxu0 %vm10245_vm2, %v10244_v2  ;;  %v12124_v3 = vpack.c.bf16 %v1295_v55, %v1294_v18  ;;  %v5656_v18 = vsel %vm412_vm0, %v6929_v51, 0  ;;  %v1320_v55 = vld [vmem:[%s13893_s1 + $0x1d2] sm:$0xff]  ;;  %v1331_v51 = vld [vmem:[%s13893_s1 + $0x22a] sm:$0xff] }
 0x31d   :  { %7809 = vmatmul.mubr.msk.bf16.gmra.mrb[60].mxu1 %vm288_vm1, %v12108_v8  ;;  %8525 = vmatmul.mubr.msk.bf16.gmra.mrb[112].mxu0 %vm288_vm1, %v11451_v27  ;;  %v1296_v27 = vld [vmem:[%s13893_s1 + $0x112] sm:$0xff] }
 0x31e   :  { %7812 = vmatprep.mubr.msk.bf16.mxu1 %vm10245_vm2, %v10244_v2  ;;  %8528 = vmatprep.mubr.msk.bf16.mxu0 %vm10245_vm2, %v10244_v2  ;;  %v12140_v15 = vpack.c.bf16 %v1297_v60, %v1296_v27  ;;  %v1321_v27 = vld [vmem:[%s13893_s1 + $0x1da] sm:$0xff] }
 0x31f   :  { %v4719_v60 = vld [vmem:[%s13893_s1 + $0x35] sm:$0xff] }
 0x325   :  { %7813 = vmatmul.mubr.msk.bf16.gmra.mrb[64].mxu1 %vm288_vm1, %v12124_v3  ;;  %8529 = vmatmul.mubr.msk.bf16.gmra.mrb[116].mxu0 %vm288_vm1, %v11472_v37  ;;  %v1298_v37 = vld [vmem:[%s13893_s1 + $0x122] sm:$0xff] }
 0x326   :  { %7816 = vmatprep.mubr.msk.bf16.mxu1 %vm10245_vm2, %v10244_v2  ;;  %8532 = vmatprep.mubr.msk.bf16.mxu0 %vm10245_vm2, %v10244_v2  ;;  %v12156_v10 = vpack.c.bf16 %v1299_v62, %v1298_v37  ;;  %v4720_v37 = vld [vmem:[%s13893_s1 + $0x3d] sm:$0xff]  ;;  %v12352_v62 = vpack.c.bf16 %v1321_v27, %v1320_v55  ;;  %v12457_v55 = vpack.c.bf16 %v1331_v51, %v1330_v59  ;;  %v1340_v51 = vld [vmem:[%s13893_s1 + $0x272] sm:$0xff] }
 0x32d   :  { %7817 = vmatmul.mubr.msk.bf16.gmra.mrb[68].mxu1 %vm288_vm1, %v12140_v15  ;;  %8533 = vmatmul.mubr.msk.bf16.gmra.mrb[120].mxu0 %vm288_vm1, %v11493_v48  ;;  %v1300_v48 = vld [vmem:[%s13893_s1 + $0x132] sm:$0xff] }
 0x32e   :  { %7820 = vmatprep.mubr.msk.bf16.mxu1 %vm10245_vm2, %v10244_v2  ;;  %8536 = vmatprep.mubr.msk.bf16.mxu0 %vm10245_vm2, %v10244_v2  ;;  %v12172_v1 = vpack.c.bf16 %v1301_v25, %v1300_v48  ;;  %v4799_v48 = vpack.c.bf16 %v4720_v37, %v4719_v60  ;;  %v1322_v25 = vld [vmem:[%s13893_s1 + $0x1e2] sm:$0xff]  ;;  %v1332_v60 = vld [vmem:[%s13893_s1 + $0x232] sm:$0xff]  ;;  %v1333_v37 = vld [vmem:[%s13893_s1 + $0x23a] sm:$0xff] }
 0x335   :  { %7821 = vmatmul.mubr.msk.bf16.gmra.mrb[72].mxu1 %vm288_vm1, %v12156_v10  ;;  %8537 = vmatmul.mubr.msk.bf16.gmra.mrb[124].mxu0 %vm288_vm1, %v11514_v57  ;;  %v1302_v57 = vld [vmem:[%s13893_s1 + $0x142] sm:$0xff] }
 0x336   :  { %7824 = vmatprep.mubr.msk.bf16.mxu1 %vm10245_vm2, %v10244_v2  ;;  %8540 = vmatprep.mubr.msk.bf16.mxu0 %vm10245_vm2, %v10244_v2  ;;  %v12188_v5 = vpack.c.bf16 %v1303_v32, %v1302_v57  ;;  %v1323_v57 = vld [vmem:[%s13893_s1 + $0x1ea] sm:$0xff] }
 0x337   :  { %v4721_v32 = vld [vmem:[%s13893_s1 + $0x45] sm:$0xff] }
 0x33d   :  { %7825 = vmatmul.mubr.msk.bf16.gmra.mrb[76].mxu1 %vm288_vm1, %v12172_v1  ;;  %8541 = vmatmul.mubr.msk.bf16.gmra.mrb[128].mxu0 %vm288_vm1, %v11535_v9  ;;  %v1304_v9 = vld [vmem:[%s13893_s1 + $0x152] sm:$0xff] }
 0x33e   :  { %7828 = vmatprep.mubr.msk.bf16.mxu1 %vm10245_vm2, %v10244_v2  ;;  %8544 = vmatprep.mubr.msk.bf16.mxu0 %vm10245_vm2, %v10244_v2  ;;  %v12204_v22 = vpack.c.bf16 %v1305_v39, %v1304_v9  ;;  %v4722_v9 = vld [vmem:[%s13893_s1 + $0x4d] sm:$0xff]  ;;  %v12373_v39 = vpack.c.bf16 %v1323_v57, %v1322_v25  ;;  %v4732_v25 = vld [vmem:[%s13893_s1 + $0x9d] sm:$0xff]  ;;  %v12478_v57 = vpack.c.bf16 %v1333_v37, %v1332_v60 }
 0x345   :  { %7829 = vmatmul.mubr.msk.bf16.gmra.mrb[80].mxu1 %vm288_vm1, %v12188_v5  ;;  %8545 = vmatmul.mubr.msk.bf16.gmra.mrb[132].mxu0 %vm288_vm1, %v11556_v20  ;;  %v1306_v20 = vld [vmem:[%s13893_s1 + $0x162] sm:$0xff] }
 0x346   :  { %7832 = vmatprep.mubr.msk.bf16.mxu1 %vm10245_vm2, %v10244_v2  ;;  %8548 = vmatprep.mubr.msk.bf16.mxu0 %vm10245_vm2, %v10244_v2  ;;  %v12220_v14 = vpack.c.bf16 %v1307_v47, %v1306_v20  ;;  %v4800_v20 = vpack.c.bf16 %v4722_v9, %v4721_v32  ;;  %v1324_v47 = vld [vmem:[%s13893_s1 + $0x1f2] sm:$0xff]  ;;  %v1334_v9 = vld [vmem:[%s13893_s1 + $0x242] sm:$0xff] }
 0x34d   :  { %7833 = vmatmul.mubr.msk.bf16.gmra.mrb[84].mxu1 %vm288_vm1, %v12204_v22  ;;  %8549 = vmatmul.mubr.msk.bf16.gmra.mrb[136].mxu0 %vm288_vm1, %v11577_v31  ;;  %v1308_v31 = vld [vmem:[%s13893_s1 + $0x172] sm:$0xff] }
 0x34e   :  { %7836 = vmatprep.mubr.msk.bf16.mxu1 %vm10245_vm2, %v10244_v2  ;;  %8552 = vmatprep.mubr.msk.bf16.mxu0 %vm10245_vm2, %v10244_v2  ;;  %v12236_v19 = vpack.c.bf16 %v1309_v54, %v1308_v31  ;;  %v1325_v31 = vld [vmem:[%s13893_s1 + $0x1fa] sm:$0xff] }
 0x34f   :  { %v4723_v54 = vld [vmem:[%s13893_s1 + $0x55] sm:$0xff] }
 0x355   :  { %7837 = vmatmul.mubr.msk.bf16.gmra.mrb[88].mxu1 %vm288_vm1, %v12220_v14  ;;  %8553 = vmatmul.mubr.msk.bf16.gmra.mrb[140].mxu0 %vm288_vm1, %v11598_v44  ;;  %v1310_v44 = vld [vmem:[%s13893_s1 + $0x182] sm:$0xff] }
 0x356   :  { %7840 = vmatprep.mubr.msk.bf16.mxu1 %vm10245_vm2, %v10244_v2  ;;  %8556 = vmatprep.mubr.msk.bf16.mxu0 %vm10245_vm2, %v10244_v2  ;;  %v12252_v34 = vpack.c.bf16 %v1311_v61, %v1310_v44  ;;  %v4724_v44 = vld [vmem:[%s13893_s1 + $0x5d] sm:$0xff]  ;;  %v12394_v61 = vpack.c.bf16 %v1325_v31, %v1324_v47  ;;  %v4733_v47 = vld [vmem:[%s13893_s1 + $0xa5] sm:$0xff]  ;;  %v4734_v31 = vld [vmem:[%s13893_s1 + $0xad] sm:$0xff] }
 0x35d   :  { %7841 = vmatmul.mubr.msk.bf16.gmra.mrb[92].mxu1 %vm288_vm1, %v12236_v19  ;;  %8557 = vmatmul.mubr.msk.bf16.gmra.mrb[144].mxu0 %vm288_vm1, %v11619_v56  ;;  %v1312_v56 = vld [vmem:[%s13893_s1 + $0x192] sm:$0xff] }
 0x35e   :  { %7844 = vmatprep.mubr.msk.bf16.mxu1 %vm10245_vm2, %v10244_v2  ;;  %8560 = vmatprep.mubr.msk.bf16.mxu0 %vm10245_vm2, %v10244_v2  ;;  %v12268_v29 = vpack.c.bf16 %v1313_v7, %v1312_v56  ;;  %v4801_v56 = vpack.c.bf16 %v4724_v44, %v4723_v54  ;;  %v1326_v7 = vld [vmem:[%s13893_s1 + $0x202] sm:$0xff]  ;;  %v4806_v44 = vpack.c.bf16 %v4734_v31, %v4733_v47  ;;  %v4743_v47 = vld [vmem:[%s13893_s1 + $0xf5] sm:$0xff] }
 0x35f   :  { %v4744_v31 = vld [vmem:[%s13893_s1 + $0xfd] sm:$0xff] }
 0x365   :  { %7845 = vmatmul.mubr.msk.bf16.gmra.mrb[96].mxu1 %vm288_vm1, %v12252_v34  ;;  %8561 = vmatmul.mubr.msk.bf16.gmra.mrb[148].mxu0 %vm288_vm1, %v11640_v11  ;;  %v1314_v11 = vld [vmem:[%s13893_s1 + $0x1a2] sm:$0xff] }
 0x366   :  { %7848 = vmatprep.mubr.msk.bf16.mxu1 %vm10245_vm2, %v10244_v2  ;;  %8564 = vmatprep.mubr.msk.bf16.mxu0 %vm10245_vm2, %v10244_v2  ;;  %v12287_v24 = vpack.c.bf16 %v1315_v17, %v1314_v11  ;;  %v1327_v11 = vld [vmem:[%s13893_s1 + $0x20a] sm:$0xff] }
 0x367   :  { %v4725_v17 = vld [vmem:[%s13893_s1 + $0x65] sm:$0xff] }
 0x36d   :  { %7849 = vmatmul.mubr.msk.bf16.gmra.mrb[100].mxu1 %vm288_vm1, %v12268_v29  ;;  %8565 = vmatmul.mubr.msk.bf16.gmra.mrb[152].mxu0 %vm288_vm1, %v11661_v23  ;;  %v4146_v23 = vpack.c.bf16 %v4105_v35, %v11679_v30  ;;  %v4106_v30 = vld [vmem:[%s13893_s1 + $0x2a4] sm:$0xff]  ;;  %v4726_v35 = vld [vmem:[%s13893_s1 + $0x6d] sm:$0xff] }
 0x36e   :  { %7852 = vmatprep.mubr.msk.bf16.mxu1 %vm10245_vm2, %v10244_v2  ;;  %8568 = vmatprep.mubr.msk.bf16.mxu0 %vm10245_vm2, %v10244_v2  ;;  %v4147_v42 = vpack.c.bf16 %v4106_v30, %v4106_v30  ;;  %v4802_v46 = vpack.c.bf16 %v4726_v35, %v4725_v17  ;;  %v1329_v30 = vld [vmem:[%s13893_s1 + $0x21a] sm:$0xff] }
 0x36f   :  { %v12436_v50 = vpack.c.bf16 %v1329_v30, %v1328_v33  ;;  %v4736_v17 = vld [vmem:[%s13893_s1 + $0xbd] sm:$0xff]  ;;  %v1339_v30 = vld [vmem:[%s13893_s1 + $0x26a] sm:$0xff] }
 0x370   :  { %v1338_v33 = vld [vmem:[%s13893_s1 + $0x262] sm:$0xff] }
 0x375   :  { %7853 = vmatmul.mubr.msk.bf16.gmra.mrb[104].mxu1 %vm288_vm1, %v12287_v24  ;;  %8569 = vmatmul.mubr.msk.bf16.gmra.mrb[156].mxu0 %vm288_vm1, %v4146_v23  ;;  %v12415_v23 = vpack.c.bf16 %v1327_v11, %v1326_v7  ;;  %v1337_v7 = vld [vmem:[%s13893_s1 + $0x25a] sm:$0xff] }
 0x376   :  { %7856 = vmatprep.mubr.msk.bf16.mxu1 %vm10245_vm2, %v10244_v2  ;;  %8572 = vmatprep.mubr.msk.bf16.mxu0 %vm10245_vm2, %v10244_v2  ;;  %v4735_v11 = vld [vmem:[%s13893_s1 + $0xb5] sm:$0xff] }
 0x37d   :  { %7857 = vmatmul.mubr.msk.bf16.gmra.mrb[108].mxu1 %vm288_vm1, %v12306_v41  ;;  %8573 = vmatmul.mubr.msk.bf16.gmra.mrb[160].mxu0 %vm288_vm1, %v4147_v42  ;;  %v4727_v42 = vld [vmem:[%s13893_s1 + $0x75] sm:$0xff] }
 0x37e   :  { %7860 = vmatprep.mubr.msk.bf16.mxu1 %vm10245_vm2, %v10244_v2  ;;  %8578 = vmatprep.mubr.msk.bf16.mxu0 %vm10245_vm2, %v10244_v2  ;;  %v4803_v58 = vpack.c.bf16 %v4728_v43, %v4727_v42  ;;  %v4737_v42 = vld [vmem:[%s13893_s1 + $0xc5] sm:$0xff]  ;;  %v4738_v43 = vld [vmem:[%s13893_s1 + $0xcd] sm:$0xff] }
 0x37f   :  { %v4808_v59 = vpack.c.bf16 %v4738_v43, %v4737_v42  ;;  %v4754_v43 = vld [vmem:[%s13893_s1 + $0x14d] sm:$0xff] }
 0x385   :  { %7861 = vmatmul.mubr.msk.bf16.gmra.mrb[112].mxu1 %vm288_vm1, %v12330_v6  ;;  %8579 = vmatmul.mubr.msk.bf16.vlgmr.msra.gmra.mrb[0].mxu0 %vm288_vm1, %v4798_v53  ;;  %v4729_v53 = vld [vmem:[%s13893_s1 + $0x85] sm:$0xff] }
 0x386   :  { %8743 = vmatpush3.bf16.msra.mxu0 %v5656_v18  ;;  %7864 = vmatprep.mubr.msk.bf16.mxu1 %vm10245_vm2, %v10244_v2  ;;  %v4730_v18 = vld [vmem:[%s13893_s1 + $0x8d] sm:$0xff] }
 0x387   :  { %8582 = vmatprep.mubr.msk.bf16.mxu0 %vm10245_vm2, %v10244_v2  ;;  %v4804_v27 = vpack.c.bf16 %v4730_v18, %v4729_v53  ;;  %v1341_v53 = vld [vmem:[%s13893_s1 + $0x27a] sm:$0xff] }
 0x388   :  { %v4739_v18 = vld [vmem:[%s13893_s1 + $0xd5] sm:$0xff]  ;;  %v12562_v60 = vpack.c.bf16 %v1341_v53, %v1340_v51  ;;  %v4756_v51 = vld [vmem:[%s13893_s1 + $0x15d] sm:$0xff] }
 0x38d   :  { %7865 = vmatmul.mubr.msk.bf16.gmra.mrb[116].mxu1 %vm288_vm1, %v12352_v62  ;;  %8583 = vmatmul.mubr.msk.bf16.gmra.mrb[4].mxu0 %vm288_vm1, %v4799_v48  ;;  %v4731_v48 = vld [vmem:[%s13893_s1 + $0x95] sm:$0xff] }
 0x38e   :  { %7868 = vmatprep.mubr.msk.bf16.mxu1 %vm10245_vm2, %v10244_v2  ;;  %8586 = vmatprep.mubr.msk.bf16.mxu0 %vm10245_vm2, %v10244_v2  ;;  %v4805_v32 = vpack.c.bf16 %v4732_v25, %v4731_v48  ;;  %v12574_v48 = vld [vmem:[%s13893_s1 + $0x282] sm:$0xff] }
 0x38f   :  { %v4741_v25 = vld [vmem:[%s13893_s1 + $0xe5] sm:$0xff] }
 0x395   :  { %7869 = vmatmul.mubr.msk.bf16.gmra.mrb[120].mxu1 %vm288_vm1, %v12373_v39  ;;  %8587 = vmatmul.mubr.msk.bf16.gmra.mrb[8].mxu0 %vm288_vm1, %v4800_v20  ;;  %v1335_v20 = vld [vmem:[%s13893_s1 + $0x24a] sm:$0xff] }
 0x396   :  { %7872 = vmatprep.mubr.msk.bf16.mxu1 %vm10245_vm2, %v10244_v2  ;;  %8590 = vmatprep.mubr.msk.bf16.mxu0 %vm10245_vm2, %v10244_v2  ;;  %v12499_v54 = vpack.c.bf16 %v1335_v20, %v1334_v9  ;;  %v1383_v9 = vpack.c.bf16 %v12574_v48, %v12574_v48 }
 0x39d   :  { %7873 = vmatmul.mubr.msk.bf16.gmra.mrb[124].mxu1 %vm288_vm1, %v12394_v61  ;;  %8591 = vmatmul.mubr.msk.bf16.gmra.mrb[12].mxu0 %vm288_vm1, %v4801_v56  ;;  %v1336_v56 = vld [vmem:[%s13893_s1 + $0x252] sm:$0xff] }
 0x39e   :  { %7876 = vmatprep.mubr.msk.bf16.mxu1 %vm10245_vm2, %v10244_v2  ;;  %8594 = vmatprep.mubr.msk.bf16.mxu0 %vm10245_vm2, %v10244_v2  ;;  %v12520_v35 = vpack.c.bf16 %v1337_v7, %v1336_v56  ;;  %v4745_v56 = vld [vmem:[%s13893_s1 + $0x105] sm:$0xff]  ;;  %v4746_v7 = vld [vmem:[%s13893_s1 + $0x10d] sm:$0xff] }
 0x3a5   :  { %7877 = vmatmul.mubr.msk.bf16.gmra.mrb[128].mxu1 %vm288_vm1, %v12415_v23  ;;  %8595 = vmatmul.mubr.msk.bf16.gmra.mrb[16].mxu0 %vm288_vm1, %v4802_v46  ;;  %v4807_v46 = vpack.c.bf16 %v4736_v17, %v4735_v11  ;;  %v4812_v11 = vpack.c.bf16 %v4746_v7, %v4745_v56  ;;  %v4768_v56 = vld [vmem:[%s13893_s1 + $0x1bd] sm:$0xff] }
 0x3a6   :  { %7880 = vmatprep.mubr.msk.bf16.mxu1 %vm10245_vm2, %v10244_v2  ;;  %8598 = vmatprep.mubr.msk.bf16.mxu0 %vm10245_vm2, %v10244_v2 }
 0x3ad   :  { %7881 = vmatmul.mubr.msk.bf16.gmra.mrb[132].mxu1 %vm288_vm1, %v12436_v50  ;;  %8599 = vmatmul.mubr.msk.bf16.gmra.mrb[20].mxu0 %vm288_vm1, %v4803_v58  ;;  %v12541_v58 = vpack.c.bf16 %v1339_v30, %v1338_v33  ;;  %v4752_v30 = vld [vmem:[%s13893_s1 + $0x13d] sm:$0xff] }
 0x3ae   :  { %7884 = vmatprep.mubr.msk.bf16.mxu1 %vm10245_vm2, %v10244_v2  ;;  %8602 = vmatprep.mubr.msk.bf16.mxu0 %vm10245_vm2, %v10244_v2 }
 0x3b5   :  { %7885 = vmatmul.mubr.msk.bf16.gmra.mrb[136].mxu1 %vm288_vm1, %v12457_v55  ;;  %8603 = vmatmul.mubr.msk.bf16.gmra.mrb[24].mxu0 %vm288_vm1, %v4804_v27  ;;  %v4740_v27 = vld [vmem:[%s13893_s1 + $0xdd] sm:$0xff] }
 0x3b6   :  { %7888 = vmatprep.mubr.msk.bf16.mxu1 %vm10245_vm2, %v10244_v2  ;;  %8606 = vmatprep.mubr.msk.bf16.mxu0 %vm10245_vm2, %v10244_v2  ;;  %v4809_v37 = vpack.c.bf16 %v4740_v27, %v4739_v18  ;;  %v4758_v18 = vld [vmem:[%s13893_s1 + $0x16d] sm:$0xff] }
 0x3bd   :  { %7889 = vmatmul.mubr.msk.bf16.gmra.mrb[140].mxu1 %vm288_vm1, %v12478_v57  ;;  %8607 = vmatmul.mubr.msk.bf16.gmra.mrb[28].mxu0 %vm288_vm1, %v4805_v32  ;;  %v4742_v32 = vld [vmem:[%s13893_s1 + $0xed] sm:$0xff] }
 0x3be   :  { %7892 = vmatprep.mubr.msk.bf16.mxu1 %vm10245_vm2, %v10244_v2  ;;  %8610 = vmatprep.mubr.msk.bf16.mxu0 %vm10245_vm2, %v10244_v2  ;;  %v4810_v20 = vpack.c.bf16 %v4742_v32, %v4741_v25  ;;  %v4762_v32 = vld [vmem:[%s13893_s1 + $0x18d] sm:$0xff] }
 0x3c5   :  { %7893 = vmatmul.mubr.msk.bf16.gmra.mrb[144].mxu1 %vm288_vm1, %v12499_v54  ;;  %8611 = vmatmul.mubr.msk.bf16.gmra.mrb[32].mxu0 %vm288_vm1, %v4806_v44  ;;  %v4811_v44 = vpack.c.bf16 %v4744_v31, %v4743_v47  ;;  %v4766_v31 = vld [vmem:[%s13893_s1 + $0x1ad] sm:$0xff] }
 0x3c6   :  { %7896 = vmatprep.mubr.msk.bf16.mxu1 %vm10245_vm2, %v10244_v2  ;;  %8614 = vmatprep.mubr.msk.bf16.mxu0 %vm10245_vm2, %v10244_v2 }
 0x3cd   :  { %7897 = vmatmul.mubr.msk.bf16.gmra.mrb[148].mxu1 %vm288_vm1, %v12520_v35  ;;  %8615 = vmatmul.mubr.msk.bf16.gmra.mrb[36].mxu0 %vm288_vm1, %v4807_v46  ;;  %v4750_v46 = vld [vmem:[%s13893_s1 + $0x12d] sm:$0xff] }
 0x3ce   :  { %7900 = vmatprep.mubr.msk.bf16.mxu1 %vm10245_vm2, %v10244_v2  ;;  %8618 = vmatprep.mubr.msk.bf16.mxu0 %vm10245_vm2, %v10244_v2 }
 0x3d5   :  { %7901 = vmatmul.mubr.msk.bf16.gmra.mrb[152].mxu1 %vm288_vm1, %v12541_v58  ;;  %8619 = vmatmul.mubr.msk.bf16.gmra.mrb[40].mxu0 %vm288_vm1, %v4808_v59 }
 0x3d6   :  { %7904 = vmatprep.mubr.msk.bf16.mxu1 %vm10245_vm2, %v10244_v2  ;;  %8622 = vmatprep.mubr.msk.bf16.mxu0 %vm10245_vm2, %v10244_v2 }
 0x3dd   :  { %7905 = vmatmul.mubr.msk.bf16.gmra.mrb[156].mxu1 %vm288_vm1, %v12562_v60  ;;  %8623 = vmatmul.mubr.msk.bf16.gmra.mrb[44].mxu0 %vm288_vm1, %v4809_v37  ;;  %v4760_v37 = vld [vmem:[%s13893_s1 + $0x17d] sm:$0xff] }
 0x3de   :  { %7908 = vmatprep.mubr.msk.bf16.mxu1 %vm10245_vm2, %v10244_v2  ;;  %8626 = vmatprep.mubr.msk.bf16.mxu0 %vm10245_vm2, %v10244_v2 }
 0x3e5   :  { %7909 = vmatmul.mubr.msk.bf16.gmra.mrb[160].mxu1 %vm288_vm1, %v1383_v9  ;;  %8627 = vmatmul.mubr.msk.bf16.gmra.mrb[48].mxu0 %vm288_vm1, %v4810_v20  ;;  %v4764_v20 = vld [vmem:[%s13893_s1 + $0x19d] sm:$0xff] }
 0x3e6   :  { %7914 = vmatprep.mubr.msk.bf16.mxu1 %vm10245_vm2, %v10244_v2  ;;  %8630 = vmatprep.mubr.msk.bf16.mxu0 %vm10245_vm2, %v10244_v2 }
 0x3ed   :  { %7915 = vmatmul.mubr.msk.bf16.vlgmr.msra.gmra.mrb[0].mxu1 %vm288_vm1, %v11884_v63  ;;  %8631 = vmatmul.mubr.msk.bf16.gmra.mrb[52].mxu0 %vm288_vm1, %v4811_v44  ;;  %v4747_v63 = vld [vmem:[%s13893_s1 + $0x115] sm:$0xff] }
 0x3ee   :  { %7918 = vmatprep.mubr.msk.bf16.mxu1 %vm10245_vm2, %v10244_v2  ;;  %8634 = vmatprep.mubr.msk.bf16.mxu0 %vm10245_vm2, %v10244_v2 }
 0x3ef   :  { %8929 = vmatpush3.bf16.msra.mxu1 %v10303_v4  ;;  %v4748_v4 = vld [vmem:[%s13893_s1 + $0x11d] sm:$0xff] }
 0x3f0   :  { %v4813_v17 = vpack.c.bf16 %v4748_v4, %v4747_v63  ;;  %v4772_v4 = vld [vmem:[%s13893_s1 + $0x1dd] sm:$0xff] }
 0x3f5   :  { %7919 = vmatmul.mubr.msk.bf16.gmra.mrb[4].mxu1 %vm288_vm1, %v11900_v16  ;;  %8635 = vmatmul.mubr.msk.bf16.gmra.mrb[56].mxu0 %vm288_vm1, %v4812_v11  ;;  %v4749_v16 = vld [vmem:[%s13893_s1 + $0x125] sm:$0xff]  ;;  %v4770_v11 = vld [vmem:[%s13893_s1 + $0x1cd] sm:$0xff] }
 0x3f6   :  { %7922 = vmatprep.mubr.msk.bf16.mxu1 %vm10245_vm2, %v10244_v2  ;;  %8638 = vmatprep.mubr.msk.bf16.mxu0 %vm10245_vm2, %v10244_v2  ;;  %v4814_v33 = vpack.c.bf16 %v4750_v46, %v4749_v16  ;;  %v4774_v16 = vld [vmem:[%s13893_s1 + $0x1ed] sm:$0xff] }
 0x3fd   :  { %7923 = vmatmul.mubr.msk.bf16.gmra.mrb[8].mxu1 %vm288_vm1, %v11916_v12  ;;  %8639 = vmatmul.mubr.msk.bf16.gmra.mrb[60].mxu0 %vm288_vm1, %v4813_v17  ;;  %v4751_v12 = vld [vmem:[%s13893_s1 + $0x135] sm:$0xff] }
 0x3fe   :  { %7926 = vmatprep.mubr.msk.bf16.mxu1 %vm10245_vm2, %v10244_v2  ;;  %8642 = vmatprep.mubr.msk.bf16.mxu0 %vm10245_vm2, %v10244_v2  ;;  %v4815_v42 = vpack.c.bf16 %v4752_v30, %v4751_v12  ;;  %v4778_v30 = vld [vmem:[%s13893_s1 + $0x20d] sm:$0xff] }
 0x405   :  { %7927 = vmatmul.mubr.msk.bf16.gmra.mrb[12].mxu1 %vm288_vm1, %v11932_v13  ;;  %8643 = vmatmul.mubr.msk.bf16.gmra.mrb[64].mxu0 %vm288_vm1, %v4814_v33  ;;  %v4753_v13 = vld [vmem:[%s13893_s1 + $0x145] sm:$0xff]  ;;  %v4776_v33 = vld [vmem:[%s13893_s1 + $0x1fd] sm:$0xff] }
 0x406   :  { %7930 = vmatprep.mubr.msk.bf16.mxu1 %vm10245_vm2, %v10244_v2  ;;  %8646 = vmatprep.mubr.msk.bf16.mxu0 %vm10245_vm2, %v10244_v2  ;;  %v4816_v59 = vpack.c.bf16 %v4754_v43, %v4753_v13  ;;  %v4780_v13 = vld [vmem:[%s13893_s1 + $0x21d] sm:$0xff] }
 0x40d   :  { %7931 = vmatmul.mubr.msk.bf16.gmra.mrb[16].mxu1 %vm288_vm1, %v11948_v28  ;;  %8647 = vmatmul.mubr.msk.bf16.gmra.mrb[68].mxu0 %vm288_vm1, %v4815_v42  ;;  %v4755_v28 = vld [vmem:[%s13893_s1 + $0x155] sm:$0xff] }
 0x40e   :  { %7934 = vmatprep.mubr.msk.bf16.mxu1 %vm10245_vm2, %v10244_v2  ;;  %8650 = vmatprep.mubr.msk.bf16.mxu0 %vm10245_vm2, %v10244_v2  ;;  %v4817_v53 = vpack.c.bf16 %v4756_v51, %v4755_v28  ;;  %v4784_v51 = vld [vmem:[%s13893_s1 + $0x23d] sm:$0xff] }
 0x415   :  { %7935 = vmatmul.mubr.msk.bf16.gmra.mrb[20].mxu1 %vm288_vm1, %v11964_v21  ;;  %8651 = vmatmul.mubr.msk.bf16.gmra.mrb[72].mxu0 %vm288_vm1, %v4816_v59  ;;  %v4757_v21 = vld [vmem:[%s13893_s1 + $0x165] sm:$0xff]  ;;  %v4782_v59 = vld [vmem:[%s13893_s1 + $0x22d] sm:$0xff] }
 0x416   :  { %7938 = vmatprep.mubr.msk.bf16.mxu1 %vm10245_vm2, %v10244_v2  ;;  %8654 = vmatprep.mubr.msk.bf16.mxu0 %vm10245_vm2, %v10244_v2  ;;  %v4818_v27 = vpack.c.bf16 %v4758_v18, %v4757_v21  ;;  %v4786_v21 = vld [vmem:[%s13893_s1 + $0x24d] sm:$0xff] }
 0x41d   :  { %7939 = vmatmul.mubr.msk.bf16.gmra.mrb[24].mxu1 %vm288_vm1, %v11980_v26  ;;  %8655 = vmatmul.mubr.msk.bf16.gmra.mrb[76].mxu0 %vm288_vm1, %v4817_v53  ;;  %v4759_v26 = vld [vmem:[%s13893_s1 + $0x175] sm:$0xff] }
 0x41e   :  { %7942 = vmatprep.mubr.msk.bf16.mxu1 %vm10245_vm2, %v10244_v2  ;;  %8658 = vmatprep.mubr.msk.bf16.mxu0 %vm10245_vm2, %v10244_v2  ;;  %v4819_v25 = vpack.c.bf16 %v4760_v37, %v4759_v26  ;;  %v4790_v37 = vld [vmem:[%s13893_s1 + $0x26d] sm:$0xff] }
 0x425   :  { %7943 = vmatmul.mubr.msk.bf16.gmra.mrb[28].mxu1 %vm288_vm1, %v11996_v40  ;;  %8659 = vmatmul.mubr.msk.bf16.gmra.mrb[80].mxu0 %vm288_vm1, %v4818_v27  ;;  %v4761_v40 = vld [vmem:[%s13893_s1 + $0x185] sm:$0xff]  ;;  %v4788_v27 = vld [vmem:[%s13893_s1 + $0x25d] sm:$0xff] }
 0x426   :  { %7946 = vmatprep.mubr.msk.bf16.mxu1 %vm10245_vm2, %v10244_v2  ;;  %8662 = vmatprep.mubr.msk.bf16.mxu0 %vm10245_vm2, %v10244_v2  ;;  %v4820_v9 = vpack.c.bf16 %v4762_v32, %v4761_v40  ;;  %v4792_v40 = vld [vmem:[%s13893_s1 + $0x27d] sm:$0xff] }
 0x42d   :  { %7947 = vmatmul.mubr.msk.bf16.gmra.mrb[32].mxu1 %vm288_vm1, %v12012_v36  ;;  %8663 = vmatmul.mubr.msk.bf16.gmra.mrb[84].mxu0 %vm288_vm1, %v4819_v25  ;;  %v4763_v36 = vld [vmem:[%s13893_s1 + $0x195] sm:$0xff] }
 0x42e   :  { %7950 = vmatprep.mubr.msk.bf16.mxu1 %vm10245_vm2, %v10244_v2  ;;  %8666 = vmatprep.mubr.msk.bf16.mxu0 %vm10245_vm2, %v10244_v2  ;;  %v4821_v47 = vpack.c.bf16 %v4764_v20, %v4763_v36  ;;  %v4796_v20 = vld [vmem:[%s13893_s1 + $0x29d] sm:$0xff] }
 0x435   :  { %7951 = vmatmul.mubr.msk.bf16.gmra.mrb[36].mxu1 %vm288_vm1, %v12028_v38  ;;  %8667 = vmatmul.mubr.msk.bf16.gmra.mrb[88].mxu0 %vm288_vm1, %v4820_v9  ;;  %v4765_v38 = vld [vmem:[%s13893_s1 + $0x1a5] sm:$0xff]  ;;  %v4794_v9 = vld [vmem:[%s13893_s1 + $0x28d] sm:$0xff] }
 0x436   :  { %7954 = vmatprep.mubr.msk.bf16.mxu1 %vm10245_vm2, %v10244_v2  ;;  %8670 = vmatprep.mubr.msk.bf16.mxu0 %vm10245_vm2, %v10244_v2  ;;  %v4822_v44 = vpack.c.bf16 %v4766_v31, %v4765_v38 }
 0x43d   :  { %7955 = vmatmul.mubr.msk.bf16.gmra.mrb[40].mxu1 %vm288_vm1, %v12044_v52  ;;  %8671 = vmatmul.mubr.msk.bf16.gmra.mrb[92].mxu0 %vm288_vm1, %v4821_v47  ;;  %v4767_v52 = vld [vmem:[%s13893_s1 + $0x1b5] sm:$0xff] }
 0x43e   :  { %7958 = vmatprep.mubr.msk.bf16.mxu1 %vm10245_vm2, %v10244_v2  ;;  %8674 = vmatprep.mubr.msk.bf16.mxu0 %vm10245_vm2, %v10244_v2  ;;  %v4823_v7 = vpack.c.bf16 %v4768_v56, %v4767_v52 }
 0x445   :  { %7959 = vmatmul.mubr.msk.bf16.gmra.mrb[44].mxu1 %vm288_vm1, %v12060_v45  ;;  %8675 = vmatmul.mubr.msk.bf16.gmra.mrb[96].mxu0 %vm288_vm1, %v4822_v44  ;;  %v4769_v45 = vld [vmem:[%s13893_s1 + $0x1c5] sm:$0xff] }
 0x446   :  { %7962 = vmatprep.mubr.msk.bf16.mxu1 %vm10245_vm2, %v10244_v2  ;;  %8678 = vmatprep.mubr.msk.bf16.mxu0 %vm10245_vm2, %v10244_v2  ;;  %v4824_v63 = vpack.c.bf16 %v4770_v11, %v4769_v45 }
 0x44d   :  { %7963 = vmatmul.mubr.msk.bf16.gmra.mrb[48].mxu1 %vm288_vm1, %v12076_v49  ;;  %8679 = vmatmul.mubr.msk.bf16.gmra.mrb[100].mxu0 %vm288_vm1, %v4823_v7  ;;  %v4771_v49 = vld [vmem:[%s13893_s1 + $0x1d5] sm:$0xff] }
 0x44e   :  { %7966 = vmatprep.mubr.msk.bf16.mxu1 %vm10245_vm2, %v10244_v2  ;;  %8682 = vmatprep.mubr.msk.bf16.mxu0 %vm10245_vm2, %v10244_v2  ;;  %v4825_v17 = vpack.c.bf16 %v4772_v4, %v4771_v49  ;;  %v5409_v7 = vld [vmem:[%s13893_s1 + $0x2e] sm:$0xff]  ;;  %v5410_v4 = vld [vmem:[%s13893_s1 + $0x36] sm:$0xff] }
 0x455   :  { %7967 = vmatmul.mubr.msk.bf16.gmra.mrb[52].mxu1 %vm288_vm1, %v12092_v0  ;;  %8683 = vmatmul.mubr.msk.bf16.gmra.mrb[104].mxu0 %vm288_vm1, %v4824_v63  ;;  %v4773_v0 = vld [vmem:[%s13893_s1 + $0x1e5] sm:$0xff] }
 0x456   :  { %7970 = vmatprep.mubr.msk.bf16.mxu1 %vm10245_vm2, %v10244_v2  ;;  %8686 = vmatprep.mubr.msk.bf16.mxu0 %vm10245_vm2, %v10244_v2  ;;  %v4826_v46 = vpack.c.bf16 %v4774_v16, %v4773_v0 }
 0x45d   :  { %7971 = vmatmul.mubr.msk.bf16.gmra.mrb[56].mxu1 %vm288_vm1, %v12108_v8  ;;  %8687 = vmatmul.mubr.msk.bf16.gmra.mrb[108].mxu0 %vm288_vm1, %v4825_v17  ;;  %v4775_v8 = vld [vmem:[%s13893_s1 + $0x1f5] sm:$0xff]  ;;  %v5411_v17 = vld [vmem:[%s13893_s1 + $0x3e] sm:$0xff] }
 0x45e   :  { %7974 = vmatprep.mubr.msk.bf16.mxu1 %vm10245_vm2, %v10244_v2  ;;  %8690 = vmatprep.mubr.msk.bf16.mxu0 %vm10245_vm2, %v10244_v2  ;;  %v4827_v12 = vpack.c.bf16 %v4776_v33, %v4775_v8  ;;  %v5412_v33 = vld [vmem:[%s13893_s1 + $0x46] sm:$0xff] }
 0x465   :  { %7975 = vmatmul.mubr.msk.bf16.gmra.mrb[60].mxu1 %vm288_vm1, %v12124_v3  ;;  %8691 = vmatmul.mubr.msk.bf16.gmra.mrb[112].mxu0 %vm288_vm1, %v4826_v46  ;;  %v4777_v3 = vld [vmem:[%s13893_s1 + $0x205] sm:$0xff] }
 0x466   :  { %7978 = vmatprep.mubr.msk.bf16.mxu1 %vm10245_vm2, %v10244_v2  ;;  %8694 = vmatprep.mubr.msk.bf16.mxu0 %vm10245_vm2, %v10244_v2  ;;  %v4828_v42 = vpack.c.bf16 %v4778_v30, %v4777_v3 }
 0x46d   :  { %7979 = vmatmul.mubr.msk.bf16.gmra.mrb[64].mxu1 %vm288_vm1, %v12140_v15  ;;  %8695 = vmatmul.mubr.msk.bf16.gmra.mrb[116].mxu0 %vm288_vm1, %v4827_v12  ;;  %v4779_v15 = vld [vmem:[%s13893_s1 + $0x215] sm:$0xff] }
 0x46e   :  { %7982 = vmatprep.mubr.msk.bf16.mxu1 %vm10245_vm2, %v10244_v2  ;;  %8698 = vmatprep.mubr.msk.bf16.mxu0 %vm10245_vm2, %v10244_v2  ;;  %v4829_v43 = vpack.c.bf16 %v4780_v13, %v4779_v15  ;;  %v5413_v12 = vld [vmem:[%s13893_s1 + $0x4e] sm:$0xff]  ;;  %v5414_v13 = vld [vmem:[%s13893_s1 + $0x56] sm:$0xff] }
 0x475   :  { %7983 = vmatmul.mubr.msk.bf16.gmra.mrb[68].mxu1 %vm288_vm1, %v12156_v10  ;;  %8699 = vmatmul.mubr.msk.bf16.gmra.mrb[120].mxu0 %vm288_vm1, %v4828_v42  ;;  %v4781_v10 = vld [vmem:[%s13893_s1 + $0x225] sm:$0xff] }
 0x476   :  { %7986 = vmatprep.mubr.msk.bf16.mxu1 %vm10245_vm2, %v10244_v2  ;;  %8702 = vmatprep.mubr.msk.bf16.mxu0 %vm10245_vm2, %v10244_v2  ;;  %v4830_v28 = vpack.c.bf16 %v4782_v59, %v4781_v10 }
 0x47d   :  { %7987 = vmatmul.mubr.msk.bf16.gmra.mrb[72].mxu1 %vm288_vm1, %v12172_v1  ;;  %8703 = vmatmul.mubr.msk.bf16.gmra.mrb[124].mxu0 %vm288_vm1, %v4829_v43  ;;  %v4783_v1 = vld [vmem:[%s13893_s1 + $0x235] sm:$0xff]  ;;  %v5415_v43 = vld [vmem:[%s13893_s1 + $0x5e] sm:$0xff] }
 0x47e   :  { %7990 = vmatprep.mubr.msk.bf16.mxu1 %vm10245_vm2, %v10244_v2  ;;  %8706 = vmatprep.mubr.msk.bf16.mxu0 %vm10245_vm2, %v10244_v2  ;;  %v4831_v53 = vpack.c.bf16 %v4784_v51, %v4783_v1  ;;  %v5416_v51 = vld [vmem:[%s13893_s1 + $0x66] sm:$0xff] }
 0x485   :  { %7991 = vmatmul.mubr.msk.bf16.gmra.mrb[76].mxu1 %vm288_vm1, %v12188_v5  ;;  %8707 = vmatmul.mubr.msk.bf16.gmra.mrb[128].mxu0 %vm288_vm1, %v4830_v28  ;;  %v4785_v5 = vld [vmem:[%s13893_s1 + $0x245] sm:$0xff] }
 0x486   :  { %7994 = vmatprep.mubr.msk.bf16.mxu1 %vm10245_vm2, %v10244_v2  ;;  %8710 = vmatprep.mubr.msk.bf16.mxu0 %vm10245_vm2, %v10244_v2  ;;  %v4832_v18 = vpack.c.bf16 %v4786_v21, %v4785_v5 }
 0x48d   :  { %7995 = vmatmul.mubr.msk.bf16.gmra.mrb[80].mxu1 %vm288_vm1, %v12204_v22  ;;  %8711 = vmatmul.mubr.msk.bf16.gmra.mrb[132].mxu0 %vm288_vm1, %v4831_v53  ;;  %v4787_v22 = vld [vmem:[%s13893_s1 + $0x255] sm:$0xff] }
 0x48e   :  { %7998 = vmatprep.mubr.msk.bf16.mxu1 %vm10245_vm2, %v10244_v2  ;;  %8714 = vmatprep.mubr.msk.bf16.mxu0 %vm10245_vm2, %v10244_v2  ;;  %v4833_v26 = vpack.c.bf16 %v4788_v27, %v4787_v22  ;;  %v5417_v53 = vld [vmem:[%s13893_s1 + $0x6e] sm:$0xff]  ;;  %v5418_v27 = vld [vmem:[%s13893_s1 + $0x76] sm:$0xff] }
 0x495   :  { %7999 = vmatmul.mubr.msk.bf16.gmra.mrb[84].mxu1 %vm288_vm1, %v12220_v14  ;;  %8715 = vmatmul.mubr.msk.bf16.gmra.mrb[136].mxu0 %vm288_vm1, %v4832_v18  ;;  %v4789_v14 = vld [vmem:[%s13893_s1 + $0x265] sm:$0xff] }
 0x496   :  { %8002 = vmatprep.mubr.msk.bf16.mxu1 %vm10245_vm2, %v10244_v2  ;;  %8718 = vmatprep.mubr.msk.bf16.mxu0 %vm10245_vm2, %v10244_v2  ;;  %v4834_v25 = vpack.c.bf16 %v4790_v37, %v4789_v14 }
 0x49d   :  { %8003 = vmatmul.mubr.msk.bf16.gmra.mrb[88].mxu1 %vm288_vm1, %v12236_v19  ;;  %8719 = vmatmul.mubr.msk.bf16.gmra.mrb[140].mxu0 %vm288_vm1, %v4833_v26  ;;  %v4791_v19 = vld [vmem:[%s13893_s1 + $0x275] sm:$0xff]  ;;  %v5419_v26 = vld [vmem:[%s13893_s1 + $0x7e] sm:$0xff] }
 0x49e   :  { %8006 = vmatprep.mubr.msk.bf16.mxu1 %vm10245_vm2, %v10244_v2  ;;  %8722 = vmatprep.mubr.msk.bf16.mxu0 %vm10245_vm2, %v10244_v2  ;;  %v4835_v32 = vpack.c.bf16 %v4792_v40, %v4791_v19  ;;  %v5420_v40 = vld [vmem:[%s13893_s1 + $0x86] sm:$0xff] }
 0x4a5   :  { %8007 = vmatmul.mubr.msk.bf16.gmra.mrb[92].mxu1 %vm288_vm1, %v12252_v34  ;;  %8723 = vmatmul.mubr.msk.bf16.gmra.mrb[144].mxu0 %vm288_vm1, %v4834_v25  ;;  %v4793_v34 = vld [vmem:[%s13893_s1 + $0x285] sm:$0xff] }
 0x4a6   :  { %8010 = vmatprep.mubr.msk.bf16.mxu1 %vm10245_vm2, %v10244_v2  ;;  %8726 = vmatprep.mubr.msk.bf16.mxu0 %vm10245_vm2, %v10244_v2  ;;  %v4836_v36 = vpack.c.bf16 %v4794_v9, %v4793_v34 }
 0x4ad   :  { %8011 = vmatmul.mubr.msk.bf16.gmra.mrb[96].mxu1 %vm288_vm1, %v12268_v29  ;;  %8727 = vmatmul.mubr.msk.bf16.gmra.mrb[148].mxu0 %vm288_vm1, %v4835_v32  ;;  %v4795_v29 = vld [vmem:[%s13893_s1 + $0x295] sm:$0xff] }
 0x4ae   :  { %8014 = vmatprep.mubr.msk.bf16.mxu1 %vm10245_vm2, %v10244_v2  ;;  %8730 = vmatprep.mubr.msk.bf16.mxu0 %vm10245_vm2, %v10244_v2  ;;  %v4837_v47 = vpack.c.bf16 %v4796_v20, %v4795_v29  ;;  %v5421_v32 = vld [vmem:[%s13893_s1 + $0x8e] sm:$0xff]  ;;  %v5422_v20 = vld [vmem:[%s13893_s1 + $0x96] sm:$0xff] }
 0x4b5   :  { %8015 = vmatmul.mubr.msk.bf16.gmra.mrb[100].mxu1 %vm288_vm1, %v12287_v24  ;;  %8731 = vmatmul.mubr.msk.bf16.gmra.mrb[152].mxu0 %vm288_vm1, %v4836_v36  ;;  %v4797_v24 = vld [vmem:[%s13893_s1 + $0x2a5] sm:$0xff] }
 0x4b6   :  { %8018 = vmatprep.mubr.msk.bf16.mxu1 %vm10245_vm2, %v10244_v2  ;;  %8734 = vmatprep.mubr.msk.bf16.mxu0 %vm10245_vm2, %v10244_v2  ;;  %v4838_v44 = vpack.c.bf16 %v4797_v24, %v4797_v24 }
 0x4bd   :  { %8019 = vmatmul.mubr.msk.bf16.gmra.mrb[104].mxu1 %vm288_vm1, %v12306_v41  ;;  %8735 = vmatmul.mubr.msk.bf16.gmra.mrb[156].mxu0 %vm288_vm1, %v4837_v47  ;;  %v5408_v41 = vld [vmem:[%s13893_s1 + $0x26] sm:$0xff]  ;;  %v5423_v47 = vld [vmem:[%s13893_s1 + $0x9e] sm:$0xff] }
 0x4be   :  { %8022 = vmatprep.mubr.msk.bf16.mxu1 %vm10245_vm2, %v10244_v2  ;;  %8738 = vmatprep.mubr.msk.bf16.mxu0 %vm10245_vm2, %v10244_v2 }
 0x4c0   :  { %v12945_v38 = vpop.f32.mrb[0].mxu1 }
 0x4c1   :  { %v7916_v31 = vpop.f32.mrb[1].mxu1 }
 0x4c2   :  { %v12947_v52 = vpop.f32.mrb[2].mxu1 }
 0x4c3   :  { %v7917_v56 = vpop.f32.mrb[3].mxu1 }
 0x4c5   :  { %8023 = vmatmul.mubr.msk.bf16.gmra.mrb[108].mxu1 %vm288_vm1, %v12330_v6  ;;  %8739 = vmatmul.mubr.msk.bf16.gmra.mrb[160].mxu0 %vm288_vm1, %v4838_v44  ;;  %v5489_v6 = vpack.c.bf16 %v5409_v7, %v5408_v41  ;;  %v5424_v41 = vld [vmem:[%s13893_s1 + $0xa6] sm:$0xff]  ;;  %v5425_v7 = vld [vmem:[%s13893_s1 + $0xae] sm:$0xff] }
 0x4c6   :  { %8026 = vmatprep.mubr.msk.bf16.mxu1 %vm10245_vm2, %v10244_v2  ;;  %8744 = vmatprep.mubr.msk.bf16.mxu0 %vm10245_vm2, %v10244_v2 }
 0x4c8   :  { %v12962_v45 = vpop.f32.mrb[4].mxu1 }
 0x4c9   :  { %v7920_v11 = vpop.f32.mrb[5].mxu1 }
 0x4ca   :  { %v12964_v63 = vpop.f32.mrb[6].mxu1 }
 0x4cb   :  { %v7921_v49 = vpop.f32.mrb[7].mxu1 }
 0x4cd   :  { %8027 = vmatmul.mubr.msk.bf16.gmra.mrb[112].mxu1 %vm288_vm1, %v12352_v62  ;;  %8745 = vmatmul.mubr.msk.bf16.vlgmr.msra.gmra.mrb[0].mxu0 %vm288_vm1, %v5489_v6  ;;  %v5490_v62 = vpack.c.bf16 %v5411_v17, %v5410_v4  ;;  %v5426_v17 = vld [vmem:[%s13893_s1 + $0xb6] sm:$0xff] }
 0x4ce   :  { %8030 = vmatprep.mubr.msk.bf16.mxu1 %vm10245_vm2, %v10244_v2  ;;  %8748 = vmatprep.mubr.msk.bf16.mxu0 %vm10245_vm2, %v10244_v2 }
 0x4d0   :  { %v12979_v0 = vpop.f32.mrb[8].mxu1 }
 0x4d1   :  { %v7924_v16 = vpop.f32.mrb[9].mxu1 }
 0x4d2   :  { %v12981_v46 = vpop.f32.mrb[10].mxu1  ;;  %v5427_v16 = vld [vmem:[%s13893_s1 + $0xbe] sm:$0xff] }
 0x4d3   :  { %v7925_v8 = vpop.f32.mrb[11].mxu1 }
 0x4d5   :  { %8031 = vmatmul.mubr.msk.bf16.gmra.mrb[116].mxu1 %vm288_vm1, %v12373_v39  ;;  %8749 = vmatmul.mubr.msk.bf16.gmra.mrb[4].mxu0 %vm288_vm1, %v5490_v62  ;;  %v5491_v39 = vpack.c.bf16 %v5413_v12, %v5412_v33 }
 0x4d6   :  { %8034 = vmatprep.mubr.msk.bf16.mxu1 %vm10245_vm2, %v10244_v2  ;;  %8752 = vmatprep.mubr.msk.bf16.mxu0 %vm10245_vm2, %v10244_v2 }
 0x4d8   :  { %v12996_v3 = vpop.f32.mrb[12].mxu1 }
 0x4d9   :  { %v7928_v30 = vpop.f32.mrb[13].mxu1 }
 0x4da   :  { %v12998_v42 = vpop.f32.mrb[14].mxu1  ;;  %v5428_v30 = vld [vmem:[%s13893_s1 + $0xc6] sm:$0xff] }
 0x4db   :  { %v7929_v15 = vpop.f32.mrb[15].mxu1 }
 0x4dd   :  { %8035 = vmatmul.mubr.msk.bf16.gmra.mrb[120].mxu1 %vm288_vm1, %v12394_v61  ;;  %8753 = vmatmul.mubr.msk.bf16.gmra.mrb[8].mxu0 %vm288_vm1, %v5491_v39  ;;  %v5492_v61 = vpack.c.bf16 %v5415_v43, %v5414_v13  ;;  %v5429_v39 = vld [vmem:[%s13893_s1 + $0xce] sm:$0xff] }
 0x4de   :  { %8038 = vmatprep.mubr.msk.bf16.mxu1 %vm10245_vm2, %v10244_v2  ;;  %8756 = vmatprep.mubr.msk.bf16.mxu0 %vm10245_vm2, %v10244_v2 }
 0x4e0   :  { %v13013_v10 = vpop.f32.mrb[16].mxu1 }
 0x4e1   :  { %v7932_v59 = vpop.f32.mrb[17].mxu1 }
 0x4e2   :  { %v13015_v28 = vpop.f32.mrb[18].mxu1 }
 0x4e3   :  { %v7933_v1 = vpop.f32.mrb[19].mxu1 }
 0x4e4   :  { %v5430_v1 = vld [vmem:[%s13893_s1 + $0xd6] sm:$0xff] }
 0x4e5   :  { %8039 = vmatmul.mubr.msk.bf16.gmra.mrb[124].mxu1 %vm288_vm1, %v12415_v23  ;;  %8757 = vmatmul.mubr.msk.bf16.gmra.mrb[12].mxu0 %vm288_vm1, %v5492_v61  ;;  %v5493_v23 = vpack.c.bf16 %v5417_v53, %v5416_v51  ;;  %v2032_v61 = vld [vmem:[%s13893_s1 + $0x28a] sm:$0xff] }
 0x4e6   :  { %8042 = vmatprep.mubr.msk.bf16.mxu1 %vm10245_vm2, %v10244_v2  ;;  %8760 = vmatprep.mubr.msk.bf16.mxu0 %vm10245_vm2, %v10244_v2 }
 0x4e8   :  { %v13030_v5 = vpop.f32.mrb[20].mxu1 }
 0x4e9   :  { %v7936_v21 = vpop.f32.mrb[21].mxu1 }
 0x4ea   :  { %v13032_v18 = vpop.f32.mrb[22].mxu1  ;;  %v2073_v21 = vpack.c.bf16 %v2032_v61, %v12574_v48  ;;  %v5432_v48 = vld [vmem:[%s13893_s1 + $0xe6] sm:$0xff]  ;;  %v2705_v61 = vld [vmem:[%s13893_s1 + $0x1fb] sm:$0xff] }
 0x4eb   :  { %v7937_v22 = vpop.f32.mrb[23].mxu1 }
 0x4ed   :  { %8043 = vmatmul.mubr.msk.bf16.gmra.mrb[128].mxu1 %vm288_vm1, %v12436_v50  ;;  %8761 = vmatmul.mubr.msk.bf16.gmra.mrb[16].mxu0 %vm288_vm1, %v5493_v23  ;;  %v5494_v50 = vpack.c.bf16 %v5419_v26, %v5418_v27  ;;  %v2033_v26 = vld [vmem:[%s13893_s1 + $0x292] sm:$0xff] }
 0x4ee   :  { %8046 = vmatprep.mubr.msk.bf16.mxu1 %vm10245_vm2, %v10244_v2  ;;  %8764 = vmatprep.mubr.msk.bf16.mxu0 %vm10245_vm2, %v10244_v2 }
 0x4f0   :  { %v13047_v14 = vpop.f32.mrb[24].mxu1 }
 0x4f1   :  { %v7940_v37 = vpop.f32.mrb[25].mxu1 }
 0x4f2   :  { %v13049_v25 = vpop.f32.mrb[26].mxu1  ;;  %v5433_v37 = vld [vmem:[%s13893_s1 + $0xee] sm:$0xff] }
 0x4f3   :  { %v7941_v19 = vpop.f32.mrb[27].mxu1 }
 0x4f5   :  { %8047 = vmatmul.mubr.msk.bf16.gmra.mrb[132].mxu1 %vm288_vm1, %v12457_v55  ;;  %8765 = vmatmul.mubr.msk.bf16.gmra.mrb[20].mxu0 %vm288_vm1, %v5494_v50  ;;  %v5495_v55 = vpack.c.bf16 %v5421_v32, %v5420_v40  ;;  %v2074_v40 = vpack.c.bf16 %v2033_v26, %v2033_v26  ;;  %v5501_v32 = vpack.c.bf16 %v5433_v37, %v5432_v48  ;;  %v2706_v37 = vld [vmem:[%s13893_s1 + $0x203] sm:$0xff] }
 0x4f6   :  { %8050 = vmatprep.mubr.msk.bf16.mxu1 %vm10245_vm2, %v10244_v2  ;;  %8768 = vmatprep.mubr.msk.bf16.mxu0 %vm10245_vm2, %v10244_v2 }
 0x4f8   :  { %v13064_v34 = vpop.f32.mrb[28].mxu1 }
 0x4f9   :  { %v7944_v9 = vpop.f32.mrb[29].mxu1 }
 0x4fa   :  { %v13066_v36 = vpop.f32.mrb[30].mxu1 }
 0x4fb   :  { %v7945_v29 = vpop.f32.mrb[31].mxu1 }
 0x4fc   :  { %v2700_v29 = vld [vmem:[%s13893_s1 + $0x1d3] sm:$0xff] }
 0x4fd   :  { %8051 = vmatmul.mubr.msk.bf16.gmra.mrb[136].mxu1 %vm288_vm1, %v12478_v57  ;;  %8769 = vmatmul.mubr.msk.bf16.gmra.mrb[24].mxu0 %vm288_vm1, %v5495_v55  ;;  %v5496_v57 = vpack.c.bf16 %v5423_v47, %v5422_v20  ;;  %v2701_v20 = vld [vmem:[%s13893_s1 + $0x1db] sm:$0xff] }
 0x4fe   :  { %8054 = vmatprep.mubr.msk.bf16.mxu1 %vm10245_vm2, %v10244_v2  ;;  %8772 = vmatprep.mubr.msk.bf16.mxu0 %vm10245_vm2, %v10244_v2  ;;  %v5434_v47 = vld [vmem:[%s13893_s1 + $0xf6] sm:$0xff] }
 0x500   :  { %v13081_v24 = vpop.f32.mrb[32].mxu1 }
 0x501   :  { %v7948_v31 = vpop.f32.mrb[33].mxu1 }
 0x502   :  { %v13083_v44 = vpop.f32.mrb[34].mxu1  ;;  %v5435_v31 = vld [vmem:[%s13893_s1 + $0xfe] sm:$0xff] }
 0x503   :  { %v7949_v56 = vpop.f32.mrb[35].mxu1 }
 0x505   :  { %8055 = vmatmul.mubr.msk.bf16.gmra.mrb[140].mxu1 %vm288_vm1, %v12499_v54  ;;  %8773 = vmatmul.mubr.msk.bf16.gmra.mrb[28].mxu0 %vm288_vm1, %v5496_v57  ;;  %v5497_v54 = vpack.c.bf16 %v5425_v7, %v5424_v41  ;;  %v2753_v41 = vpack.c.bf16 %v2701_v20, %v2700_v29  ;;  %v5502_v7 = vpack.c.bf16 %v5435_v31, %v5434_v47 }
 0x506   :  { %8058 = vmatprep.mubr.msk.bf16.mxu1 %vm10245_vm2, %v10244_v2  ;;  %8776 = vmatprep.mubr.msk.bf16.mxu0 %vm10245_vm2, %v10244_v2 }
 0x508   :  { %v13098_v11 = vpop.f32.mrb[36].mxu1 }
 0x509   :  { %v7952_v6 = vpop.f32.mrb[37].mxu1 }
 0x50a   :  { %v13100_v49 = vpop.f32.mrb[38].mxu1 }
 0x50b   :  { %v7953_v4 = vpop.f32.mrb[39].mxu1 }
 0x50c   :  { %v2702_v4 = vld [vmem:[%s13893_s1 + $0x1e3] sm:$0xff] }
 0x50d   :  { %8059 = vmatmul.mubr.msk.bf16.gmra.mrb[144].mxu1 %vm288_vm1, %v12520_v35  ;;  %8777 = vmatmul.mubr.msk.bf16.gmra.mrb[32].mxu0 %vm288_vm1, %v5497_v54  ;;  %v5498_v35 = vpack.c.bf16 %v5427_v16, %v5426_v17  ;;  %v2703_v17 = vld [vmem:[%s13893_s1 + $0x1eb] sm:$0xff] }
 0x50e   :  { %8062 = vmatprep.mubr.msk.bf16.mxu1 %vm10245_vm2, %v10244_v2  ;;  %8780 = vmatprep.mubr.msk.bf16.mxu0 %vm10245_vm2, %v10244_v2  ;;  %v5436_v16 = vld [vmem:[%s13893_s1 + $0x106] sm:$0xff] }
 0x510   :  { %v13115_v62 = vpop.f32.mrb[40].mxu1 }
 0x511   :  { %v7956_v8 = vpop.f32.mrb[41].mxu1 }
 0x512   :  { %v13117_v33 = vpop.f32.mrb[42].mxu1  ;;  %v5437_v8 = vld [vmem:[%s13893_s1 + $0x10e] sm:$0xff] }
 0x513   :  { %v7957_v12 = vpop.f32.mrb[43].mxu1 }
 0x515   :  { %8063 = vmatmul.mubr.msk.bf16.gmra.mrb[148].mxu1 %vm288_vm1, %v12541_v58  ;;  %8781 = vmatmul.mubr.msk.bf16.gmra.mrb[36].mxu0 %vm288_vm1, %v5498_v35  ;;  %v5499_v58 = vpack.c.bf16 %v5429_v39, %v5428_v30  ;;  %v2754_v30 = vpack.c.bf16 %v2703_v17, %v2702_v4  ;;  %v5503_v39 = vpack.c.bf16 %v5437_v8, %v5436_v16  ;;  %v5443_v4 = vld [vmem:[%s13893_s1 + $0x13e] sm:$0xff] }
 0x516   :  { %8066 = vmatprep.mubr.msk.bf16.mxu1 %vm10245_vm2, %v10244_v2  ;;  %8784 = vmatprep.mubr.msk.bf16.mxu0 %vm10245_vm2, %v10244_v2 }
 0x518   :  { %v13132_v15 = vpop.f32.mrb[44].mxu1 }
 0x519   :  { %v7960_v13 = vpop.f32.mrb[45].mxu1 }
 0x51a   :  { %v13134_v43 = vpop.f32.mrb[46].mxu1 }
 0x51b   :  { %v7961_v59 = vpop.f32.mrb[47].mxu1 }
 0x51c   :  { %v2704_v59 = vld [vmem:[%s13893_s1 + $0x1f3] sm:$0xff] }
 0x51d   :  { %8067 = vmatmul.mubr.msk.bf16.gmra.mrb[152].mxu1 %vm288_vm1, %v12562_v60  ;;  %8785 = vmatmul.mubr.msk.bf16.gmra.mrb[40].mxu0 %vm288_vm1, %v5499_v58  ;;  %v5431_v60 = vld [vmem:[%s13893_s1 + $0xde] sm:$0xff] }
 0x51e   :  { %8070 = vmatprep.mubr.msk.bf16.mxu1 %vm10245_vm2, %v10244_v2  ;;  %8788 = vmatprep.mubr.msk.bf16.mxu0 %vm10245_vm2, %v10244_v2  ;;  %v5500_v23 = vpack.c.bf16 %v5431_v60, %v5430_v1  ;;  %v5438_v1 = vld [vmem:[%s13893_s1 + $0x116] sm:$0xff]  ;;  %v5439_v60 = vld [vmem:[%s13893_s1 + $0x11e] sm:$0xff] }
 0x520   :  { %v13152_v51 = vpop.f32.mrb[48].mxu1 }
 0x521   :  { %v7964_v53 = vpop.f32.mrb[49].mxu1 }
 0x522   :  { %v13155_v22 = vpop.f32.mrb[50].mxu1 }
 0x523   :  { %v7965_v27 = vpop.f32.mrb[51].mxu1 }
 0x524   :  { %v5504_v27 = vpack.c.bf16 %v5439_v60, %v5438_v1  ;;  %v5445_v1 = vld [vmem:[%s13893_s1 + $0x14e] sm:$0xff] }
 0x525   :  { %8071 = vmatmul.mubr.msk.bf16.gmra.mrb[156].mxu1 %vm288_vm1, %v2073_v21  ;;  %8789 = vmatmul.mubr.msk.bf16.gmra.mrb[44].mxu0 %vm288_vm1, %v5500_v23  ;;  %v2755_v23 = vpack.c.bf16 %v2705_v61, %v2704_v59  ;;  %v2711_v59 = vld [vmem:[%s13893_s1 + $0x22b] sm:$0xff] }
 0x526   :  { %8074 = vmatprep.mubr.msk.bf16.mxu1 %vm10245_vm2, %v10244_v2  ;;  %8792 = vmatprep.mubr.msk.bf16.mxu0 %vm10245_vm2, %v10244_v2  ;;  %v5444_v61 = vld [vmem:[%s13893_s1 + $0x146] sm:$0xff] }
 0x528   :  { %v13172_v50 = vpop.f32.mrb[52].mxu1 }
 0x529   :  { %v7968_v19 = vpop.f32.mrb[53].mxu1 }
 0x52a   :  { %v13174_v9 = vpop.f32.mrb[54].mxu1  ;;  %v2707_v19 = vld [vmem:[%s13893_s1 + $0x20b] sm:$0xff] }
 0x52b   :  { %v7969_v55 = vpop.f32.mrb[55].mxu1  ;;  %v2756_v20 = vpack.c.bf16 %v2707_v19, %v2706_v37  ;;  %v2712_v19 = vld [vmem:[%s13893_s1 + $0x233] sm:$0xff] }
 0x52d   :  { %8075 = vmatmul.mubr.msk.bf16.gmra.mrb[160].mxu1 %vm288_vm1, %v2074_v40  ;;  %8793 = vmatmul.mubr.msk.bf16.gmra.mrb[48].mxu0 %vm288_vm1, %v5501_v32  ;;  %v5440_v40 = vld [vmem:[%s13893_s1 + $0x126] sm:$0xff]  ;;  %v5441_v32 = vld [vmem:[%s13893_s1 + $0x12e] sm:$0xff] }
 0x52e   :  { %8192 = vmatprep.mubr.msk.bf16.mxu1 %vm10245_vm2, %v10244_v2  ;;  %8796 = vmatprep.mubr.msk.bf16.mxu0 %vm10245_vm2, %v10244_v2  ;;  %v5505_v47 = vpack.c.bf16 %v5441_v32, %v5440_v40  ;;  %v2713_v40 = vld [vmem:[%s13893_s1 + $0x23b] sm:$0xff] }
 0x52f   :  { %v5446_v32 = vld [vmem:[%s13893_s1 + $0x156] sm:$0xff] }
 0x530   :  { %v13194_v57 = vpop.f32.mrb[56].mxu1 }
 0x531   :  { %v7972_v56 = vpop.f32.mrb[57].mxu1 }
 0x532   :  { %v13196_v6 = vpop.f32.mrb[58].mxu1 }
 0x533   :  { %v7973_v54 = vpop.f32.mrb[59].mxu1 }
 0x534   :  { %v5442_v54 = vld [vmem:[%s13893_s1 + $0x136] sm:$0xff] }
 0x535   :  { %8193 = vmatmul.mubr.msk.bf16.vlgmr.msra.gmra.mrb[112].mxu1 %vm288_vm1, %v2753_v41  ;;  %8797 = vmatmul.mubr.msk.bf16.gmra.mrb[52].mxu0 %vm288_vm1, %v5502_v7  ;;  %v2708_v41 = vld [vmem:[%s13893_s1 + $0x213] sm:$0xff]  ;;  %v2709_v7 = vld [vmem:[%s13893_s1 + $0x21b] sm:$0xff] }
 0x536   :  { %8196 = vmatprep.mubr.msk.bf16.mxu1 %vm10245_vm2, %v10244_v2  ;;  %8800 = vmatprep.mubr.msk.bf16.mxu0 %vm10245_vm2, %v10244_v2  ;;  %v2757_v8 = vpack.c.bf16 %v2709_v7, %v2708_v41 }
 0x538   :  { %v13216_v35 = vpop.f32.mrb[60].mxu1 }
 0x539   :  { %v7976_v12 = vpop.f32.mrb[61].mxu1 }
 0x53a   :  { %v13218_v13 = vpop.f32.mrb[62].mxu1  ;;  %v5506_v12 = vpack.c.bf16 %v5443_v4, %v5442_v54  ;;  %v2714_v4 = vld [vmem:[%s13893_s1 + $0x243] sm:$0xff] }
 0x53b   :  { %v7977_v58 = vpop.f32.mrb[63].mxu1 }
 0x53c   :  { %v2710_v58 = vld [vmem:[%s13893_s1 + $0x223] sm:$0xff] }
 0x53d   :  { %8197 = vmatmul.mubr.msk.bf16.gmra.mrb[116].mxu1 %vm288_vm1, %v2754_v30  ;;  %8801 = vmatmul.mubr.msk.bf16.gmra.mrb[56].mxu0 %vm288_vm1, %v5503_v39 }
 0x53e   :  { %8200 = vmatprep.mubr.msk.bf16.mxu1 %vm10245_vm2, %v10244_v2  ;;  %8804 = vmatprep.mubr.msk.bf16.mxu0 %vm10245_vm2, %v10244_v2 }
 0x540   :  { %v13238_v53 = vpop.f32.mrb[64].mxu1 }
 0x541   :  { %v7980_v21 = vpop.f32.mrb[65].mxu1 }
 0x542   :  { %v13240_v26 = vpop.f32.mrb[66].mxu1 }
 0x543   :  { %v7981_v48 = vpop.f32.mrb[67].mxu1 }
 0x545   :  { %8201 = vmatmul.mubr.msk.bf16.gmra.mrb[120].mxu1 %vm288_vm1, %v2755_v23  ;;  %8805 = vmatmul.mubr.msk.bf16.gmra.mrb[60].mxu0 %vm288_vm1, %v5504_v27  ;;  %v2758_v23 = vpack.c.bf16 %v2711_v59, %v2710_v58  ;;  %v5507_v27 = vpack.c.bf16 %v5445_v1, %v5444_v61 }
 0x546   :  { %8204 = vmatprep.mubr.msk.bf16.mxu1 %vm10245_vm2, %v10244_v2  ;;  %8808 = vmatprep.mubr.msk.bf16.mxu0 %vm10245_vm2, %v10244_v2 }
 0x548   :  { %v13260_v55 = vpop.f32.mrb[68].mxu1 }
 0x549   :  { %v7984_v29 = vpop.f32.mrb[69].mxu1 }
 0x54a   :  { %v13262_v31 = vpop.f32.mrb[70].mxu1  ;;  %v5447_v29 = vld [vmem:[%s13893_s1 + $0x15e] sm:$0xff] }
 0x54b   :  { %v7985_v56 = vpop.f32.mrb[71].mxu1  ;;  %v5508_v41 = vpack.c.bf16 %v5447_v29, %v5446_v32 }
 0x54c   :  { %v2759_v56 = vpack.c.bf16 %v2713_v40, %v2712_v19  ;;  %v5451_v19 = vld [vmem:[%s13893_s1 + $0x17e] sm:$0xff] }
 0x54d   :  { %8205 = vmatmul.mubr.msk.bf16.gmra.mrb[124].mxu1 %vm288_vm1, %v2756_v20  ;;  %8809 = vmatmul.mubr.msk.bf16.gmra.mrb[64].mxu0 %vm288_vm1, %v5505_v47 }
 0x54e   :  { %8208 = vmatprep.mubr.msk.bf16.mxu1 %vm10245_vm2, %v10244_v2  ;;  %8812 = vmatprep.mubr.msk.bf16.mxu0 %vm10245_vm2, %v10244_v2 }
 0x550   :  { %v13282_v17 = vpop.f32.mrb[72].mxu1 }
 0x551   :  { %v7988_v16 = vpop.f32.mrb[73].mxu1 }
 0x552   :  { %v13284_v30 = vpop.f32.mrb[74].mxu1  ;;  %v2715_v16 = vld [vmem:[%s13893_s1 + $0x24b] sm:$0xff] }
 0x553   :  { %v7989_v39 = vpop.f32.mrb[75].mxu1  ;;  %v2760_v59 = vpack.c.bf16 %v2715_v16, %v2714_v4  ;;  %v2719_v4 = vld [vmem:[%s13893_s1 + $0x26b] sm:$0xff] }
 0x554   :  { %v5452_v16 = vld [vmem:[%s13893_s1 + $0x186] sm:$0xff] }
 0x555   :  { %8209 = vmatmul.mubr.msk.bf16.gmra.mrb[128].mxu1 %vm288_vm1, %v2757_v8  ;;  %8813 = vmatmul.mubr.msk.bf16.gmra.mrb[68].mxu0 %vm288_vm1, %v5506_v12  ;;  %v5448_v8 = vld [vmem:[%s13893_s1 + $0x166] sm:$0xff]  ;;  %v5449_v12 = vld [vmem:[%s13893_s1 + $0x16e] sm:$0xff] }
 0x556   :  { %8212 = vmatprep.mubr.msk.bf16.mxu1 %vm10245_vm2, %v10244_v2  ;;  %8816 = vmatprep.mubr.msk.bf16.mxu0 %vm10245_vm2, %v10244_v2  ;;  %v5509_v61 = vpack.c.bf16 %v5449_v12, %v5448_v8  ;;  %v5453_v8 = vld [vmem:[%s13893_s1 + $0x18e] sm:$0xff] }
 0x558   :  { %v13304_v60 = vpop.f32.mrb[76].mxu1 }
 0x559   :  { %v7992_v21 = vpop.f32.mrb[77].mxu1 }
 0x55a   :  { %v13306_v48 = vpop.f32.mrb[78].mxu1 }
 0x55b   :  { %v7993_v37 = vpop.f32.mrb[79].mxu1 }
 0x55c   :  { %v5450_v37 = vld [vmem:[%s13893_s1 + $0x176] sm:$0xff] }
 0x55d   :  { %8213 = vmatmul.mubr.msk.bf16.gmra.mrb[132].mxu1 %vm288_vm1, %v2758_v23  ;;  %8817 = vmatmul.mubr.msk.bf16.gmra.mrb[72].mxu0 %vm288_vm1, %v5507_v27  ;;  %v2716_v23 = vld [vmem:[%s13893_s1 + $0x253] sm:$0xff]  ;;  %v2717_v27 = vld [vmem:[%s13893_s1 + $0x25b] sm:$0xff] }
 0x55e   :  { %8216 = vmatprep.mubr.msk.bf16.mxu1 %vm10245_vm2, %v10244_v2  ;;  %8820 = vmatprep.mubr.msk.bf16.mxu0 %vm10245_vm2, %v10244_v2  ;;  %v2761_v29 = vpack.c.bf16 %v2717_v27, %v2716_v23  ;;  %v2720_v27 = vld [vmem:[%s13893_s1 + $0x273] sm:$0xff] }
 0x560   :  { %v13326_v20 = vpop.f32.mrb[80].mxu1 }
 0x561   :  { %v7996_v47 = vpop.f32.mrb[81].mxu1 }
 0x562   :  { %v13328_v7 = vpop.f32.mrb[82].mxu1  ;;  %v5510_v47 = vpack.c.bf16 %v5451_v19, %v5450_v37  ;;  %v2721_v37 = vld [vmem:[%s13893_s1 + $0x27b] sm:$0xff] }
 0x563   :  { %v7997_v54 = vpop.f32.mrb[83].mxu1  ;;  %v5454_v19 = vld [vmem:[%s13893_s1 + $0x196] sm:$0xff] }
 0x564   :  { %v2718_v54 = vld [vmem:[%s13893_s1 + $0x263] sm:$0xff] }
 0x565   :  { %8217 = vmatmul.mubr.msk.bf16.gmra.mrb[136].mxu1 %vm288_vm1, %v2759_v56  ;;  %8821 = vmatmul.mubr.msk.bf16.gmra.mrb[76].mxu0 %vm288_vm1, %v5508_v41 }
 0x566   :  { %8220 = vmatprep.mubr.msk.bf16.mxu1 %vm10245_vm2, %v10244_v2  ;;  %8824 = vmatprep.mubr.msk.bf16.mxu0 %vm10245_vm2, %v10244_v2 }
 0x568   :  { %v13348_v39 = vpop.f32.mrb[84].mxu1 }
 0x569   :  { %v8000_v58 = vpop.f32.mrb[85].mxu1 }
 0x56a   :  { %v13350_v1 = vpop.f32.mrb[86].mxu1 }
 0x56b   :  { %v8001_v21 = vpop.f32.mrb[87].mxu1 }
 0x56d   :  { %8221 = vmatmul.mubr.msk.bf16.gmra.mrb[140].mxu1 %vm288_vm1, %v2760_v59  ;;  %8825 = vmatmul.mubr.msk.bf16.gmra.mrb[80].mxu0 %vm288_vm1, %v5509_v61  ;;  %v2762_v59 = vpack.c.bf16 %v2719_v4, %v2718_v54  ;;  %v5511_v61 = vpack.c.bf16 %v5453_v8, %v5452_v16  ;;  %v2722_v8 = vld [vmem:[%s13893_s1 + $0x283] sm:$0xff] }
 0x56e   :  { %8224 = vmatprep.mubr.msk.bf16.mxu1 %vm10245_vm2, %v10244_v2  ;;  %8828 = vmatprep.mubr.msk.bf16.mxu0 %vm10245_vm2, %v10244_v2 }
 0x570   :  { %v13370_v40 = vpop.f32.mrb[88].mxu1 }
 0x571   :  { %v8004_v32 = vpop.f32.mrb[89].mxu1 }
 0x572   :  { %v13372_v56 = vpop.f32.mrb[90].mxu1  ;;  %v5455_v32 = vld [vmem:[%s13893_s1 + $0x19e] sm:$0xff] }
 0x573   :  { %v8005_v41 = vpop.f32.mrb[91].mxu1  ;;  %v5512_v54 = vpack.c.bf16 %v5455_v32, %v5454_v19 }
 0x574   :  { %v2763_v41 = vpack.c.bf16 %v2721_v37, %v2720_v27 }
 0x575   :  { %8225 = vmatmul.mubr.msk.bf16.gmra.mrb[144].mxu1 %vm288_vm1, %v2761_v29  ;;  %8829 = vmatmul.mubr.msk.bf16.gmra.mrb[84].mxu0 %vm288_vm1, %v5510_v47 }
 0x576   :  { %8228 = vmatprep.mubr.msk.bf16.mxu1 %vm10245_vm2, %v10244_v2  ;;  %8832 = vmatprep.mubr.msk.bf16.mxu0 %vm10245_vm2, %v10244_v2 }
 0x578   :  { %v13392_v12 = vpop.f32.mrb[92].mxu1 }
 0x579   :  { %v8008_v58 = vpop.f32.mrb[93].mxu1 }
 0x57a   :  { %v13394_v21 = vpop.f32.mrb[94].mxu1  ;;  %v2723_v58 = vld [vmem:[%s13893_s1 + $0x28b] sm:$0xff] }
 0x57b   :  { %v8009_v23 = vpop.f32.mrb[95].mxu1  ;;  %v2764_v37 = vpack.c.bf16 %v2723_v58, %v2722_v8 }
 0x57d   :  { %8229 = vmatmul.mubr.msk.bf16.gmra.mrb[148].mxu1 %vm288_vm1, %v2762_v59  ;;  %8833 = vmatmul.mubr.msk.bf16.gmra.mrb[88].mxu0 %vm288_vm1, %v5511_v61  ;;  %v5456_v59 = vld [vmem:[%s13893_s1 + $0x1a6] sm:$0xff]  ;;  %v5457_v61 = vld [vmem:[%s13893_s1 + $0x1ae] sm:$0xff] }
 0x57e   :  { %8232 = vmatprep.mubr.msk.bf16.mxu1 %vm10245_vm2, %v10244_v2  ;;  %8836 = vmatprep.mubr.msk.bf16.mxu0 %vm10245_vm2, %v10244_v2  ;;  %v5513_v19 = vpack.c.bf16 %v5457_v61, %v5456_v59 }
 0x580   :  { %v13414_v29 = vpop.f32.mrb[96].mxu1 }
 0x581   :  { %v8012_v47 = vpop.f32.mrb[97].mxu1 }
 0x582   :  { %v13416_v4 = vpop.f32.mrb[98].mxu1 }
 0x583   :  { %v8013_v16 = vpop.f32.mrb[99].mxu1 }
 0x584   :  { %v5459_v16 = vld [vmem:[%s13893_s1 + $0x1be] sm:$0xff] }
 0x585   :  { %8233 = vmatmul.mubr.msk.bf16.gmra.mrb[152].mxu1 %vm288_vm1, %v2763_v41  ;;  %8837 = vmatmul.mubr.msk.bf16.gmra.mrb[92].mxu0 %vm288_vm1, %v5512_v54  ;;  %v2724_v41 = vld [vmem:[%s13893_s1 + $0x293] sm:$0xff] }
 0x586   :  { %8236 = vmatprep.mubr.msk.bf16.mxu1 %vm10245_vm2, %v10244_v2  ;;  %8840 = vmatprep.mubr.msk.bf16.mxu0 %vm10245_vm2, %v10244_v2  ;;  %v5458_v54 = vld [vmem:[%s13893_s1 + $0x1b6] sm:$0xff]  ;;  %v2765_v59 = vpack.c.bf16 %v2724_v41, %v2724_v41 }
 0x587   :  { %v5514_v61 = vpack.c.bf16 %v5459_v16, %v5458_v54 }
 0x588   :  { %v13436_v23 = vpop.f32.mrb[100].mxu1 }
 0x589   :  { %v8016_v27 = vpop.f32.mrb[101].mxu1 }
 0x58a   :  { %v13438_v32 = vpop.f32.mrb[102].mxu1 }
 0x58b   :  { %13900 = vst [vmem:[#allocation11_spill] sm:$0xff] %v13438_v32  ;;  %v8017_v47 = vpop.f32.mrb[103].mxu1  ;;  %v5464_v32 = vld [vmem:[%s13893_s1 + $0x1e6] sm:$0xff] }
 0x58c   :  { %v5461_v47 = vld [vmem:[%s13893_s1 + $0x1ce] sm:$0xff] }
 0x58d   :  { %8237 = vmatmul.mubr.msk.bf16.gmra.mrb[156].mxu1 %vm288_vm1, %v2764_v37  ;;  %8841 = vmatmul.mubr.msk.bf16.gmra.mrb[96].mxu0 %vm288_vm1, %v5513_v19  ;;  %v5460_v19 = vld [vmem:[%s13893_s1 + $0x1c6] sm:$0xff] }
 0x58e   :  { %8240 = vmatprep.mubr.msk.bf16.mxu1 %vm10245_vm2, %v10244_v2  ;;  %8844 = vmatprep.mubr.msk.bf16.mxu0 %vm10245_vm2, %v10244_v2  ;;  %v5515_v16 = vpack.c.bf16 %v5461_v47, %v5460_v19 }
 0x590   :  { %v13455_v8 = vpop.f32.mrb[104].mxu1 }
 0x591   :  { %13901 = vst [vmem:[#allocation12_spill] sm:$0xff] %v13455_v8  ;;  %v8020_v58 = vpop.f32.mrb[105].mxu1 }
 0x592   :  { %v13457_v27 = vpop.f32.mrb[106].mxu1 }
 0x593   :  { %13902 = vst [vmem:[#allocation13_spill] sm:$0xff] %v13457_v27  ;;  %v8021_v37 = vpop.f32.mrb[107].mxu1 }
 0x594   :  { %v5463_v37 = vld [vmem:[%s13893_s1 + $0x1de] sm:$0xff] }
 0x595   :  { %8241 = vmatmul.mubr.msk.bf16.gmra.mrb[160].mxu1 %vm288_vm1, %v2765_v59  ;;  %8845 = vmatmul.mubr.msk.bf16.gmra.mrb[100].mxu0 %vm288_vm1, %v5514_v61  ;;  %v5462_v61 = vld [vmem:[%s13893_s1 + $0x1d6] sm:$0xff] }
 0x596   :  { %8848 = vmatprep.mubr.msk.bf16.mxu0 %vm10245_vm2, %v10244_v2  ;;  %v5516_v47 = vpack.c.bf16 %v5463_v37, %v5462_v61 }
 0x598   :  { %v13469_v41 = vpop.f32.mrb[108].mxu1 }
 0x599   :  { %13903 = vst [vmem:[#allocation14_spill] sm:$0xff] %v13469_v41  ;;  %v8024_v54 = vpop.f32.mrb[109].mxu1 }
 0x59a   :  { %v13471_v58 = vpop.f32.mrb[110].mxu1 }
 0x59b   :  { %13904 = vst [vmem:[#allocation15_spill] sm:$0xff] %v13471_v58  ;;  %v8025_v59 = vpop.f32.mrb[111].mxu1 }
 0x59d   :  { %8849 = vmatmul.mubr.msk.bf16.gmra.mrb[104].mxu0 %vm288_vm1, %v5515_v16 }
 0x59e   :  { %8852 = vmatprep.mubr.msk.bf16.mxu0 %vm10245_vm2, %v10244_v2 }
 0x5a0   :  { %v5692_v27 = vpop.f32.mrb[0].mxu0 }
 0x5a1   :  { %v8930_v54 = vadd.f32 %v5692_v27, %v12945_v38  ;;  %v8746_v19 = vpop.f32.mrb[1].mxu0  ;;  %v5465_v38 = vld [vmem:[%s13893_s1 + $0x1ee] sm:$0xff] }
 0x5a2   :  { %v5695_v58 = vpop.f32.mrb[2].mxu0  ;;  %v5517_v37 = vpack.c.bf16 %v5465_v38, %v5464_v32 }
 0x5a3   :  { %v8931_v59 = vadd.f32 %v5695_v58, %v12947_v52  ;;  %v8747_v16 = vpop.f32.mrb[3].mxu0  ;;  %v6099_v41 = vmax.f32 %v8930_v54, 0.0 }
 0x5a5   :  { %v6100_v8 = vmax.f32 %v8931_v59, 0.0  ;;  %8853 = vmatmul.mubr.msk.bf16.gmra.mrb[108].mxu0 %vm288_vm1, %v5516_v47 }
 0x5a6   :  { %8856 = vmatprep.mubr.msk.bf16.mxu0 %vm10245_vm2, %v10244_v2 }
 0x5a7   :  { %v13493_v27 = vpack.c.bf16 %v6100_v8, %v6099_v41  ;;  %v5466_v8 = vld [vmem:[%s13893_s1 + $0x1f6] sm:$0xff] }
 0x5a8   :  { %v5700_v61 = vpop.f32.mrb[4].mxu0 }
 0x5a9   :  { %v8932_v52 = vadd.f32 %v5700_v61, %v12962_v45  ;;  %v8750_v58 = vpop.f32.mrb[5].mxu0  ;;  %v5467_v45 = vld [vmem:[%s13893_s1 + $0x1fe] sm:$0xff] }
 0x5aa   :  { %v5703_v54 = vpop.f32.mrb[6].mxu0  ;;  %v5518_v61 = vpack.c.bf16 %v5467_v45, %v5466_v8 }
 0x5ab   :  { %v8933_v19 = vadd.f32 %v5703_v54, %v12964_v63  ;;  %v8751_v47 = vpop.f32.mrb[7].mxu0  ;;  %v6101_v59 = vmax.f32 %v8932_v52, 0.0 }
 0x5ac   :  { %v5468_v47 = vld [vmem:[%s13893_s1 + $0x206] sm:$0xff] }
 0x5ad   :  { %v6102_v16 = vmax.f32 %v8933_v19, 0.0  ;;  %8857 = vmatmul.mubr.msk.bf16.gmra.mrb[112].mxu0 %vm288_vm1, %v5517_v37 }
 0x5ae   :  { %8860 = vmatprep.mubr.msk.bf16.mxu0 %vm10245_vm2, %v10244_v2 }
 0x5af   :  { %v13506_v32 = vpack.c.bf16 %v6102_v16, %v6101_v59 }
 0x5b0   :  { %v5708_v41 = vpop.f32.mrb[8].mxu0 }
 0x5b1   :  { %v8934_v63 = vadd.f32 %v5708_v41, %v12979_v0  ;;  %v8754_v38 = vpop.f32.mrb[9].mxu0  ;;  %v5469_v0 = vld [vmem:[%s13893_s1 + $0x20e] sm:$0xff] }
 0x5b2   :  { %v5711_v52 = vpop.f32.mrb[10].mxu0  ;;  %v5519_v45 = vpack.c.bf16 %v5469_v0, %v5468_v47 }
 0x5b3   :  { %v8935_v58 = vadd.f32 %v5711_v52, %v12981_v46  ;;  %v8755_v37 = vpop.f32.mrb[11].mxu0  ;;  %v6103_v54 = vmax.f32 %v8934_v63, 0.0 }
 0x5b5   :  { %v6104_v19 = vmax.f32 %v8935_v58, 0.0  ;;  %8861 = vmatmul.mubr.msk.bf16.gmra.mrb[116].mxu0 %vm288_vm1, %v5518_v61  ;;  %v5470_v58 = vld [vmem:[%s13893_s1 + $0x216] sm:$0xff] }
 0x5b6   :  { %8864 = vmatprep.mubr.msk.bf16.mxu0 %vm10245_vm2, %v10244_v2 }
 0x5b7   :  { %v13519_v59 = vpack.c.bf16 %v6104_v19, %v6103_v54 }
 0x5b8   :  { %v5716_v16 = vpop.f32.mrb[12].mxu0 }
 0x5b9   :  { %v8936_v46 = vadd.f32 %v5716_v16, %v12996_v3  ;;  %v8758_v8 = vpop.f32.mrb[13].mxu0  ;;  %v5471_v3 = vld [vmem:[%s13893_s1 + $0x21e] sm:$0xff] }
 0x5ba   :  { %v5719_v41 = vpop.f32.mrb[14].mxu0  ;;  %v5520_v47 = vpack.c.bf16 %v5471_v3, %v5470_v58 }
 0x5bb   :  { %v8937_v63 = vadd.f32 %v5719_v41, %v12998_v42  ;;  %v8759_v38 = vpop.f32.mrb[15].mxu0  ;;  %v6105_v61 = vmax.f32 %v8936_v46, 0.0  ;;  %v5472_v41 = vld [vmem:[%s13893_s1 + $0x226] sm:$0xff] }
 0x5bd   :  { %v6106_v52 = vmax.f32 %v8937_v63, 0.0  ;;  %8865 = vmatmul.mubr.msk.bf16.gmra.mrb[120].mxu0 %vm288_vm1, %v5519_v45 }
 0x5be   :  { %8868 = vmatprep.mubr.msk.bf16.mxu0 %vm10245_vm2, %v10244_v2 }
 0x5bf   :  { %v13532_v37 = vpack.c.bf16 %v6106_v52, %v6105_v61 }
 0x5c0   :  { %v5724_v54 = vpop.f32.mrb[16].mxu0 }
 0x5c1   :  { %v8938_v42 = vadd.f32 %v5724_v54, %v13013_v10  ;;  %v8762_v19 = vpop.f32.mrb[17].mxu0  ;;  %v5473_v10 = vld [vmem:[%s13893_s1 + $0x22e] sm:$0xff] }
 0x5c2   :  { %v5727_v0 = vpop.f32.mrb[18].mxu0  ;;  %v5521_v52 = vpack.c.bf16 %v5473_v10, %v5472_v41 }
 0x5c3   :  { %v8939_v16 = vadd.f32 %v5727_v0, %v13015_v28  ;;  %v8763_v46 = vpop.f32.mrb[19].mxu0  ;;  %v6107_v8 = vmax.f32 %v8938_v42, 0.0 }
 0x5c5   :  { %v6108_v45 = vmax.f32 %v8939_v16, 0.0  ;;  %8869 = vmatmul.mubr.msk.bf16.gmra.mrb[124].mxu0 %vm288_vm1, %v5520_v47  ;;  %v5474_v47 = vld [vmem:[%s13893_s1 + $0x236] sm:$0xff] }
 0x5c6   :  { %8872 = vmatprep.mubr.msk.bf16.mxu0 %vm10245_vm2, %v10244_v2 }
 0x5c7   :  { %v13545_v63 = vpack.c.bf16 %v6108_v45, %v6107_v8 }
 0x5c8   :  { %v5732_v38 = vpop.f32.mrb[20].mxu0 }
 0x5c9   :  { %v8940_v28 = vadd.f32 %v5732_v38, %v13030_v5  ;;  %v8766_v61 = vpop.f32.mrb[21].mxu0  ;;  %v5475_v5 = vld [vmem:[%s13893_s1 + $0x23e] sm:$0xff] }
 0x5ca   :  { %v5735_v58 = vpop.f32.mrb[22].mxu0  ;;  %v5522_v8 = vpack.c.bf16 %v5475_v5, %v5474_v47  ;;  %v5476_v61 = vld [vmem:[%s13893_s1 + $0x246] sm:$0xff] }
 0x5cb   :  { %v8941_v3 = vadd.f32 %v5735_v58, %v13032_v18  ;;  %v8767_v54 = vpop.f32.mrb[23].mxu0  ;;  %v6109_v42 = vmax.f32 %v8940_v28, 0.0 }
 0x5cd   :  { %v6110_v19 = vmax.f32 %v8941_v3, 0.0  ;;  %8873 = vmatmul.mubr.msk.bf16.gmra.mrb[128].mxu0 %vm288_vm1, %v5521_v52 }
 0x5ce   :  { %8876 = vmatprep.mubr.msk.bf16.mxu0 %vm10245_vm2, %v10244_v2 }
 0x5cf   :  { %v13558_v0 = vpack.c.bf16 %v6110_v19, %v6109_v42 }
 0x5d0   :  { %v5740_v16 = vpop.f32.mrb[24].mxu0 }
 0x5d1   :  { %v8942_v18 = vadd.f32 %v5740_v16, %v13047_v14  ;;  %v8770_v46 = vpop.f32.mrb[25].mxu0  ;;  %v5477_v14 = vld [vmem:[%s13893_s1 + $0x24e] sm:$0xff] }
 0x5d2   :  { %v5743_v45 = vpop.f32.mrb[26].mxu0  ;;  %v5523_v54 = vpack.c.bf16 %v5477_v14, %v5476_v61 }
 0x5d3   :  { %v8943_v41 = vadd.f32 %v5743_v45, %v13049_v25  ;;  %v8771_v10 = vpop.f32.mrb[27].mxu0  ;;  %v6111_v38 = vmax.f32 %v8942_v18, 0.0  ;;  %v10246_v18 = vmov 1966171168   ;;  %v5479_v45 = vld [vmem:[%s13893_s1 + $0x25e] sm:$0xff] }
 0x5d4   :  { %v6225_v46 = vunpack.c.l.s4 %v10246_v18 }
 0x5d5   :  { %v6112_v28 = vmax.f32 %v8943_v41, 0.0  ;;  %8877 = vmatmul.mubr.msk.bf16.gmra.mrb[132].mxu0 %vm288_vm1, %v5522_v8  ;;  %v6227_v8 = vlaneseq }
 0x5d6   :  { %8880 = vmatprep.mubr.msk.bf16.mxu0 %vm10245_vm2, %v10244_v2  ;;  %v6226_v41 = vunpack.c.0.s8 %v6225_v46 }
 0x5d7   :  { %v13571_v52 = vpack.c.bf16 %v6112_v28, %v6111_v38  ;;  %v13587_v10 = vshrl.u32 %v6227_v8, 7 }
 0x5d8   :  { %v5748_v58 = vpop.f32.mrb[28].mxu0 }
 0x5d9   :  { %v8944_v25 = vadd.f32 %v5748_v58, %v13064_v34  ;;  %v8774_v3 = vpop.f32.mrb[29].mxu0  ;;  %v5478_v34 = vld [vmem:[%s13893_s1 + $0x256] sm:$0xff]  ;;  %v13591_v58 = vsub.s32 %v6226_v41, %v13587_v10  ;;  %vm6518_vm3 = vcmp.eq.s32.totalorder %v13587_v10, 0  ;;  %vm6522_vm4 = vcmp.eq.s32.totalorder %v13587_v10, 1 }
 0x5da   :  { %v5751_v42 = vpop.f32.mrb[30].mxu0  ;;  %v5524_v14 = vpack.c.bf16 %v5479_v45, %v5478_v34  ;;  %v13596_v3 = vld [vmem:[%s13895_s3] sm:$0x3f] }
 0x5db   :  { %v8945_v19 = vadd.f32 %v5751_v42, %v13066_v36  ;;  %v8775_v47 = vpop.f32.mrb[31].mxu0  ;;  %v6113_v5 = vmax.f32 %v8944_v25, 0.0 }
 0x5dd   :  { %v6114_v16 = vmax.f32 %v8945_v19, 0.0  ;;  %8881 = vmatmul.mubr.msk.bf16.gmra.mrb[136].mxu0 %vm288_vm1, %v5523_v54  ;;  %v13601_v19 = vrot.slane %v13596_v3, %v13591_v58 }
 0x5de   :  { %8884 = vmatprep.mubr.msk.bf16.mxu0 %vm10245_vm2, %v10244_v2 }
 0x5df   :  { %v13584_v36 = vpack.c.bf16 %v6114_v16, %v6113_v5  ;;  %v6238_v5 = vcombine.high %v13601_v19, %v13601_v19  ;;  %v5480_v16 = vld [vmem:[%s13893_s1 + $0x266] sm:$0xff] }
 0x5e0   :  { %v5756_v38 = vpop.f32.mrb[32].mxu0 }
 0x5e1   :  { %v8946_v28 = vadd.f32 %v5756_v38, %v13081_v24  ;;  %v8778_v61 = vpop.f32.mrb[33].mxu0  ;;  %v13615_v46 = vrot.slane %v6238_v5, %v13591_v58 }
 0x5e2   :  { %v5759_v25 = vpop.f32.mrb[34].mxu0 }
 0x5e3   :  { %v8947_v54 = vadd.f32 %v5759_v25, %v13083_v44  ;;  %v8779_v42 = vpop.f32.mrb[35].mxu0  ;;  %v6115_v47 = vmax.f32 %v8946_v28, 0.0  ;;  %v5481_v44 = vld [vmem:[%s13893_s1 + $0x26e] sm:$0xff]  ;;  %6313 = vmatprep.mubr.bf16.mxu1 %v13615_v46 }
 0x5e4   :  { %v5525_v38 = vpack.c.bf16 %v5481_v44, %v5480_v16  ;;  %v5483_v42 = vld [vmem:[%s13893_s1 + $0x27e] sm:$0xff] }
 0x5e5   :  { %v6116_v24 = vmax.f32 %v8947_v54, 0.0  ;;  %8885 = vmatmul.mubr.msk.bf16.gmra.mrb[140].mxu0 %vm288_vm1, %v5524_v14 }
 0x5e6   :  { %8888 = vmatprep.mubr.msk.bf16.mxu0 %vm10245_vm2, %v10244_v2 }
 0x5e7   :  { %v6188_v18 = vpack.c.bf16 %v6116_v24, %v6115_v47 }
 0x5e8   :  { %v5764_v34 = vpop.f32.mrb[36].mxu0 }
 0x5e9   :  { %v8948_v45 = vadd.f32 %v5764_v34, %v13098_v11  ;;  %v8782_v41 = vpop.f32.mrb[37].mxu0  ;;  %7361 = vmatprep.subr.bf16.mxu1 %v6188_v18  ;;  %v5482_v11 = vld [vmem:[%s13893_s1 + $0x276] sm:$0xff] }
 0x5ea   :  { %v5767_v28 = vpop.f32.mrb[38].mxu0  ;;  %7362 = vmatpush3.bf16.msra.mxu1 %v13493_v27  ;;  %v5526_v5 = vpack.c.bf16 %v5483_v42, %v5482_v11  ;;  %v5485_v41 = vld [vmem:[%s13893_s1 + $0x28e] sm:$0xff] }
 0x5eb   :  { %v8949_v61 = vadd.f32 %v5767_v28, %v13100_v49  ;;  %v8783_v14 = vpop.f32.mrb[39].mxu0  ;;  %v6117_v25 = vmax.f32 %v8948_v45, 0.0 }
 0x5ed   :  { %v6118_v54 = vmax.f32 %v8949_v61, 0.0  ;;  %8889 = vmatmul.mubr.msk.bf16.gmra.mrb[144].mxu0 %vm288_vm1, %v5525_v38 }
 0x5ee   :  { %8892 = vmatprep.mubr.msk.bf16.mxu0 %vm10245_vm2, %v10244_v2 }
 0x5ef   :  { %v6189_v47 = vpack.c.bf16 %v6118_v54, %v6117_v25 }
 0x5f0   :  { %v5772_v27 = vpop.f32.mrb[40].mxu0 }
 0x5f1   :  { %v8950_v49 = vadd.f32 %v5772_v27, %v13115_v62  ;;  %v8786_v24 = vpop.f32.mrb[41].mxu0  ;;  %7363 = vmatprep.subr.bf16.mxu1 %v6189_v47  ;;  %v5484_v62 = vld [vmem:[%s13893_s1 + $0x286] sm:$0xff]  ;;  %v5487_v47 = vld [vmem:[%s13893_s1 + $0x29e] sm:$0xff] }
 0x5f2   :  { %v5775_v16 = vpop.f32.mrb[42].mxu0  ;;  %7364 = vmatpush3.bf16.msra.mxu1 %v13506_v32  ;;  %v5527_v61 = vpack.c.bf16 %v5485_v41, %v5484_v62 }
 0x5f3   :  { %v8951_v44 = vadd.f32 %v5775_v16, %v13117_v33  ;;  %v8787_v18 = vpop.f32.mrb[43].mxu0  ;;  %v6119_v34 = vmax.f32 %v8950_v49, 0.0 }
 0x5f5   :  { %v6120_v45 = vmax.f32 %v8951_v44, 0.0  ;;  %8893 = vmatmul.mubr.msk.bf16.gmra.mrb[148].mxu0 %vm288_vm1, %v5526_v5 }
 0x5f6   :  { %8896 = vmatprep.mubr.msk.bf16.mxu0 %vm10245_vm2, %v10244_v2 }
 0x5f7   :  { %v6190_v38 = vpack.c.bf16 %v6120_v45, %v6119_v34 }
 0x5f8   :  { %v5780_v32 = vpop.f32.mrb[44].mxu0 }
 0x5f9   :  { %v8952_v33 = vadd.f32 %v5780_v32, %v13132_v15  ;;  %v8790_v28 = vpop.f32.mrb[45].mxu0  ;;  %7365 = vmatprep.subr.bf16.mxu1 %v6190_v38  ;;  %v5486_v15 = vld [vmem:[%s13893_s1 + $0x296] sm:$0xff] }
 0x5fa   :  { %v5783_v14 = vpop.f32.mrb[46].mxu0  ;;  %7366 = vmatpush3.bf16.msra.mxu1 %v13519_v59  ;;  %v5528_v24 = vpack.c.bf16 %v5487_v47, %v5486_v15 }
 0x5fb   :  { %v8953_v25 = vadd.f32 %v5783_v14, %v13134_v43  ;;  %v8791_v54 = vpop.f32.mrb[47].mxu0  ;;  %v6121_v11 = vmax.f32 %v8952_v33, 0.0 }
 0x5fd   :  { %v6122_v42 = vmax.f32 %v8953_v25, 0.0  ;;  %8897 = vmatmul.mubr.msk.bf16.gmra.mrb[152].mxu0 %vm288_vm1, %v5527_v61 }
 0x5fe   :  { %8900 = vmatprep.mubr.msk.bf16.mxu0 %vm10245_vm2, %v10244_v2 }
 0x5ff   :  { %v6191_v27 = vpack.c.bf16 %v6122_v42, %v6121_v11 }
 0x600   :  { %v5788_v59 = vpop.f32.mrb[48].mxu0 }
 0x601   :  { %v8954_v43 = vadd.f32 %v5788_v59, %v13152_v51  ;;  %v8794_v49 = vpop.f32.mrb[49].mxu0  ;;  %7367 = vmatprep.subr.bf16.mxu1 %v6191_v27  ;;  %v5488_v51 = vld [vmem:[%s13893_s1 + $0x2a6] sm:$0xff] }
 0x602   :  { %v5791_v5 = vpop.f32.mrb[50].mxu0  ;;  %7368 = vmatpush3.bf16.msra.mxu1 %v13532_v37  ;;  %v5529_v32 = vpack.c.bf16 %v5488_v51, %v5488_v51 }
 0x603   :  { %v8955_v16 = vadd.f32 %v5791_v5, %v13155_v22  ;;  %v8795_v44 = vpop.f32.mrb[51].mxu0  ;;  %v6123_v18 = vmax.f32 %v8954_v43, 0.0 }
 0x605   :  { %v6124_v34 = vmax.f32 %v8955_v16, 0.0  ;;  %8901 = vmatmul.mubr.msk.bf16.gmra.mrb[156].mxu0 %vm288_vm1, %v5528_v24 }
 0x606   :  { %8904 = vmatprep.mubr.msk.bf16.mxu0 %vm10245_vm2, %v10244_v2 }
 0x607   :  { %v6192_v45 = vpack.c.bf16 %v6124_v34, %v6123_v18 }
 0x608   :  { %v13663_v62 = vpop.f32.mrb[112].mxu1  ;;  %v5796_v41 = vpop.f32.mrb[52].mxu0 }
 0x609   :  { %v8956_v37 = vadd.f32 %v5796_v41, %v13172_v50  ;;  %v8194_v38 = vpop.f32.mrb[113].mxu1  ;;  %v8798_v22 = vpop.f32.mrb[53].mxu0  ;;  %7369 = vmatprep.subr.bf16.mxu1 %v6192_v45 }
 0x60a   :  { %v13666_v33 = vpop.f32.mrb[114].mxu1  ;;  %v5799_v28 = vpop.f32.mrb[54].mxu0  ;;  %7370 = vmatpush3.bf16.msra.mxu1 %v13545_v63 }
 0x60b   :  { %v8957_v61 = vadd.f32 %v5799_v28, %v13174_v9  ;;  %v8195_v14 = vpop.f32.mrb[115].mxu1  ;;  %v8799_v25 = vpop.f32.mrb[55].mxu0  ;;  %v6125_v54 = vmax.f32 %v8956_v37, 0.0 }
 0x60d   :  { %v6126_v11 = vmax.f32 %v8957_v61, 0.0  ;;  %8905 = vmatmul.mubr.msk.bf16.gmra.mrb[160].mxu0 %vm288_vm1, %v5529_v32 }
 0x60f   :  { %v6193_v42 = vpack.c.bf16 %v6126_v11, %v6125_v54  ;;  %v13690_v11 = vrot.slane %v13601_v19, %v13591_v58 }
 0x610   :  { %v13671_v15 = vpop.f32.mrb[116].mxu1  ;;  %v5804_v50 = vpop.f32.mrb[56].mxu0 }
 0x611   :  { %v8958_v47 = vadd.f32 %v5804_v50, %v13194_v57  ;;  %v8198_v27 = vpop.f32.mrb[117].mxu1  ;;  %v8802_v59 = vpop.f32.mrb[57].mxu0  ;;  %7371 = vmatprep.subr.bf16.mxu1 %v6193_v42 }
 0x612   :  { %v13674_v43 = vpop.f32.mrb[118].mxu1  ;;  %v5807_v63 = vpop.f32.mrb[58].mxu0  ;;  %7372 = vmatpush3.bf16.msra.mxu1 %v13558_v0  ;;  %v6269_v27 = vcombine.high %v13615_v46, %v13615_v46 }
 0x613   :  { %v8959_v9 = vadd.f32 %v5807_v63, %v13196_v6  ;;  %v8199_v49 = vpop.f32.mrb[119].mxu1  ;;  %v8803_v24 = vpop.f32.mrb[59].mxu0  ;;  %v6127_v5 = vmax.f32 %v8958_v47, 0.0 }
 0x615   :  { %v6128_v16 = vmax.f32 %v8959_v9, 0.0 }
 0x617   :  { %v6194_v44 = vpack.c.bf16 %v6128_v16, %v6127_v5 }
 0x618   :  { %v13678_v18 = vpop.f32.mrb[120].mxu1  ;;  %v5812_v34 = vpop.f32.mrb[60].mxu0 }
 0x619   :  { %v8960_v57 = vadd.f32 %v5812_v34, %v13216_v35  ;;  %v8202_v51 = vpop.f32.mrb[121].mxu1  ;;  %v8806_v45 = vpop.f32.mrb[61].mxu0  ;;  %7373 = vmatprep.subr.bf16.mxu1 %v6194_v44 }
 0x61a   :  { %v13681_v41 = vpop.f32.mrb[122].mxu1  ;;  %v5815_v37 = vpop.f32.mrb[62].mxu0  ;;  %7374 = vmatpush3.bf16.msra.mxu1 %v13571_v52 }
 0x61b   :  { %v8961_v6 = vadd.f32 %v5815_v37, %v13218_v13  ;;  %v8203_v0 = vpop.f32.mrb[123].mxu1  ;;  %v8807_v38 = vpop.f32.mrb[63].mxu0  ;;  %v6129_v22 = vmax.f32 %v8960_v57, 0.0 }
 0x61d   :  { %v6130_v32 = vmax.f32 %v8961_v6, 0.0 }
 0x61f   :  { %v6195_v28 = vpack.c.bf16 %v6130_v32, %v6129_v22 }
 0x620   :  { %v13685_v61 = vpop.f32.mrb[124].mxu1  ;;  %v5820_v14 = vpop.f32.mrb[64].mxu0 }
 0x621   :  { %v8962_v35 = vadd.f32 %v5820_v14, %v13238_v53  ;;  %v8206_v25 = vpop.f32.mrb[125].mxu1  ;;  %v8810_v54 = vpop.f32.mrb[65].mxu0  ;;  %7375 = vmatprep.subr.bf16.mxu1 %v6195_v28 }
 0x622   :  { %v13692_v52 = vpop.f32.mrb[126].mxu1  ;;  %v5823_v13 = vpop.f32.mrb[66].mxu0  ;;  %7376 = vmatpush3.bf16.msra.mxu1 %v13584_v36 }
 0x623   :  { %v8963_v42 = vadd.f32 %v5823_v13, %v13240_v26  ;;  %v8207_v50 = vpop.f32.mrb[127].mxu1  ;;  %v8811_v47 = vpop.f32.mrb[67].mxu0  ;;  %v6131_v53 = vmax.f32 %v8962_v35, 0.0 }
 0x625   :  { %v6132_v59 = vmax.f32 %v8963_v42, 0.0  ;;  %6314 = vmatmul.mubr.bf16.vlgmr.msra.gmra.mrb[164].mxu1 %v13690_v11 }
 0x626   :  { %6353 = vmatprep.mubr.bf16.mxu1 %v6269_v27 }
 0x627   :  { %v13699_v63 = vpack.c.bf16 %v6132_v59, %v6131_v53 }
 0x628   :  { %v13701_v19 = vpop.f32.mrb[128].mxu1  ;;  %v5828_v9 = vpop.f32.mrb[68].mxu0 }
 0x629   :  { %v8964_v49 = vadd.f32 %v5828_v9, %v13260_v55  ;;  %v8210_v36 = vpop.f32.mrb[129].mxu1  ;;  %v8814_v24 = vpop.f32.mrb[69].mxu0 }
 0x62a   :  { %v13704_v26 = vpop.f32.mrb[130].mxu1  ;;  %v5831_v5 = vpop.f32.mrb[70].mxu0 }
 0x62b   :  { %v8965_v16 = vadd.f32 %v5831_v5, %v13262_v31  ;;  %v8211_v46 = vpop.f32.mrb[131].mxu1  ;;  %v8815_v44 = vpop.f32.mrb[71].mxu0  ;;  %v6133_v34 = vmax.f32 %v8964_v49, 0.0 }
 0x62d   :  { %v6134_v57 = vmax.f32 %v8965_v16, 0.0 }
 0x62f   :  { %v13707_v51 = vpack.c.bf16 %v6134_v57, %v6133_v34 }
 0x630   :  { %v13709_v45 = vpop.f32.mrb[132].mxu1  ;;  %v5836_v37 = vpop.f32.mrb[72].mxu0 }
 0x631   :  { %v8966_v6 = vadd.f32 %v5836_v37, %v13282_v17  ;;  %v8214_v0 = vpop.f32.mrb[133].mxu1  ;;  %v8818_v55 = vpop.f32.mrb[73].mxu0 }
 0x632   :  { %v13712_v38 = vpop.f32.mrb[134].mxu1  ;;  %v5839_v22 = vpop.f32.mrb[74].mxu0 }
 0x633   :  { %v8967_v32 = vadd.f32 %v5839_v22, %v13284_v30  ;;  %v8215_v28 = vpop.f32.mrb[135].mxu1  ;;  %v8819_v31 = vpop.f32.mrb[75].mxu0  ;;  %v6135_v14 = vmax.f32 %v8966_v6, 0.0 }
 0x635   :  { %v6136_v35 = vmax.f32 %v8967_v32, 0.0 }
 0x637   :  { %v13715_v25 = vpack.c.bf16 %v6136_v35, %v6135_v14 }
 0x638   :  { %v13717_v54 = vpop.f32.mrb[136].mxu1  ;;  %v5844_v13 = vpop.f32.mrb[76].mxu0 }
 0x639   :  { %v8968_v42 = vadd.f32 %v5844_v13, %v13304_v60  ;;  %v8218_v50 = vpop.f32.mrb[137].mxu1  ;;  %v8822_v17 = vpop.f32.mrb[77].mxu0 }
 0x63a   :  { %v13720_v47 = vpop.f32.mrb[138].mxu1  ;;  %v5847_v27 = vpop.f32.mrb[78].mxu0 }
 0x63b   :  { %v8969_v53 = vadd.f32 %v5847_v27, %v13306_v48  ;;  %v8219_v59 = vpop.f32.mrb[139].mxu1  ;;  %v8823_v30 = vpop.f32.mrb[79].mxu0  ;;  %v6137_v9 = vmax.f32 %v8968_v42, 0.0 }
 0x63d   :  { %v6138_v49 = vmax.f32 %v8969_v53, 0.0 }
 0x63f   :  { %v13723_v36 = vpack.c.bf16 %v6138_v49, %v6137_v9 }
 0x640   :  { %v13725_v24 = vpop.f32.mrb[140].mxu1  ;;  %v5852_v5 = vpop.f32.mrb[80].mxu0 }
 0x641   :  { %v8970_v16 = vadd.f32 %v5852_v5, %v13326_v20  ;;  %v8222_v46 = vpop.f32.mrb[141].mxu1  ;;  %v8826_v60 = vpop.f32.mrb[81].mxu0 }
 0x642   :  { %v13728_v44 = vpop.f32.mrb[142].mxu1  ;;  %v5855_v34 = vpop.f32.mrb[82].mxu0 }
 0x643   :  { %v8971_v57 = vadd.f32 %v5855_v34, %v13328_v7  ;;  %v8223_v37 = vpop.f32.mrb[143].mxu1  ;;  %v8827_v48 = vpop.f32.mrb[83].mxu0  ;;  %v6139_v6 = vmax.f32 %v8970_v16, 0.0 }
 0x645   :  { %v6140_v0 = vmax.f32 %v8971_v57, 0.0 }
 0x647   :  { %v13731_v55 = vpack.c.bf16 %v6140_v0, %v6139_v6 }
 0x648   :  { %v13733_v22 = vpop.f32.mrb[144].mxu1  ;;  %v5860_v32 = vpop.f32.mrb[84].mxu0 }
 0x649   :  { %v8972_v28 = vadd.f32 %v5860_v32, %v13348_v39  ;;  %v8226_v31 = vpop.f32.mrb[145].mxu1  ;;  %v8830_v20 = vpop.f32.mrb[85].mxu0 }
 0x64a   :  { %v13736_v14 = vpop.f32.mrb[146].mxu1  ;;  %v5863_v35 = vpop.f32.mrb[86].mxu0 }
 0x64b   :  { %v8973_v13 = vadd.f32 %v5863_v35, %v13350_v1  ;;  %v8227_v42 = vpop.f32.mrb[147].mxu1  ;;  %v8831_v7 = vpop.f32.mrb[87].mxu0  ;;  %v6141_v50 = vmax.f32 %v8972_v28, 0.0 }
 0x64d   :  { %v6142_v17 = vmax.f32 %v8973_v13, 0.0 }
 0x64f   :  { %v13739_v27 = vpack.c.bf16 %v6142_v17, %v6141_v50 }
 0x650   :  { %v13741_v53 = vpop.f32.mrb[148].mxu1  ;;  %v5868_v59 = vpop.f32.mrb[88].mxu0 }
 0x651   :  { %v8974_v30 = vadd.f32 %v5868_v59, %v13370_v40  ;;  %v8230_v9 = vpop.f32.mrb[149].mxu1  ;;  %v8834_v39 = vpop.f32.mrb[89].mxu0 }
 0x652   :  { %v13744_v49 = vpop.f32.mrb[150].mxu1  ;;  %v5871_v5 = vpop.f32.mrb[90].mxu0 }
 0x653   :  { %v8975_v16 = vadd.f32 %v5871_v5, %v13372_v56  ;;  %v8231_v46 = vpop.f32.mrb[151].mxu1  ;;  %v8835_v1 = vpop.f32.mrb[91].mxu0  ;;  %v6143_v60 = vmax.f32 %v8974_v30, 0.0 }
 0x655   :  { %v6144_v34 = vmax.f32 %v8975_v16, 0.0 }
 0x657   :  { %v13747_v57 = vpack.c.bf16 %v6144_v34, %v6143_v60 }
 0x658   :  { %v13749_v37 = vpop.f32.mrb[152].mxu1  ;;  %v5876_v48 = vpop.f32.mrb[92].mxu0 }
 0x659   :  { %v8976_v6 = vadd.f32 %v5876_v48, %v13392_v12  ;;  %v8234_v0 = vpop.f32.mrb[153].mxu1  ;;  %v8838_v40 = vpop.f32.mrb[93].mxu0 }
 0x65a   :  { %v13752_v32 = vpop.f32.mrb[154].mxu1  ;;  %v5879_v28 = vpop.f32.mrb[94].mxu0 }
 0x65b   :  { %v8977_v31 = vadd.f32 %v5879_v28, %v13394_v21  ;;  %v8235_v20 = vpop.f32.mrb[155].mxu1  ;;  %v8839_v56 = vpop.f32.mrb[95].mxu0  ;;  %v6145_v35 = vmax.f32 %v8976_v6, 0.0  ;;  %v13905_v28 = vld [vmem:[#allocation11_spill] sm:$0xff] }
 0x65d   :  { %v6146_v13 = vmax.f32 %v8977_v31, 0.0 }
 0x65f   :  { %v13755_v42 = vpack.c.bf16 %v6146_v13, %v6145_v35 }
 0x660   :  { %v13757_v7 = vpop.f32.mrb[156].mxu1  ;;  %v5884_v50 = vpop.f32.mrb[96].mxu0 }
 0x661   :  { %v8978_v17 = vadd.f32 %v5884_v50, %v13414_v29  ;;  %v8238_v59 = vpop.f32.mrb[157].mxu1  ;;  %v8842_v12 = vpop.f32.mrb[97].mxu0 }
 0x662   :  { %v13760_v30 = vpop.f32.mrb[158].mxu1  ;;  %v5887_v9 = vpop.f32.mrb[98].mxu0 }
 0x663   :  { %v8979_v39 = vadd.f32 %v5887_v9, %v13416_v4  ;;  %v8239_v5 = vpop.f32.mrb[159].mxu1  ;;  %v8843_v21 = vpop.f32.mrb[99].mxu0  ;;  %v6147_v16 = vmax.f32 %v8978_v17, 0.0  ;;  %v13906_v17 = vld [vmem:[#allocation12_spill] sm:$0xff]  ;;  %v13907_v9 = vld [vmem:[#allocation13_spill] sm:$0xff] }
 0x665   :  { %v6148_v46 = vmax.f32 %v8979_v39, 0.0 }
 0x667   :  { %v6204_v1 = vpack.c.bf16 %v6148_v46, %v6147_v16 }
 0x668   :  { %v13763_v60 = vpop.f32.mrb[160].mxu1  ;;  %v5892_v34 = vpop.f32.mrb[100].mxu0 }
 0x669   :  { %v8980_v48 = vadd.f32 %v5892_v34, %v13436_v23  ;;  %v8242_v6 = vpop.f32.mrb[161].mxu1  ;;  %v8846_v0 = vpop.f32.mrb[101].mxu0  ;;  %7383 = vmatprep.subr.bf16.mxu1 %v6204_v1  ;;  %v13908_v1 = vld [vmem:[#allocation14_spill] sm:$0xff] }
 0x66a   :  { %v3251_v29 = vpop.f32.mrb[162].mxu1  ;;  %v5895_v40 = vpop.f32.mrb[102].mxu0  ;;  %7384 = vmatpush3.bf16.msra.mxu1 %v13699_v63  ;;  %v13909_v0 = vld [vmem:[#allocation15_spill] sm:$0xff] }
 0x66b   :  { %v8981_v31 = vadd.f32 %v5895_v40, %v13905_v28  ;;  %v8243_v4 = vpop.f32.mrb[163].mxu1  ;;  %v8847_v20 = vpop.f32.mrb[103].mxu0  ;;  %v6149_v56 = vmax.f32 %v8980_v48, 0.0 }
 0x66d   :  { %v6150_v35 = vmax.f32 %v8981_v31, 0.0 }
 0x66f   :  { %v6205_v13 = vpack.c.bf16 %v6150_v35, %v6149_v56 }
 0x670   :  { %v5900_v50 = vpop.f32.mrb[104].mxu0 }
 0x671   :  { %v8982_v59 = vadd.f32 %v5900_v50, %v13906_v17  ;;  %v8850_v12 = vpop.f32.mrb[105].mxu0  ;;  %7385 = vmatprep.subr.bf16.mxu1 %v6205_v13 }
 0x672   :  { %v5903_v23 = vpop.f32.mrb[106].mxu0  ;;  %7386 = vmatpush3.bf16.msra.mxu1 %v13707_v51 }
 0x673   :  { %v8983_v39 = vadd.f32 %v5903_v23, %v13907_v9  ;;  %v8851_v5 = vpop.f32.mrb[107].mxu0  ;;  %v6151_v21 = vmax.f32 %v8982_v59, 0.0 }
 0x675   :  { %v6152_v63 = vmax.f32 %v8983_v39, 0.0 }
 0x677   :  { %v6206_v16 = vpack.c.bf16 %v6152_v63, %v6151_v21 }
 0x678   :  { %v5908_v46 = vpop.f32.mrb[108].mxu0 }
 0x679   :  { %v8984_v34 = vadd.f32 %v5908_v46, %v13908_v1  ;;  %v8854_v48 = vpop.f32.mrb[109].mxu0  ;;  %7387 = vmatprep.subr.bf16.mxu1 %v6206_v16 }
 0x67a   :  { %v5911_v6 = vpop.f32.mrb[110].mxu0  ;;  %7388 = vmatpush3.bf16.msra.mxu1 %v13715_v25 }
 0x67b   :  { %v8985_v29 = vadd.f32 %v5911_v6, %v13909_v0  ;;  %v8855_v40 = vpop.f32.mrb[111].mxu0  ;;  %v6153_v28 = vmax.f32 %v8984_v34, 0.0 }
 0x67d   :  { %v6154_v31 = vmax.f32 %v8985_v29, 0.0 }
 0x67f   :  { %v6207_v51 = vpack.c.bf16 %v6154_v31, %v6153_v28 }
 0x680   :  { %v5916_v4 = vpop.f32.mrb[112].mxu0 }
 0x681   :  { %v8986_v20 = vadd.f32 %v5916_v4, %v13663_v62  ;;  %v8858_v56 = vpop.f32.mrb[113].mxu0  ;;  %7389 = vmatprep.subr.bf16.mxu1 %v6207_v51 }
 0x682   :  { %v5919_v35 = vpop.f32.mrb[114].mxu0  ;;  %7390 = vmatpush3.bf16.msra.mxu1 %v13723_v36 }
 0x683   :  { %v8987_v13 = vadd.f32 %v5919_v35, %v13666_v33  ;;  %v8859_v50 = vpop.f32.mrb[115].mxu0  ;;  %v6155_v17 = vmax.f32 %v8986_v20, 0.0 }
 0x685   :  { %v6156_v59 = vmax.f32 %v8987_v13, 0.0 }
 0x687   :  { %v6208_v25 = vpack.c.bf16 %v6156_v59, %v6155_v17  ;;  %v10247_v17 = vmov 0  }
 0x688   :  { %v5924_v12 = vpop.f32.mrb[116].mxu0 }
 0x689   :  { %v8988_v23 = vadd.f32 %v5924_v12, %v13671_v15  ;;  %v8862_v9 = vpop.f32.mrb[117].mxu0  ;;  %7391 = vmatprep.subr.bf16.mxu1 %v6208_v25 }
 0x68a   :  { %v5927_v39 = vpop.f32.mrb[118].mxu0  ;;  %7392 = vmatpush3.bf16.msra.mxu1 %v13731_v55 }
 0x68b   :  { %v8989_v62 = vadd.f32 %v5927_v39, %v13674_v43  ;;  %v8863_v5 = vpop.f32.mrb[119].mxu0  ;;  %v6157_v21 = vmax.f32 %v8988_v23, 0.0  ;;  %v6223_v43 = vcombine.high %v13596_v3, %v13596_v3 }
 0x68d   :  { %v6158_v63 = vmax.f32 %v8989_v62, 0.0  ;;  %v13788_v28 = vrot.slane %v6223_v43, %v13591_v58 }
 0x68f   :  { %v6209_v36 = vpack.c.bf16 %v6158_v63, %v6157_v21  ;;  %v6239_v3 = vcombine.high %v13788_v28, %v13788_v28 }
 0x690   :  { %v5932_v16 = vpop.f32.mrb[120].mxu0 }
 0x691   :  { %v8990_v33 = vadd.f32 %v5932_v16, %v13678_v18  ;;  %v8866_v46 = vpop.f32.mrb[121].mxu0  ;;  %7393 = vmatprep.subr.bf16.mxu1 %v6209_v36 }
 0x692   :  { %v5935_v1 = vpop.f32.mrb[122].mxu0  ;;  %7394 = vmatpush3.bf16.msra.mxu1 %v13739_v27 }
 0x693   :  { %v8991_v15 = vadd.f32 %v5935_v1, %v13681_v41  ;;  %v8867_v34 = vpop.f32.mrb[123].mxu0  ;;  %v6159_v48 = vmax.f32 %v8990_v33, 0.0 }
 0x695   :  { %v6160_v6 = vmax.f32 %v8991_v15, 0.0 }
 0x697   :  { %v6210_v55 = vpack.c.bf16 %v6160_v6, %v6159_v48 }
 0x698   :  { %v5940_v0 = vpop.f32.mrb[124].mxu0 }
 0x699   :  { %v8992_v29 = vadd.f32 %v5940_v0, %v13685_v61  ;;  %v8870_v40 = vpop.f32.mrb[125].mxu0  ;;  %7395 = vmatprep.subr.bf16.mxu1 %v6210_v55 }
 0x69a   :  { %v5943_v18 = vpop.f32.mrb[126].mxu0  ;;  %7396 = vmatpush3.bf16.msra.mxu1 %v13747_v57  ;;  %v6268_v57 = vcombine.high %v13690_v11, %v13690_v11 }
 0x69b   :  { %v8993_v41 = vadd.f32 %v5943_v18, %v13692_v52  ;;  %v8871_v27 = vpop.f32.mrb[127].mxu0  ;;  %v6161_v31 = vmax.f32 %v8992_v29, 0.0  ;;  %v6267_v52 = vrot.slane %v6239_v3, %v13591_v58 }
 0x69d   :  { %v6162_v51 = vmax.f32 %v8993_v41, 0.0 }
 0x69f   :  { %v6211_v4 = vpack.c.bf16 %v6162_v51, %v6161_v31 }
 0x6a0   :  { %v5948_v20 = vpop.f32.mrb[128].mxu0 }
 0x6a1   :  { %v8994_v61 = vadd.f32 %v5948_v20, %v13701_v19  ;;  %v8874_v56 = vpop.f32.mrb[129].mxu0  ;;  %7397 = vmatprep.subr.bf16.mxu1 %v6211_v4 }
 0x6a2   :  { %v5951_v35 = vpop.f32.mrb[130].mxu0  ;;  %7398 = vmatpush3.bf16.msra.mxu1 %v13755_v42 }
 0x6a3   :  { %v8995_v13 = vadd.f32 %v5951_v35, %v13704_v26  ;;  %v8875_v50 = vpop.f32.mrb[131].mxu0  ;;  %6361 = vmatprep.subr.bf16.mxu1 %v10247_v17  ;;  %v6163_v59 = vmax.f32 %v8994_v61, 0.0 }
 0x6a5   :  { %v6164_v25 = vmax.f32 %v8995_v13, 0.0  ;;  %6354 = vmatmul.mubr.bf16.vlgmr.msra.gmra.mrb[168].mxu1 %v6268_v57 }
 0x6a6   :  { %6971 = vmatprep.mubr.msk.bf16.mxu1 %vm288_vm1, %v6267_v52 }
 0x6a7   :  { %v6212_v19 = vpack.c.bf16 %v6164_v25, %v6163_v59 }
 0x6a8   :  { %v5956_v12 = vpop.f32.mrb[132].mxu0 }
 0x6a9   :  { %v8996_v11 = vadd.f32 %v5956_v12, %v13709_v45  ;;  %v8878_v23 = vpop.f32.mrb[133].mxu0  ;;  %6362 = vmatpush1.bf16.msra.mxu1 %v6212_v19 }
 0x6aa   :  { %v5959_v42 = vpop.f32.mrb[134].mxu0  ;;  %6363 = vmatprep.subr.bf16.mxu1 %v10247_v17 }
 0x6ab   :  { %v8997_v26 = vadd.f32 %v5959_v42, %v13712_v38  ;;  %v8879_v9 = vpop.f32.mrb[135].mxu0  ;;  %v6165_v39 = vmax.f32 %v8996_v11, 0.0 }
 0x6ad   :  { %v6166_v62 = vmax.f32 %v8997_v26, 0.0 }
 0x6af   :  { %v6213_v5 = vpack.c.bf16 %v6166_v62, %v6165_v39 }
 0x6b0   :  { %v5964_v21 = vpop.f32.mrb[136].mxu0 }
 0x6b1   :  { %v8998_v63 = vadd.f32 %v5964_v21, %v13717_v54  ;;  %v8882_v36 = vpop.f32.mrb[137].mxu0  ;;  %6364 = vmatpush1.bf16.msra.mxu1 %v6213_v5 }
 0x6b2   :  { %v5967_v16 = vpop.f32.mrb[138].mxu0  ;;  %6365 = vmatprep.subr.bf16.mxu1 %v10247_v17 }
 0x6b3   :  { %v8999_v45 = vadd.f32 %v5967_v16, %v13720_v47  ;;  %v8883_v33 = vpop.f32.mrb[139].mxu0  ;;  %v6167_v46 = vmax.f32 %v8998_v63, 0.0 }
 0x6b5   :  { %v6168_v1 = vmax.f32 %v8999_v45, 0.0 }
 0x6b7   :  { %v6214_v15 = vpack.c.bf16 %v6168_v1, %v6167_v46 }
 0x6b8   :  { %v5972_v34 = vpop.f32.mrb[140].mxu0 }
 0x6b9   :  { %v9000_v38 = vadd.f32 %v5972_v34, %v13725_v24  ;;  %v8886_v48 = vpop.f32.mrb[141].mxu0  ;;  %6366 = vmatpush1.bf16.msra.mxu1 %v6214_v15  ;;  %v10169_v34 = vld [vmem:[%s13896_s4] sm:$0xff]  }
 0x6ba   :  { %v5975_v6 = vpop.f32.mrb[142].mxu0  ;;  %6367 = vmatprep.subr.bf16.mxu1 %v10247_v17  ;;  %v10173_v48 = vld [vmem:[%s13896_s4 + $0x20] sm:$0xff]  }
 0x6bb   :  { %v9001_v54 = vadd.f32 %v5975_v6, %v13728_v44  ;;  %v8887_v43 = vpop.f32.mrb[143].mxu0  ;;  %v6169_v55 = vmax.f32 %v9000_v38, 0.0  ;;  %v10172_v38 = vld [vmem:[%s13896_s4 + $0x18] sm:$0xff]   ;;  %v10174_v6 = vld [vmem:[%s13896_s4 + $0x28] sm:$0xff]  }
 0x6bc   :  { %v10176_v43 = vld [vmem:[%s13896_s4 + $0x38] sm:$0xff]  }
 0x6bd   :  { %v6170_v0 = vmax.f32 %v9001_v54, 0.0  ;;  %v10175_v54 = vld [vmem:[%s13896_s4 + $0x30] sm:$0xff]  }
 0x6bf   :  { %v6215_v29 = vpack.c.bf16 %v6170_v0, %v6169_v55 }
 0x6c0   :  { %v5980_v40 = vpop.f32.mrb[144].mxu0 }
 0x6c1   :  { %v9002_v47 = vadd.f32 %v5980_v40, %v13733_v22  ;;  %v8890_v18 = vpop.f32.mrb[145].mxu0  ;;  %6368 = vmatpush1.bf16.msra.mxu1 %v6215_v29 }
 0x6c2   :  { %v5983_v41 = vpop.f32.mrb[146].mxu0  ;;  %6369 = vmatprep.subr.bf16.mxu1 %v10247_v17 }
 0x6c3   :  { %v9003_v24 = vadd.f32 %v5983_v41, %v13736_v14  ;;  %v8891_v27 = vpop.f32.mrb[147].mxu0  ;;  %v6171_v31 = vmax.f32 %v9002_v47, 0.0 }
 0x6c5   :  { %v6172_v51 = vmax.f32 %v9003_v24, 0.0 }
 0x6c7   :  { %v6216_v3 = vpack.c.bf16 %v6172_v51, %v6171_v31 }
 0x6c8   :  { %v5988_v4 = vpop.f32.mrb[148].mxu0 }
 0x6c9   :  { %v9004_v44 = vadd.f32 %v5988_v4, %v13741_v53  ;;  %v8894_v20 = vpop.f32.mrb[149].mxu0  ;;  %6370 = vmatpush1.bf16.msra.mxu1 %v6216_v3  ;;  %v6520_v4 = vstv %s6519_s10 }
 0x6ca   :  { %v5991_v61 = vpop.f32.mrb[150].mxu0  ;;  %6371 = vmatprep.subr.bf16.mxu1 %v10247_v17  ;;  %v6524_v20 = vstv %s6981_s11 }
 0x6cb   :  { %v9005_v22 = vadd.f32 %v5991_v61, %v13744_v49  ;;  %v8895_v56 = vpop.f32.mrb[151].mxu0  ;;  %v6173_v57 = vmax.f32 %v9004_v44, 0.0  ;;  %v6521_v44 = vsel %vm6518_vm3, %v6520_v4, 4294967295  ;;  %v6515_v61 = vand.u32 127, %v6227_v8 }
 0x6cc   :  { %v6972_v56 = vld [vmem:[%s13897_s5] ss:$0 sm:$0xff]  ;;  %s10248_s5 = smov [#allocation5]  }
 0x6cd   :  { %v6174_v35 = vmax.f32 %v9005_v22, 0.0  ;;  %v6525_v22 = vsel %vm6522_vm4, %v6524_v20, %v6521_v44  ;;  %vm6526_vm6 = vcmp.lt.s32.totalorder %v6515_v61, 10  ;;  %s6571_s13 = sshll.u32 %s10248_s5, 4  ;;  %s6572_s13 = int_to_ptr.vmem [resolvable:$true] %s6571_s13 }
 0x6ce   :  { %vm6541_vm5 = vcmp.eq.s32.totalorder %v6515_v61, %v6525_v22  ;;  %s10193_s14 = scalar_lea.vmem %s6572_s13, 32  ;;  %p10198_p6 = scmp.lt.s32.totalorder %s6572_s13, %s6572_s13 }
 0x6cf   :  { %v6217_v52 = vpack.c.bf16 %v6174_v35, %v6173_v57  ;;  %v6982_v35 = vsel %vm6541_vm5, 1.0, %v10244_v2  ;;  %p10194_p5 = scmp.ne.s32.totalorder %s6572_s13, %s10193_s14  ;;  %p10199_p7 = scmp.lt.s32.totalorder %s10193_s14, %s10193_s14 }
 0x6d0   :  { %v5996_v13 = vpop.f32.mrb[152].mxu0 }
 0x6d1   :  { %v9006_v14 = vadd.f32 %v5996_v13, %v13749_v37  ;;  %v8898_v50 = vpop.f32.mrb[153].mxu0  ;;  %6372 = vmatpush1.bf16.msra.mxu1 %v6217_v52  ;;  %p10200_p8 = por %p10199_p7, %p10198_p6 }
 0x6d2   :  { %v5999_v59 = vpop.f32.mrb[154].mxu0  ;;  %6373 = vmatprep.subr.bf16.mxu1 %v10247_v17 }
 0x6d3   :  { %v9007_v53 = vadd.f32 %v5999_v59, %v13752_v32  ;;  %v8899_v25 = vpop.f32.mrb[155].mxu0  ;;  %v6175_v19 = vmax.f32 %v9006_v14, 0.0  ;;  %p10201_p9 = pnand %p10200_p8, %p10194_p5 }
 0x6d5   :  { %v6176_v12 = vmax.f32 %v9007_v53, 0.0 }
 0x6d7   :  { %v6218_v11 = vpack.c.bf16 %v6176_v12, %v6175_v19 }
 0x6d8   :  { %v6004_v23 = vpop.f32.mrb[156].mxu0 }
 0x6d9   :  { %v9008_v49 = vadd.f32 %v6004_v23, %v13757_v7  ;;  %v8902_v42 = vpop.f32.mrb[157].mxu0  ;;  %6374 = vmatpush1.bf16.msra.mxu1 %v6218_v11 }
 0x6da   :  { %v6007_v26 = vpop.f32.mrb[158].mxu0  ;;  %6375 = vmatprep.subr.bf16.mxu1 %v10247_v17 }
 0x6db   :  { %v9009_v37 = vadd.f32 %v6007_v26, %v13760_v30  ;;  %v8903_v9 = vpop.f32.mrb[159].mxu0  ;;  %v6177_v39 = vmax.f32 %v9008_v49, 0.0  ;;  %v6253_v30 = vrot.slane %v13788_v28, %v13591_v58  ;;  %v10170_v58 = vld [vmem:[%s13896_s4 + $0x8] sm:$0xff]   ;;  %v10171_v28 = vld [vmem:[%s13896_s4 + $0x10] sm:$0xff]  }
 0x6dd   :  { %v6178_v62 = vmax.f32 %v9009_v37, 0.0 }
 0x6df   :  { %v6219_v5 = vpack.c.bf16 %v6178_v62, %v6177_v39 }
 0x6e0   :  { %v6012_v21 = vpop.f32.mrb[160].mxu0 }
 0x6e1   :  { %v9010_v32 = vadd.f32 %v6012_v21, %v13763_v60  ;;  %v8906_v63 = vpop.f32.mrb[161].mxu0  ;;  %6376 = vmatpush1.bf16.msra.mxu1 %v6219_v5 }
 0x6e2   :  { %v6015_v36 = vpop.f32.mrb[162].mxu0  ;;  %6377 = vmatprep.subr.bf16.mxu1 %v10247_v17 }
 0x6e3   :  { %v6179_v7 = vmax.f32 %v9010_v32, 0.0  ;;  %v8907_v16 = vpop.f32.mrb[163].mxu0 }
 0x6e5   :  { %v6220_v45 = vpack.c.bf16 %v6179_v7, %v6179_v7 }
 0x6e7   :  { %v6279_v33 = vsel %vm412_vm0, %v6220_v45, 0 }
 0x6e8   :  { %6378 = vmatpush1.bf16.msra.mxu1 %v6279_v33 }
 0x6e9   :  { %8908 = vmatprep.subr.bf16.mxu1 %v10244_v2 }
 0x6eb   :  { %6394 = vmatmul.mubr.bf16.vlgmr.msra.gmra.mrb[172].mxu1 %v6253_v30 }
 0x6ec   :  { %8924 = vmatprep.mubr.msk.bf16.mxu1 %vm10245_vm2, %v10244_v2  ;;  %8909 = vmatpush3.bf16.msra.mxu1 %v10169_v34 }
 0x6ed   :  { %8910 = vmatprep.subr.bf16.mxu1 %v10244_v2 }
 0x6f0   :  { %8911 = vmatpush3.bf16.msra.mxu1 %v10170_v58 }
 0x6f1   :  { %8912 = vmatprep.subr.bf16.mxu1 %v10244_v2 }
 0x6f4   :  { %8913 = vmatpush3.bf16.msra.mxu1 %v10171_v28 }
 0x6f5   :  { %8914 = vmatprep.subr.bf16.mxu1 %v10244_v2 }
 0x6f8   :  { %v7377_v60 = vpop.f32.mrb[164].mxu1  ;;  %8915 = vmatpush3.bf16.msra.mxu1 %v10172_v38 }
 0x6f9   :  { %v7378_v46 = vpop.f32.mrb[165].mxu1  ;;  %8916 = vmatprep.subr.bf16.mxu1 %v10244_v2 }
 0x6fa   :  { %v7379_v1 = vadd.f32 %v7378_v46, %v7377_v60  ;;  %v7380_v15 = vpop.f32.mrb[166].mxu1 }
 0x6fb   :  { %v7381_v17 = vpop.f32.mrb[167].mxu1 }
 0x6fc   :  { %8917 = vmatpush3.bf16.msra.mxu1 %v10173_v48 }
 0x6fd   :  { %8918 = vmatprep.subr.bf16.mxu1 %v10244_v2 }
 0x700   :  { %8919 = vmatpush3.bf16.msra.mxu1 %v10174_v6 }
 0x701   :  { %8920 = vmatprep.subr.bf16.mxu1 %v10244_v2 }
 0x704   :  { %8921 = vmatpush3.bf16.msra.mxu1 %v10175_v54 }
 0x705   :  { %8922 = vmatprep.subr.bf16.mxu1 %v10244_v2 }
 0x708   :  { %8923 = vmatpush3.bf16.msra.mxu1 %v10176_v43 }
 0x778   :  { %v7399_v55 = vpop.f32.mrb[168].mxu1 }
 0x779   :  { %v7400_v0 = vpop.f32.mrb[169].mxu1 }
 0x77a   :  { %v7401_v29 = vadd.f32 %v7400_v0, %v7399_v55  ;;  %v7402_v40 = vpop.f32.mrb[170].mxu1 }
 0x77b   :  { %v7403_v47 = vpop.f32.mrb[171].mxu1 }
 0x77c   :  { %v6356_v18 = vadd.f32 %v7401_v29, %v7379_v1 }
 0x7be   :  { %v6395_v41 = vpop.f32.mrb[172].mxu1 }
 0x7bf   :  { %v6396_v24 = vadd.f32 %v6395_v41, %v6356_v18  ;;  %v6397_v27 = vpop.f32.mrb[173].mxu1 }
 0x7c0   :  { %v6398_v31 = vpop.f32.mrb[174].mxu1 }
 0x7c1   :  { %v6401_v51 = vpack.c.bf16 %v6396_v24, %v6396_v24  ;;  %v6399_v3 = vpop.f32.mrb[175].mxu1 }
 0x7c3   :  { %8925 = vmatmul.mubr.bf16.vlgmr.msra.gmra.mrb[176].mxu1 %v6401_v51 }
 0x896   :  { %v6507_v57 = vpop.f32.mrb[176].mxu1 }
 0x897   :  { %v6508_v52 = vadd.f32 %v6972_v56, %v6507_v57  ;;  %v8926_v13 = vpop.f32.mrb[177].mxu1 }
 0x898   :  { %v6510_v14 = vpop.f32.mrb[178].mxu1 }
 0x899   :  { %6513 = vst [vmem:[#allocation5] sm:$0x3] %v6508_v52  ;;  %v8927_v50 = vpop.f32.mrb[179].mxu1  ;;  %v6527_v10 = vsel %vm6526_vm6, %v6508_v52, -1e+30  ;;  %v6544_v59 = vmul.f32 %v6982_v35, %v6508_v52 }
 0x89a   :  { %v6529_v53 = vsel %vm6528_vm7, %v6527_v10, -inf }
 0x89b   :  { %6530 = vmax.xlane.f32.xlu0 %v6529_v53  ;;  %v6545_v8 = vsel %vm6528_vm7, %v6544_v59, 0.0 }
 0x89c   :  { %6546 = vadd.xlane.f32.xlu1 %v6545_v8 }
 0x928   :  { %v6531_v25 = vpop.xlane.xlu0 %6530 }
 0x929   :  { %v6532_v19 = vsub.f32 %v6527_v10, %v6531_v25  ;;  %v6547_v37 = vpop.xlane.xlu1 %6546 }
 0x92b   :  { %v6533_v12 = vmul.f32 1.442695, %v6532_v19 }
 0x92d   :  { %10177 = vpow2.f32 %v6533_v12 }
 0x937   :  { %v10178_v11 = vpop.eup %10177 }
 0x938   :  { %v6535_v23 = vsel %vm6528_vm7, %v10178_v11, 0.0 }
 0x939   :  { %6536 = vadd.xlane.f32.xlu0 %v6535_v23 }
 0x9c6   :  { %v6537_v2 = vpop.xlane.xlu0 %6536 }
 0x9c7   :  { %10179 = vlog2.f32 %v6537_v2 }
 0x9d1   :  { %v10180_v49 = vpop.eup %10179 }
 0x9d2   :  { %v6539_v42 = vmul.f32 0.6931472, %v10180_v49 }
 0x9d4   :  { %v6540_v26 = vadd.f32 %v6539_v42, %v6531_v25 }
 0x9d6   :  { %v6548_v9 = vsub.f32 %v6540_v26, %v6547_v37 }
 0x9d8   :  { %v6550_v39 = vsel %vm6549_vm8, %v6548_v9, 0.0 }
 0x9d9   :  { %6551 = vadd.xlane.f32.xlu1 %v6550_v39 }
 0x9da   :  { %10204 = shalt.err (!%p10201_p9)
}
 0x9db   :  { %s10205_s17 = scalar_lea.hbm %s13898_s6, 32 }
 0x9dc   :  { %p10206_p10 = scmp.ne.s32.totalorder %s13898_s6, %s10205_s17  ;;  %p10209_p11 = scmp.lt.u32.totalorder %s10205_s17, %s13898_s6 }
 0x9de   :  { %p10211_p12 = pnand %p10209_p11, %p10206_p10 }
 0x9e0   :  { %10214 = shalt.err (!%p10211_p12)
}
 0x9e1   :  { %6574 = dma.vmem_to_hbm [thread:$0]  %s6572_s13, 32, %s13898_s6, [#allocation3]  }
 0x9e2   :  { %s10249_s23 = smov [#allocation6]  }
 0x9e3   :  { %s6581_s24 = sshll.u32 %s10249_s23, 4  ;;  %s6582_s24 = int_to_ptr.vmem [resolvable:$true] %s6581_s24 }
 0x9e4   :  { %s10215_s27 = scalar_lea.vmem %s6582_s24, 16  ;;  %s10219_s2 = scalar_lea.vmem %s6582_s24, 32 }
 0x9e5   :  { %p10216_p13 = scmp.ne.s32.totalorder %s6582_s24, %s10215_s27  ;;  %p10220_p0 = scmp.lt.s32.totalorder %s6582_s24, %s6582_s24 }
 0x9e6   :  { %p10221_p1 = scmp.lt.s32.totalorder %s10219_s2, %s10215_s27 }
 0x9e8   :  { %p10222_p2 = por %p10221_p1, %p10220_p0 }
 0x9ea   :  { %p10223_p3 = pnand %p10222_p2, %p10216_p13 }
 0xa66   :  { %v6552_v62 = vpop.xlane.xlu1 %6551 }
 0xa67   :  { %v6553_v5 = vrot.slane %v6552_v62, 4 }
 0xa69   :  { %v6554_v21 = vadd.f32 %v6553_v5, %v6552_v62 }
 0xa6b   :  { %v6555_v32 = vrot.slane %v6554_v21, 2 }
 0xa6d   :  { %v6556_v63 = vadd.f32 %v6555_v32, %v6554_v21 }
 0xa6f   :  { %v6557_v36 = vrot.slane %v6556_v63, 1 }
 0xa71   :  { %v6558_v7 = vadd.f32 %v6557_v36, %v6556_v63 }
 0xa73   :  { %10159 = vpush %v6558_v7 }
 0xaa4   :  { %s10160_s25 = spop %10159 }
 0xaa5   :  { %s6562_s26 = smul.f32 0.5, %s10160_s25 }
 0xaa7   :  { %v6563_v16 = vstv %s6562_s26 }
 0xaa8   :  { %6564 = vst [vmem:[#allocation6] sm:$0x1] %v6563_v16 }
 0xaa9   :  { %10226 = shalt.err (!%p10223_p3)
}
 0xaaa   :  { %s10227_s3 = scalar_lea.hbm %s13899_s7, 16 }
 0xaab   :  { %p10228_p4 = scmp.ne.s32.totalorder %s13899_s7, %s10227_s3  ;;  %p10231_p5 = scmp.lt.u32.totalorder %s10227_s3, %s13899_s7 }
 0xaad   :  { %p10233_p6 = pnand %p10231_p5, %p10228_p4 }
 0xaaf   :  { %10236 = shalt.err (!%p10233_p6)
}
 0xab0   :  { %6584 = dma.vmem_to_hbm [thread:$0]  %s6582_s24, 16, %s13899_s7, [#allocation7]  }
 0xab1   :  { %10239 = dma.done.wait [#allocation3], 32  }
 0xab2   :  { %10240 = vsyncadd [#allocation3], 4294967264 }
 0xab3   :  { %10241 = dma.done.wait [#allocation7], 16  }
 0xab4   :  { %10242 = vsyncadd [#allocation7], 4294967280 }
 0xab5   :  { %6591 = vsyncpa [#allocation3], 1 }
 0xab6   :  { %6592 = vsyncpa [#allocation7], 1 }
 0xab7   :  { %6593 = vsyncpa [#allocation4], 1 }

</bundles_post_ra>
